<compile_context>
chip_gen: v5e
topology: v5e:2x2
jax: 0.10.0
libtpu: 0.0.40
codegen_flags: <defaults>
</compile_context>

<pallas_src>
import functools

import jax
import jax.numpy as jnp
from jax.experimental import pallas as pl
from jax.experimental.pallas import tpu as pltpu

HIDDEN = 32      # hidden_dim
OUT = 2          # output_dim
WINDOW = 5       # window_size (== seq length fed to forward())


# ----------------------------------------------------------------------------
# Pallas kernel
# ----------------------------------------------------------------------------
def sbrnn_kernel(x_ref, w_ref, o_ref, *, center, hh):
    """x_ref: (BT, T) window rows (forward-time order).
       w_ref: packed (144, 3*hh) weight slab (see pack_params).
       o_ref: (BT, 2*hh) lane-dense output; only lanes [0, out_dim) non-zero."""
    steps = center + 1
    T = x_ref.shape[1]
    gw = 3 * hh                         # fused gate width: [r | z | n]

    # --- packed slab layout (matmul operands at 8-aligned sublane offsets) ---
    W_rzn = w_ref[0:hh, :]              # (hh, 3*hh) fused block-diag recurrent W
    v = hh
    wif  = w_ref[v + 0:v + 1, :]        # fwd-direction input weights (bwd lanes 0)
    wib  = w_ref[v + 1:v + 2, :]        # bwd-direction input weights (fwd lanes 0)
    b_gi = w_ref[v + 2:v + 3, :]        # folded biases (r,z: b_ih+b_hh; n: b_ih)
    b_nh = w_ref[v + 3:v + 4, 0:hh]     # (1, hh) b_hh_n, stays inside r * (...)
    fc0 = v + 8                         # 8-aligned FC block
    W_fc = w_ref[fc0:fc0 + hh, 0:2 * hh]           # (hh, 128) lane-padded fc wt
    b_fc = w_ref[fc0 + hh:fc0 + hh + 1, 0:2 * hh]  # (1, 128)

    x = x_ref[...]                      # (BT, T); tiny, single lane tile

    def gate_inputs(s):
        # input_dim == 1 -> pure VPU broadcast-FMA (no MXU). Computed right
        # before use so the gi live range is a single step.
        xf = x[:, s:s + 1]              # forward-time column s
        xb = x[:, T - 1 - s:T - s]      # backward-time column (static index)
        return xf * wif + xb * wib + b_gi          # (BT, 3*hh)

    # Fused step 0: h == 0, recurrent matmul elided.
    gi = gate_inputs(0)
    rz = jax.nn.sigmoid(gi[:, 0:2 * hh])           # one sigmoid over [r|z]
    r, z = rz[:, 0:hh], rz[:, hh:2 * hh]
    n = jnp.tanh(gi[:, 2 * hh:gw] + r * b_nh)
    h = (1.0 - z) * n                              # (BT, hh) = [h_f | h_b]

    # Remaining fused steps: both directions advance in lockstep; ONE MXU push
    # per step through the fused (hh, 3*hh) recurrent weight.
    for s in range(1, steps):
        gi = gate_inputs(s)
        gh = jnp.dot(h, W_rzn, preferred_element_type=jnp.float32)   # (BT, 3*hh)
        rz = jax.nn.sigmoid(gi[:, 0:2 * hh] + gh[:, 0:2 * hh])
        r, z = rz[:, 0:hh], rz[:, hh:2 * hh]
        n = jnp.tanh(gi[:, 2 * hh:gw] + r * (gh[:, 2 * hh:gw] + b_nh))
        h = (1.0 - z) * n + z * h

    # fc on the centered bidirectional state; lane-dense (BT, 128) store.
    out = jnp.dot(h, W_fc, preferred_element_type=jnp.float32) + b_fc
    o_ref[...] = out.astype(o_ref.dtype)


# ----------------------------------------------------------------------------
# Wrapper: batch grid + packed weight slab
# ----------------------------------------------------------------------------
def _round_up(x, m):
    return ((x + m - 1) // m) * m


def sbrnn_forward(x, w_slab, *, window_size=WINDOW, hidden=HIDDEN, out_dim=OUT,
                  batch_tile=None):
    """x: (batch, window_size) float32.  Returns (batch, out_dim) float32."""
    assert window_size % 2 == 1, "lockstep direction fusion assumes odd window"
    B, T = x.shape
    assert T == window_size
    hh = 2 * hidden
    center = window_size // 2

    if batch_tile is None:
        # Large tiles amortize the ~0.35us per-grid-step overhead, but keep at
        # least 2 tiles so both v7x TensorCores get work.
        batch_tile = min(512, max(8, _round_up(pl.cdiv(B, 2), 8)))
    assert batch_tile % 8 == 0

    pb = _round_up(B, batch_tile)
    if pb != B:
        x = jnp.pad(x, ((0, pb - B), (0, 0)))

    kernel = functools.partial(sbrnn_kernel, center=center, hh=hh)
    out = pl.pallas_call(
        kernel,
        out_shape=jax.ShapeDtypeStruct((pb, 2 * hh), jnp.float32),
        grid_spec=pltpu.PrefetchScalarGridSpec(
            num_scalar_prefetch=0,
            grid=(pb // batch_tile,),
            in_specs=[
                pl.BlockSpec((batch_tile, T), lambda b: (b, 0)),
                pl.BlockSpec(w_slab.shape, lambda b: (0, 0)),
            ],
            out_specs=pl.BlockSpec((batch_tile, 2 * hh), lambda b: (b, 0)),
        ),
        compiler_params=pltpu.CompilerParams(
            dimension_semantics=("parallel",),   # split batch tiles across TCs
        ),
    )(x, w_slab)
    return out[:B, :out_dim]


# ----------------------------------------------------------------------------
# Parameters: PyTorch-native shapes + packing into one slab
# ----------------------------------------------------------------------------
def init_native_params(key, input_dim=1, hidden=HIDDEN, out_dim=OUT):
    """nn.GRU(bidirectional) + nn.Linear native parameter shapes."""
    kg = 1.0 / (hidden ** 0.5)
    kf = 1.0 / ((2 * hidden) ** 0.5)
    ks = jax.random.split(key, 10)

    def u(kk, shape, bound):
        return jax.random.uniform(kk, shape, jnp.float32, -bound, bound)

    return dict(
        wih_f=u(ks[0], (3 * hidden, input_dim), kg),
        whh_f=u(ks[1], (3 * hidden, hidden), kg),
        bih_f=u(ks[2], (3 * hidden,), kg),
        bhh_f=u(ks[3], (3 * hidden,), kg),
        wih_b=u(ks[4], (3 * hidden, input_dim), kg),
        whh_b=u(ks[5], (3 * hidden, hidden), kg),
        bih_b=u(ks[6], (3 * hidden,), kg),
        bhh_b=u(ks[7], (3 * hidden,), kg),
        wfc=u(ks[8], (out_dim, 2 * hidden), kf),
        bfc=u(ks[9], (out_dim,), kf),
    )


def pack_params(p, *, hidden=HIDDEN, out_dim=OUT):
    """Pack GRU + FC params into one (2*hh + 16, 3*hh) f32 slab.

    Rows (hh = 2*hidden = 64, lane width 3*hh = 192):
      [0, 64)     fused block-diagonal recurrent weights [W_r | W_z | W_n]
      [64, 72)    vector rows: wif, wib, folded bias, b_hh_n, 4 pad rows
      [72, 136)   fc weight (lanes [0, out_dim) used)       -- 8-aligned start
      [136, 144)  fc bias row + pad rows
    """
    H = hidden
    hh = 2 * H
    gw = 3 * hh
    f32 = jnp.float32

    def gate(a, g):                      # PyTorch gate order: r, z, n
        return a[g * H:(g + 1) * H]

    # Fused recurrent weight: per-gate block-diagonal, gates stacked on lanes.
    W_rzn = jnp.zeros((hh, gw), f32)
    for g in range(3):
        W_rzn = W_rzn.at[:H, g * hh:g * hh + H].set(gate(p["whh_f"], g).T)
        W_rzn = W_rzn.at[H:, g * hh + H:(g + 1) * hh].set(gate(p["whh_b"], g).T)

    # 8 vector rows: input weights (fwd / bwd halves), folded biases, b_hh_n.
    vec = jnp.zeros((8, gw), f32)
    for g in range(3):
        vec = vec.at[0, g * hh:g * hh + H].set(gate(p["wih_f"][:, 0], g))
        vec = vec.at[1, g * hh + H:(g + 1) * hh].set(gate(p["wih_b"][:, 0], g))
        if g < 2:   # r, z gates: fold b_ih + b_hh
            vec = vec.at[2, g * hh:g * hh + H].set(
                gate(p["bih_f"], g) + gate(p["bhh_f"], g))
            vec = vec.at[2, g * hh + H:(g + 1) * hh].set(
                gate(p["bih_b"], g) + gate(p["bhh_b"], g))
        else:       # n gate: input bias only; b_hh_n stays inside r * (...)
            vec = vec.at[2, g * hh:g * hh + H].set(gate(p["bih_f"], g))
            vec = vec.at[2, g * hh + H:(g + 1) * hh].set(gate(p["bih_b"], g))
    vec = vec.at[3, :H].set(gate(p["bhh_f"], 2))
    vec = vec.at[3, H:hh].set(gate(p["bhh_b"], 2))

    # FC weight / bias, lane-padded (only first out_dim lanes non-zero).
    W_fc = jnp.zeros((hh, gw), f32).at[:, :out_dim].set(p["wfc"].T)
    b_fc = jnp.zeros((8, gw), f32).at[0, :out_dim].set(p["bfc"])

    return jnp.concatenate([W_rzn, vec, W_fc, b_fc], axis=0)   # (144, 192)


# ----------------------------------------------------------------------------
# Pure-JAX reference (PyTorch GRU / Linear semantics) for a sanity check
# ----------------------------------------------------------------------------
def sbrnn_ref(x, p, *, window_size=WINDOW, hidden=HIDDEN):
    H = hidden
    B, T = x.shape
    center = window_size // 2

    def cell(xt, h, wih, whh, bih, bhh):
        gi = xt * wih[:, 0][None, :] + bih            # input_dim == 1
        gh = h @ whh.T + bhh
        r = jax.nn.sigmoid(gi[:, :H] + gh[:, :H])
        z = jax.nn.sigmoid(gi[:, H:2 * H] + gh[:, H:2 * H])
        n = jnp.tanh(gi[:, 2 * H:] + r * gh[:, 2 * H:])
        return (1.0 - z) * n + z * h

    h_f = jnp.zeros((B, H), jnp.float32)
    for t in range(center + 1):
        h_f = cell(x[:, t:t + 1], h_f, p["wih_f"], p["whh_f"],
                   p["bih_f"], p["bhh_f"])
    h_b = jnp.zeros((B, H), jnp.float32)
    for t in range(T - 1, center - 1, -1):
        h_b = cell(x[:, t:t + 1], h_b, p["wih_b"], p["whh_b"],
                   p["bih_b"], p["bhh_b"])
    h_cat = jnp.concatenate([h_f, h_b], axis=-1)
    return h_cat @ p["wfc"].T + p["bfc"][None, :]


if __name__ == "__main__":
    key = jax.random.PRNGKey(0)
    kx, kp = jax.random.split(key)

    # Many sliding windows batched into one call; 200 is not a tile multiple,
    # so the padding + slicing paths are exercised (auto tile -> 104, grid=2).
    batch = 200
    x = jax.random.normal(kx, (batch, WINDOW), dtype=jnp.float32)
    native = init_native_params(kp)
    w_slab = pack_params(native)

    out = sbrnn_forward(x, w_slab)
    out = jax.block_until_ready(out)

    ref = sbrnn_ref(x, native)
    assert out.shape == (batch, OUT)
    assert jnp.allclose(out, ref, rtol=5e-3, atol=5e-3), (out, ref)
    print("KERNEL_OK")
</pallas_src>

<mosaic_0001>
module attributes {stable_mosaic.version = 11 : i64} {
  func.func @sbrnn_kernel(%arg0: i32, %arg1: memref<104x5xf32, #tpu.memory_space<vmem>>, %arg2: memref<144x192xf32, #tpu.memory_space<vmem>>, %arg3: memref<104x128xf32, #tpu.memory_space<vmem>>) attributes {dimension_semantics = [#tpu.dimension_semantics<parallel>], iteration_bounds = array<i64: 2>, scalar_prefetch = 0 : i64, scratch_operands = 0 : i64, tpu.core_type = #tpu.core_type<tc>, window_params = [{transform_indices = @transform_0, window_bounds = array<i64: 104, 5>}, {pipeline_mode = #tpu.pipeline_mode<synchronous>, transform_indices = @transform_1, window_bounds = array<i64: 144, 192>}, {transform_indices = @transform_2, window_bounds = array<i64: 104, 128>}]} {
    %c0 = arith.constant 0 : index
    %c0_0 = arith.constant 0 : index
    %0 = vector.load %arg2[%c0, %c0_0] : memref<144x192xf32, #tpu.memory_space<vmem>>, vector<64x192xf32>
    %c64 = arith.constant 64 : index
    %c0_1 = arith.constant 0 : index
    %1 = vector.load %arg2[%c64, %c0_1] : memref<144x192xf32, #tpu.memory_space<vmem>>, vector<1x192xf32>
    %c65 = arith.constant 65 : index
    %c0_2 = arith.constant 0 : index
    %2 = vector.load %arg2[%c65, %c0_2] : memref<144x192xf32, #tpu.memory_space<vmem>>, vector<1x192xf32>
    %c66 = arith.constant 66 : index
    %c0_3 = arith.constant 0 : index
    %3 = vector.load %arg2[%c66, %c0_3] : memref<144x192xf32, #tpu.memory_space<vmem>>, vector<1x192xf32>
    %c67 = arith.constant 67 : index
    %c0_4 = arith.constant 0 : index
    %4 = vector.load %arg2[%c67, %c0_4] : memref<144x192xf32, #tpu.memory_space<vmem>>, vector<1x64xf32>
    %c72 = arith.constant 72 : index
    %c0_5 = arith.constant 0 : index
    %5 = vector.load %arg2[%c72, %c0_5] : memref<144x192xf32, #tpu.memory_space<vmem>>, vector<64x128xf32>
    %c136 = arith.constant 136 : index
    %c0_6 = arith.constant 0 : index
    %6 = vector.load %arg2[%c136, %c0_6] : memref<144x192xf32, #tpu.memory_space<vmem>>, vector<1x128xf32>
    %c0_7 = arith.constant 0 : index
    %c0_8 = arith.constant 0 : index
    %7 = vector.load %arg1[%c0_7, %c0_8] : memref<104x5xf32, #tpu.memory_space<vmem>>, vector<104x5xf32>
    %8 = vector.extract_strided_slice %7 {offsets = [0, 0], sizes = [104, 1], strides = [1, 1]} : vector<104x5xf32> to vector<104x1xf32>
    %9 = vector.extract_strided_slice %7 {offsets = [0, 4], sizes = [104, 1], strides = [1, 1]} : vector<104x5xf32> to vector<104x1xf32>
    %10 = vector.broadcast %8 : vector<104x1xf32> to vector<104x192xf32>
    %11 = vector.broadcast %1 : vector<1x192xf32> to vector<104x192xf32>
    %12 = arith.mulf %10, %11 : vector<104x192xf32>
    %13 = vector.broadcast %9 : vector<104x1xf32> to vector<104x192xf32>
    %14 = vector.broadcast %2 : vector<1x192xf32> to vector<104x192xf32>
    %15 = arith.mulf %13, %14 : vector<104x192xf32>
    %16 = arith.addf %12, %15 : vector<104x192xf32>
    %17 = vector.broadcast %3 : vector<1x192xf32> to vector<104x192xf32>
    %18 = arith.addf %16, %17 : vector<104x192xf32>
    %19 = vector.extract_strided_slice %18 {offsets = [0, 0], sizes = [104, 128], strides = [1, 1]} : vector<104x192xf32> to vector<104x128xf32>
    %20 = arith.negf %19 : vector<104x128xf32>
    %21 = math.exp %20 : vector<104x128xf32>
    %cst = arith.constant 1.000000e+00 : f32
    %22 = vector.broadcast %cst : f32 to vector<104x128xf32>
    %23 = arith.addf %22, %21 : vector<104x128xf32>
    %24 = arith.divf %22, %23 : vector<104x128xf32>
    %25 = vector.extract_strided_slice %24 {offsets = [0, 0], sizes = [104, 64], strides = [1, 1]} : vector<104x128xf32> to vector<104x64xf32>
    %26 = vector.extract_strided_slice %24 {offsets = [0, 64], sizes = [104, 64], strides = [1, 1]} : vector<104x128xf32> to vector<104x64xf32>
    %27 = vector.extract_strided_slice %18 {offsets = [0, 128], sizes = [104, 64], strides = [1, 1]} : vector<104x192xf32> to vector<104x64xf32>
    %28 = vector.broadcast %4 : vector<1x64xf32> to vector<104x64xf32>
    %29 = arith.mulf %25, %28 : vector<104x64xf32>
    %30 = arith.addf %27, %29 : vector<104x64xf32>
    %31 = math.tanh %30 : vector<104x64xf32>
    %cst_9 = arith.constant 1.000000e+00 : f32
    %32 = vector.broadcast %cst_9 : f32 to vector<104x64xf32>
    %33 = arith.subf %32, %26 : vector<104x64xf32>
    %34 = arith.mulf %33, %31 : vector<104x64xf32>
    %35 = vector.extract_strided_slice %7 {offsets = [0, 1], sizes = [104, 1], strides = [1, 1]} : vector<104x5xf32> to vector<104x1xf32>
    %36 = vector.extract_strided_slice %7 {offsets = [0, 3], sizes = [104, 1], strides = [1, 1]} : vector<104x5xf32> to vector<104x1xf32>
    %37 = vector.broadcast %35 : vector<104x1xf32> to vector<104x192xf32>
    %38 = vector.broadcast %1 : vector<1x192xf32> to vector<104x192xf32>
    %39 = arith.mulf %37, %38 : vector<104x192xf32>
    %40 = vector.broadcast %36 : vector<104x1xf32> to vector<104x192xf32>
    %41 = vector.broadcast %2 : vector<1x192xf32> to vector<104x192xf32>
    %42 = arith.mulf %40, %41 : vector<104x192xf32>
    %43 = arith.addf %39, %42 : vector<104x192xf32>
    %44 = vector.broadcast %3 : vector<1x192xf32> to vector<104x192xf32>
    %45 = arith.addf %43, %44 : vector<104x192xf32>
    %cst_10 = arith.constant dense<0.000000e+00> : vector<104x192xf32>
    %46 = tpu.matmul %34, %0, %cst_10 {dimension_numbers = #tpu.dot_dimension_numbers<[1], [0], [0], [1], [0, 0, 1, 1], [], []>} : vector<104x64xf32>, vector<64x192xf32>, vector<104x192xf32> -> vector<104x192xf32>
    %47 = vector.extract_strided_slice %45 {offsets = [0, 0], sizes = [104, 128], strides = [1, 1]} : vector<104x192xf32> to vector<104x128xf32>
    %48 = vector.extract_strided_slice %46 {offsets = [0, 0], sizes = [104, 128], strides = [1, 1]} : vector<104x192xf32> to vector<104x128xf32>
    %49 = arith.addf %47, %48 : vector<104x128xf32>
    %50 = arith.negf %49 : vector<104x128xf32>
    %51 = math.exp %50 : vector<104x128xf32>
    %cst_11 = arith.constant 1.000000e+00 : f32
    %52 = vector.broadcast %cst_11 : f32 to vector<104x128xf32>
    %53 = arith.addf %52, %51 : vector<104x128xf32>
    %54 = arith.divf %52, %53 : vector<104x128xf32>
    %55 = vector.extract_strided_slice %54 {offsets = [0, 0], sizes = [104, 64], strides = [1, 1]} : vector<104x128xf32> to vector<104x64xf32>
    %56 = vector.extract_strided_slice %54 {offsets = [0, 64], sizes = [104, 64], strides = [1, 1]} : vector<104x128xf32> to vector<104x64xf32>
    %57 = vector.extract_strided_slice %45 {offsets = [0, 128], sizes = [104, 64], strides = [1, 1]} : vector<104x192xf32> to vector<104x64xf32>
    %58 = vector.extract_strided_slice %46 {offsets = [0, 128], sizes = [104, 64], strides = [1, 1]} : vector<104x192xf32> to vector<104x64xf32>
    %59 = vector.broadcast %4 : vector<1x64xf32> to vector<104x64xf32>
    %60 = arith.addf %58, %59 : vector<104x64xf32>
    %61 = arith.mulf %55, %60 : vector<104x64xf32>
    %62 = arith.addf %57, %61 : vector<104x64xf32>
    %63 = math.tanh %62 : vector<104x64xf32>
    %cst_12 = arith.constant 1.000000e+00 : f32
    %64 = vector.broadcast %cst_12 : f32 to vector<104x64xf32>
    %65 = arith.subf %64, %56 : vector<104x64xf32>
    %66 = arith.mulf %65, %63 : vector<104x64xf32>
    %67 = arith.mulf %56, %34 : vector<104x64xf32>
    %68 = arith.addf %66, %67 : vector<104x64xf32>
    %69 = vector.extract_strided_slice %7 {offsets = [0, 2], sizes = [104, 1], strides = [1, 1]} : vector<104x5xf32> to vector<104x1xf32>
    %70 = vector.extract_strided_slice %7 {offsets = [0, 2], sizes = [104, 1], strides = [1, 1]} : vector<104x5xf32> to vector<104x1xf32>
    %71 = vector.broadcast %69 : vector<104x1xf32> to vector<104x192xf32>
    %72 = vector.broadcast %1 : vector<1x192xf32> to vector<104x192xf32>
    %73 = arith.mulf %71, %72 : vector<104x192xf32>
    %74 = vector.broadcast %70 : vector<104x1xf32> to vector<104x192xf32>
    %75 = vector.broadcast %2 : vector<1x192xf32> to vector<104x192xf32>
    %76 = arith.mulf %74, %75 : vector<104x192xf32>
    %77 = arith.addf %73, %76 : vector<104x192xf32>
    %78 = vector.broadcast %3 : vector<1x192xf32> to vector<104x192xf32>
    %79 = arith.addf %77, %78 : vector<104x192xf32>
    %cst_13 = arith.constant dense<0.000000e+00> : vector<104x192xf32>
    %80 = tpu.matmul %68, %0, %cst_13 {dimension_numbers = #tpu.dot_dimension_numbers<[1], [0], [0], [1], [0, 0, 1, 1], [], []>} : vector<104x64xf32>, vector<64x192xf32>, vector<104x192xf32> -> vector<104x192xf32>
    %81 = vector.extract_strided_slice %79 {offsets = [0, 0], sizes = [104, 128], strides = [1, 1]} : vector<104x192xf32> to vector<104x128xf32>
    %82 = vector.extract_strided_slice %80 {offsets = [0, 0], sizes = [104, 128], strides = [1, 1]} : vector<104x192xf32> to vector<104x128xf32>
    %83 = arith.addf %81, %82 : vector<104x128xf32>
    %84 = arith.negf %83 : vector<104x128xf32>
    %85 = math.exp %84 : vector<104x128xf32>
    %cst_14 = arith.constant 1.000000e+00 : f32
    %86 = vector.broadcast %cst_14 : f32 to vector<104x128xf32>
    %87 = arith.addf %86, %85 : vector<104x128xf32>
    %88 = arith.divf %86, %87 : vector<104x128xf32>
    %89 = vector.extract_strided_slice %88 {offsets = [0, 0], sizes = [104, 64], strides = [1, 1]} : vector<104x128xf32> to vector<104x64xf32>
    %90 = vector.extract_strided_slice %88 {offsets = [0, 64], sizes = [104, 64], strides = [1, 1]} : vector<104x128xf32> to vector<104x64xf32>
    %91 = vector.extract_strided_slice %79 {offsets = [0, 128], sizes = [104, 64], strides = [1, 1]} : vector<104x192xf32> to vector<104x64xf32>
    %92 = vector.extract_strided_slice %80 {offsets = [0, 128], sizes = [104, 64], strides = [1, 1]} : vector<104x192xf32> to vector<104x64xf32>
    %93 = vector.broadcast %4 : vector<1x64xf32> to vector<104x64xf32>
    %94 = arith.addf %92, %93 : vector<104x64xf32>
    %95 = arith.mulf %89, %94 : vector<104x64xf32>
    %96 = arith.addf %91, %95 : vector<104x64xf32>
    %97 = math.tanh %96 : vector<104x64xf32>
    %cst_15 = arith.constant 1.000000e+00 : f32
    %98 = vector.broadcast %cst_15 : f32 to vector<104x64xf32>
    %99 = arith.subf %98, %90 : vector<104x64xf32>
    %100 = arith.mulf %99, %97 : vector<104x64xf32>
    %101 = arith.mulf %90, %68 : vector<104x64xf32>
    %102 = arith.addf %100, %101 : vector<104x64xf32>
    %cst_16 = arith.constant dense<0.000000e+00> : vector<104x128xf32>
    %103 = tpu.matmul %102, %5, %cst_16 {dimension_numbers = #tpu.dot_dimension_numbers<[1], [0], [0], [1], [0, 0, 1, 1], [], []>} : vector<104x64xf32>, vector<64x128xf32>, vector<104x128xf32> -> vector<104x128xf32>
    %104 = vector.broadcast %6 : vector<1x128xf32> to vector<104x128xf32>
    %105 = arith.addf %103, %104 : vector<104x128xf32>
    %c0_17 = arith.constant 0 : index
    %c0_18 = arith.constant 0 : index
    %106 = vector.load %arg3[%c0_17, %c0_18] : memref<104x128xf32, #tpu.memory_space<vmem>>, vector<104x128xf32>
    tpu.vector_store %arg3[%c0_17, %c0_18], %105 {strides = array<i32>} : memref<104x128xf32, #tpu.memory_space<vmem>>, vector<104x128xf32>,
    return
  }
  func.func @transform_0(%arg0: i32) -> (i32, i32) {
    %c0_i32 = arith.constant 0 : i32
    %c0_i32_0 = arith.constant 0 : i32
    return %arg0, %c0_i32 : i32, i32
  }
  func.func @transform_1(%arg0: i32) -> (i32, i32) {
    %c0_i32 = arith.constant 0 : i32
    %c0_i32_0 = arith.constant 0 : i32
    %c0_i32_1 = arith.constant 0 : i32
    return %c0_i32, %c0_i32_0 : i32, i32
  }
  func.func @transform_2(%arg0: i32) -> (i32, i32) {
    %c0_i32 = arith.constant 0 : i32
    %c0_i32_0 = arith.constant 0 : i32
    return %arg0, %c0_i32 : i32, i32
  }
}

</mosaic_0001>

<bundles_post_ra>
// kernel: tpu_custom_call.1
= control target key start
LH: loop header
LB: loop body
LE: loop exit
PB: predicated region body
PF: predicated region fallthrough
CT: control target
= control target key end

     0   :  { %7 = vsyncpa [#allocation3], 0  ;;  %s4748_s0 = inlined_call_operand.vmem [shape: f32[208,5], index: 0, kind: input, shape index: {}]   ;;  %s4749_s1 = inlined_call_operand.hbm [shape: f32[144,192], index: 1, kind: input, shape index: {}]   ;;  %s4750_s2 = inlined_call_operand.hbm [shape: f32[208,128], index: 2, kind: output, shape index: {}]  }
   0x1   :  { %8 = vsyncpa [#allocation4], 0 }
   0x2   :  { %10 = vsyncpa [#allocation4 + $0x1], 0  ;;  %s3203_s9 = smov 0   ;;  %s3205_s10 = smov 0  }
   0x3   :  { %s3207_s11 = smov 0   ;;  %s3209_s12 = smov 0  }
   0x4 LB: > { %s3224_s13 = sadd.s32 4294967295, %s3175_s12   ;;  %s2582_s14 = sadd.s32 4294967294, %s3175_s12   ;;  %s3175_s12 = sphi %s3209_s12, %s4784_s12   ;;  %s3171_s11 = sphi %s3207_s11, %s4783_s11   ;;  %s3167_s10 = sphi %s3205_s10, %s4782_s10   ;;  %s3163_s9 = sphi %s3203_s9, %s4781_s9  }
   0x5   : > { %s3228_s15 = sadd.s32 1, %s3175_s12   ;;  %s70_s16 = sadd.s32 1, %s3171_s11 }
   0x6   : > { %s67_s17 = ssub.s32 %s3175_s12, %s3228_s15  ;;  %p80_p0 = scmp.ne.s32.totalorder %s3171_s11, %s3167_s10 }
   0x7   : > { %p68_p1 = scmp.eq.s32.totalorder %s67_s17, 0  ;;  %p81_p2 = scmp.eq.s32.totalorder %s3224_s13, 1 }
   0x8   : > { %p86_p3 = scmp.ne.s32.totalorder %s3167_s10, %s3163_s9  ;;  %p87_p4 = scmp.eq.s32.totalorder %s2582_s14, 1 }
   0x9   : > { %s3239_s18 = scalar_select %p68_p1, %s3171_s11, %s70_s16  }
   0xa   : > { %p3241_p5 = por %p81_p2, %p80_p0  ;;  %p3245_p6 = por %p87_p4, %p86_p3 }
   0xb   : > { %p2583_p7 = scmp.ge.s32.totalorder %s3175_s12, 1  ;;  %p94_p8 = scmp.lt.s32.totalorder %s3175_s12, 3 }
   0xc   : > { %p2736_p9 = scmp.eq.s32.totalorder %s3224_s13, 0  ;;  %s105_s23 = sshll.u32 %s4749_s1, 4  ;;  %s106_s23 = int_to_ptr.hbm [resolvable:$true] %s105_s23 }
   0xd   : > { %p95_p10 = pnand %p2583_p7, %p94_p8  ;;  %s3177_s24 = smov [#allocation2]  }
   0xe   : > { %s107_s25 = sshll.u32 %s3177_s24, 4  ;;  %s3178_s26 = smov 256   ;;  %s108_s25 = int_to_ptr.vmem [resolvable:$true] %s107_s25 }
   0xf   : > { %p2728_p11 = pneg %p95_p10  ;;  %s3179_s27 = smov 16  }
  0x10   : > { %132 = sbr.rel (%p95_p10) target bundleno = 1629 (0x65d), region = 28 }
  0x11   : > { %p2729_p12 = pnand %p2736_p9, %p2728_p11 }
  0x13   : > { %2731 = dma.hbm_to_vmem [thread:$0]  (!%p2729_p12), %s106_s23, 4608, %s108_s25, [#allocation3], %s3178_s26, %s3178_s26, %s3179_s27  }
  0x15   : > { %3154 = dma.done.wait (%p2736_p9), [#allocation3], 4608  }
  0x16   : > { %3156 = vsyncadd (%p2736_p9), [#allocation3], 4294962688  ;;  %s155_s28 = smul.u32 13, %s3224_s13  ;;  %v3180_v0 = vmov 4   ;;  %v3181_v1 = vmov 0   ;;  %s3182_s5 = smov 64  }
  0x17   : > { %2782 = vset.pattern.permute.xlu0 %v3180_v0  ;;  %2786 = vset.pattern.permute.xlu2 %v3181_v1  ;;  %v179_v14 = vld [vmem:[#allocation2 + $0x80] ss:$8 sm:$0x3]  ;;  %v181_v16 = vld [vmem:[#allocation2 + $0x81] ss:$8 sm:$0x3] }
  0x18   : > { %2784 = vset.pattern.permute.xlu1 %v3181_v1  ;;  %p156_p13 = scmp.lt.s32.totalorder %s155_s28, 25  ;;  %v3287_v17 = vperm.slane %v179_v14, 0  ;;  %v3289_v18 = vperm.slane %v181_v16, 0  ;;  %v183_v19 = vld [vmem:[#allocation2 + $0x82] ss:$8 sm:$0x3] }
  0x19   : > { %v3293_v23 = vperm.slane %v183_v19, 0  ;;  %v3303_v32 = vperm.slane %v179_v14, 1  ;;  %v3305_v33 = vperm.slane %v181_v16, 1  ;;  %v3321_v49 = vperm.slane %v183_v19, 1  ;;  %v3327_v57 = vld [vmem:[#allocation2 + $0x83] ss:$0 sm:$0xff] }
  0x1a   : > { %s4786_s28 = smov (!%p156_p13, %s155_s28), 25  ;;  %s152_s6 = sand.u32 1, %s3167_s10  }
  0x1b   : > { %s2588_s29 = sshll.u32 %s4786_s28, 3  ;;  %s2721_s7 = smul.u32 104, %s152_s6 }
  0x1c   : > { %s3267_s4 = scalar_lea.vmem %s4748_s0, %s2588_s29  ;;  %s2696_s14 = smul.u32 104, %s3224_s13 }
  0x1d   : > { %v199_v2 = vld [vmem:[%s3267_s4 + $0x28] sm:$0xff]  ;;  %v198_v3 = vld [vmem:[%s3267_s4 + $0x20] sm:$0xff]  ;;  %v200_v5 = vld [vmem:[%s3267_s4 + $0x30] sm:$0xff]  ;;  %s4694_s8 = scalar_lea.vmem [#allocation5], %s2721_s7  ;;  %s2493_s24 = scalar_lea.sflag [#allocation4], %s152_s6 }
  0x1e   : > { %v194_v4 = vld [vmem:[%s3267_s4] sm:$0xff]  ;;  %234 = vperm.xlu2 %2786, %v199_v2   ;;  %320 = vperm.xlu0 %2782, %v198_v3   ;;  %v195_v6 = vld [vmem:[%s3267_s4 + $0x8] sm:$0xff]  ;;  %v201_v7 = vld [vmem:[%s3267_s4 + $0x38] sm:$0xff]  ;;  %s2504_s21 = scalar_lea.hbm %s4750_s2, %s2696_s14  ;;  %s2505_s22 = sshll.u32 %s4694_s8, 4  ;;  %s2506_s22 = int_to_ptr.vmem [resolvable:$true] %s2505_s22 }
  0x1f   : > { %209 = vperm.xlu1 %2784, %v194_v4   ;;  %v196_v8 = vld [vmem:[%s3267_s4 + $0x10] sm:$0xff]  ;;  %v197_v9 = vld [vmem:[%s3267_s4 + $0x18] sm:$0xff]  ;;  %v202_v10 = vld [vmem:[%s3267_s4 + $0x40] sm:$0xff]  ;;  %s2507_s23 = sshll.u32 %s2504_s21, 4  ;;  %s3129_s28 = scalar_lea.hbm %s4750_s2, 208  ;;  %s2508_s23 = int_to_ptr.hbm [resolvable:$true] %s2507_s23 }
  0x20   : > { %v203_v11 = vld [vmem:[%s3267_s4 + $0x48] sm:$0xff]  ;;  %v204_v12 = vld [vmem:[%s3267_s4 + $0x50] sm:$0xff]  ;;  %v205_v15 = vld [vmem:[%s3267_s4 + $0x58] sm:$0xff]  ;;  %s3123_s25 = sshra.s32 %s2508_s23, 4  ;;  %s3124_s25 = int_to_ptr.hbm [resolvable:$true] %s3123_s25 }
  0x21   : > { %s3125_s26 = scalar_lea.hbm %s3124_s25, 104  ;;  %p3130_p3 = scmp.lt.s32.totalorder %s3124_s25, %s4750_s2 }
  0x22   : > { %p3126_p0 = scmp.ne.s32.totalorder %s3124_s25, %s3125_s26  ;;  %p3131_p4 = scmp.lt.s32.totalorder %s3129_s28, %s3125_s26 }
  0x24   : > { %p3127_p1 = pnand %p3126_p0, %p3241_p5  ;;  %p3132_p7 = por %p3131_p4, %p3130_p3 }
  0x26   : > { %2787 = vset.pattern.permute.xlu2 %v3180_v0  ;;  %2783 = vset.pattern.permute.xlu0 %v3181_v1  ;;  %p3128_p2 = pneg %p3127_p1 }
  0x27   : > { %2785 = vset.pattern.permute.xlu1 %v3180_v0  ;;  %324 = vperm.xlu2 %2787, %v199_v2  }
  0x28   : > { %229 = vperm.xlu0 %2783, %v198_v3   ;;  %304 = vperm.xlu1 %2785, %v194_v4   ;;  %v3343_v4 = vld [vmem:[%s3267_s4 + $0x60] sm:$0xff]  ;;  %p3133_p8 = pnand %p3132_p7, %p3128_p2 }
  0x2f   : > { %308 = vperm.xlu2 %2787, %v195_v6  }
  0x30   : > { %239 = vperm.xlu0 %2783, %v200_v5   ;;  %2788 = vset.pattern.permute.xlu1 %v3181_v1 }
  0x31   : > { %214 = vperm.xlu1 %2788, %v195_v6  }
  0x37   : > { %2790 = vset.pattern.permute.xlu2 %v3181_v1 }
  0x38   : > { %2791 = vset.pattern.permute.xlu0 %v3180_v0  ;;  %219 = vperm.xlu2 %2790, %v196_v8  }
  0x39   : > { %332 = vperm.xlu0 %2791, %v201_v7   ;;  %2789 = vset.pattern.permute.xlu1 %v3180_v0 }
  0x3a   : > { %328 = vperm.xlu1 %2789, %v200_v5  }
  0x40   : > { %244 = vperm.xlu2 %2790, %v201_v7  }
  0x41   : > { %2794 = vset.pattern.permute.xlu0 %v3181_v1 }
  0x42   : > { %312 = vperm.xlu1 %2789, %v196_v8   ;;  %254 = vperm.xlu0 %2794, %v203_v11  }
  0x48   : > { %2793 = vset.pattern.permute.xlu2 %v3180_v0 }
  0x49   : > { %316 = vperm.xlu2 %2793, %v197_v9  }
  0x4a   : > { %2792 = vset.pattern.permute.xlu1 %v3181_v1  ;;  %264 = vperm.xlu0 %2794, %v205_v15  }
  0x4b   : > { %224 = vperm.xlu1 %2792, %v197_v9  }
  0x51   : > { %336 = vperm.xlu2 %2793, %v202_v10  }
  0x53   : > { %249 = vperm.xlu1 %2792, %v202_v10  }
  0x59   : > { %2796 = vset.pattern.permute.xlu2 %v3181_v1 }
  0x5a   : > { %259 = vperm.xlu2 %2796, %v204_v12  }
  0x5b   : > { %2795 = vset.pattern.permute.xlu1 %v3180_v0 }
  0x5c   : > { %340 = vperm.xlu1 %2795, %v203_v11  }
  0x62   : > { %2798 = vset.pattern.permute.xlu2 %v3180_v0 }
  0x64   : > { %344 = vperm.xlu1 %2795, %v204_v12  }
  0x6c   : > { %348 = vperm.xlu1 %2795, %v205_v15  }
  0x74   : > { %2797 = vset.pattern.permute.xlu1 %v3181_v1 }
  0x75   : > { %269 = vperm.xlu1 %2797, %v3343_v4  }
  0x78   : > { %v235_v13 = vpop.permute.xlu2 %234 }
  0x79   : > { %v287_v20 = vmul.f32 %v3287_v17, %v235_v13  ;;  %v288_v36 = vmul.f32 %v3303_v32, %v235_v13 }
  0x81   : > { %v325_v21 = vpop.permute.xlu2 %324 }
  0x82   : > { %v370_v22 = vmul.f32 %v3289_v18, %v325_v21  ;;  %v371_v37 = vmul.f32 %v3305_v33, %v325_v21 }
  0x84   : > { %v396_v24 = vadd.f32 %v370_v22, %v287_v20  ;;  %v397_v51 = vadd.f32 %v371_v37, %v288_v36 }
  0x86   : > { %v427_v25 = vadd.f32 %v3293_v23, %v396_v24  ;;  %v428_v62 = vadd.f32 %v3321_v49, %v397_v51 }
  0x88   : > { %v2594_v26 = vmul.f32 -1.442695, %v427_v25 }
  0x89   : > { %v3301_v31 = vpop.permute.xlu2 %308 }
  0x8a   : > { %2817 = vpow2.f32 %v2594_v26  ;;  %v362_v2 = vmul.f32 %v3289_v18, %v3301_v31 }
  0x90   : > { %v2818_v27 = vpop.eup %2817  ;;  %v3297_v28 = vpop.permute.xlu0 %320 }
  0x91   : > { %v487_v29 = vadd.f32 1.0, %v2818_v27  ;;  %v3299_v30 = vpop.permute.xlu1 %209  ;;  %v368_v35 = vmul.f32 %v3289_v18, %v3297_v28 }
  0x92   : > { %v277_v42 = vmul.f32 %v3287_v17, %v3299_v30  ;;  %v3325_v55 = vpop.permute.xlu2 %219 }
  0x93   : > { %2819 = vrcp.f32 %v487_v29  ;;  %v581_v41 = vand.u32 2147483648, %v487_v29  ;;  %vm575_vm0 = vweird.f32 %v487_v29  ;;  %v579_v46 = vand.u32 2147483647, %v487_v29 }
  0x94   : > { %v281_v36 = vmul.f32 %v3287_v17, %v3325_v55 }
  0x95   : > { %v582_v52 = vor.u32 1.1754944e-38, %v581_v41  ;;  %vm580_vm3 = vcmp.eq.f32.partialorder %v579_v46, 8.507059e+37 }
  0x99   : > { %v2820_v34 = vpop.eup %2819 }
  0x9a   : > { %v571_v38 = vmul.f32 %v2820_v34, %v487_v29  ;;  %v3311_v39 = vpop.permute.xlu0 %229  ;;  %v3313_v40 = vpop.permute.xlu1 %304  ;;  %vm576_vm1 = vweird.f32 %v2820_v34 }
  0x9b   : > { %v285_v43 = vmul.f32 %v3287_v17, %v3311_v39  ;;  %v360_v44 = vmul.f32 %v3289_v18, %v3313_v40  ;;  %vm577_vm2 = vmor %vm575_vm0, %vm576_vm1  ;;  %v3347_v9 = vpop.permute.xlu2 %244  ;;  %v286_v41 = vmul.f32 %v3303_v32, %v3311_v39 }
  0x9c   : > { %v572_v45 = vsub.f32 1.0, %v571_v38  ;;  %v291_v15 = vmul.f32 %v3287_v17, %v3347_v9 }
  0x9d   : > { %v394_v47 = vadd.f32 %v368_v35, %v285_v43  ;;  %v386_v48 = vadd.f32 %v360_v44, %v277_v42 }
  0x9e   : > { %v573_v50 = vmul.f32 %v2820_v34, %v572_v45 }
  0x9f   : > { %v425_v53 = vadd.f32 %v3293_v23, %v394_v47  ;;  %v417_v54 = vadd.f32 %v3293_v23, %v386_v48 }
  0xa0   : > { %v574_v56 = vadd.f32 %v2820_v34, %v573_v50 }
  0xa1   : > { %v2593_v58 = vmul.f32 -1.442695, %v425_v53  ;;  %v2589_v59 = vmul.f32 -1.442695, %v417_v54 }
  0xa2   : > { %v578_v60 = vsel %vm577_vm2, %v2820_v34, %v574_v56  ;;  %v3329_v61 = vpop.permute.xlu0 %239  ;;  %v369_v34 = vmul.f32 %v3305_v33, %v3297_v28 }
  0xa3   : > { %v3332_v63 = vsel %vm580_vm3, %v582_v52, %v578_v60  ;;  %2821 = vpow2.f32 %v2593_v58  ;;  %v3334_v0 = vpop.permute.xlu1 %214  ;;  %v289_v19 = vmul.f32 %v3287_v17, %v3329_v61 }
  0xa4   : > { %v695_v1 = vmul.f32 %v3332_v63, %v3327_v57  ;;  %2823 = vpow2.f32 %v2589_v59  ;;  %v279_v3 = vmul.f32 %v3287_v17, %v3334_v0  ;;  %v395_v56 = vadd.f32 %v369_v34, %v286_v41 }
  0xa6   : > { %v708_v5 = vadd.f32 %v695_v1, %v428_v62  ;;  %v388_v6 = vadd.f32 %v362_v2, %v279_v3  ;;  %v278_v2 = vmul.f32 %v3303_v32, %v3299_v30 }
  0xa8   : > { %2825 = vtanh.f32 %v708_v5  ;;  %v419_v7 = vadd.f32 %v3293_v23, %v388_v6  ;;  %v361_v5 = vmul.f32 %v3305_v33, %v3313_v40 }
  0xa9   : > { %v2822_v8 = vpop.eup %2821 }
  0xaa   : > { %v2824_v10 = vpop.eup %2823  ;;  %v486_v11 = vadd.f32 1.0, %v2822_v8  ;;  %v2590_v12 = vmul.f32 -1.442695, %v419_v7 }
  0xab   : > { %v3349_v13 = vadd.f32 1.0, %v2824_v10  ;;  %v3351_v14 = vpop.permute.xlu0 %332 }
  0xac   : > { %2827 = vrcp.f32 %v486_v11  ;;  %v3355_v16 = vpop.permute.xlu1 %328  ;;  %v374_v21 = vmul.f32 %v3289_v18, %v3351_v14  ;;  %vm560_vm4 = vweird.f32 %v486_v11  ;;  %v564_v48 = vand.u32 2147483647, %v486_v11 }
  0xad   : > { %2829 = vrcp.f32 %v3349_v13  ;;  %v372_v22 = vmul.f32 %v3289_v18, %v3355_v16  ;;  %v566_v50 = vand.u32 2147483648, %v486_v11  ;;  %v506_v39 = vand.u32 2147483648, %v3349_v13 }
  0xae   : > { %v2826_v20 = vpop.eup %2825  ;;  %2831 = vpow2.f32 %v2590_v12  ;;  %v400_v24 = vadd.f32 %v374_v21, %v291_v15  ;;  %v504_v59 = vand.u32 2147483647, %v3349_v13  ;;  %vm500_vm8 = vweird.f32 %v3349_v13  ;;  %v3401_v21 = vpop.permute.xlu2 %316 }
  0xaf   : > { %765 = vrot.lane.b32.xlu0 %v2826_v20, %s3182_s5  ;;  %v398_v25 = vadd.f32 %v372_v22, %v289_v19  ;;  %v567_v60 = vor.u32 1.1754944e-38, %v566_v50  ;;  %vm565_vm9 = vcmp.eq.f32.partialorder %v564_v48, 8.507059e+37  ;;  %v507_v10 = vor.u32 1.1754944e-38, %v506_v39 }
  0xb0   : > { %v431_v27 = vadd.f32 %v3293_v23, %v400_v24  ;;  %vm505_vm11 = vcmp.eq.f32.partialorder %v504_v59, 8.507059e+37  ;;  %v375_v59 = vmul.f32 %v3305_v33, %v3351_v14  ;;  %v373_v14 = vmul.f32 %v3305_v33, %v3355_v16 }
  0xb1   : > { %v429_v37 = vadd.f32 %v3293_v23, %v398_v25  ;;  %v387_v25 = vadd.f32 %v361_v5, %v278_v2 }
  0xb2   : > { %v2828_v26 = vpop.eup %2827  ;;  %v2596_v43 = vmul.f32 -1.442695, %v431_v27  ;;  %v280_v27 = vmul.f32 %v3303_v32, %v3334_v0 }
  0xb3   : > { %v2830_v29 = vpop.eup %2829  ;;  %v556_v35 = vmul.f32 %v2828_v26, %v486_v11  ;;  %v2595_v28 = vmul.f32 -1.442695, %v429_v37  ;;  %vm561_vm5 = vweird.f32 %v2828_v26  ;;  %v418_v0 = vadd.f32 %v3321_v49, %v387_v25 }
  0xb4   : > { %v2832_v38 = vpop.eup %2831  ;;  %v496_v42 = vmul.f32 %v2830_v29, %v3349_v13  ;;  %v3374_v44 = vpop.permute.xlu1 %312  ;;  %2833 = vpow2.f32 %v2596_v43  ;;  %vm501_vm6 = vweird.f32 %v2830_v29  ;;  %vm562_vm7 = vmor %vm560_vm4, %vm561_vm5  ;;  %v426_v13 = vadd.f32 %v3321_v49, %v395_v56 }
  0xb5   : > { %v557_v45 = vsub.f32 1.0, %v556_v35  ;;  %v3376_v46 = vadd.f32 1.0, %v2832_v38  ;;  %v364_v47 = vmul.f32 %v3289_v18, %v3374_v44  ;;  %vm502_vm10 = vmor %vm500_vm8, %vm501_vm6  ;;  %v363_v38 = vmul.f32 %v3305_v33, %v3301_v31 }
  0xb6   : > { %v497_v51 = vsub.f32 1.0, %v496_v42 }
  0xb7   : > { %v558_v52 = vmul.f32 %v2828_v26, %v557_v45  ;;  %2835 = vrcp.f32 %v3376_v46  ;;  %v390_v54 = vadd.f32 %v364_v47, %v281_v36  ;;  %v521_v36 = vand.u32 2147483648, %v3376_v46 }
  0xb8   : > { %v498_v53 = vmul.f32 %v2830_v29, %v497_v51  ;;  %2837 = vpow2.f32 %v2595_v28  ;;  %v519_v42 = vand.u32 2147483647, %v3376_v46  ;;  %v389_v28 = vadd.f32 %v363_v38, %v280_v27 }
  0xb9   : > { %v559_v58 = vadd.f32 %v2828_v26, %v558_v52  ;;  %v421_v1 = vadd.f32 %v3293_v23, %v390_v54  ;;  %vm515_vm13 = vweird.f32 %v3376_v46  ;;  %v522_v51 = vor.u32 1.1754944e-38, %v521_v36 }
  0xba   : > { %v499_v62 = vadd.f32 %v2830_v29, %v498_v53  ;;  %v2834_v6 = vpop.eup %2833  ;;  %vm520_vm15 = vcmp.eq.f32.partialorder %v519_v42, 8.507059e+37  ;;  %v292_v53 = vmul.f32 %v3303_v32, %v3347_v9 }
  0xbb   : > { %v563_v3 = vsel %vm562_vm7, %v2828_v26, %v559_v58  ;;  %v2591_v11 = vmul.f32 -1.442695, %v421_v1  ;;  %v3396_v30 = vadd.f32 1.0, %v2834_v6  ;;  %v366_v26 = vmul.f32 %v3289_v18, %v3401_v21 }
  0xbc   : > { %v3391_v7 = vsel %vm565_vm9, %v567_v60, %v563_v3  ;;  %v503_v8 = vsel %vm502_vm10, %v2830_v29, %v499_v62  ;;  %v290_v58 = vmul.f32 %v3303_v32, %v3329_v61  ;;  %v420_v60 = vadd.f32 %v3321_v49, %v389_v28 }
  0xbd   : > { %v2836_v12 = vpop.eup %2835  ;;  %v694_v15 = vmul.f32 %v3391_v7, %v3327_v57  ;;  %v3398_v20 = vsel %vm505_vm11, %v507_v10, %v503_v8  ;;  %2839 = vpow2.f32 %v2591_v11  ;;  %v3403_v22 = vpop.permute.xlu1 %224  ;;  %v609_v61 = vand.u32 2147483647, %v3396_v30 }
  0xbe   : > { %v2838_v19 = vpop.eup %2837  ;;  %v511_v40 = vmul.f32 %v2836_v12, %v3376_v46  ;;  %2841 = vrcp.f32 %v3396_v30  ;;  %v690_v35 = vmul.f32 %v3398_v20, %v3327_v57  ;;  %v283_v37 = vmul.f32 %v3287_v17, %v3403_v22 }
  0xbf   : > { %v707_v24 = vadd.f32 %v694_v15, %v426_v13  ;;  %v3410_v34 = vadd.f32 1.0, %v2838_v19  ;;  %vm516_vm12 = vweird.f32 %v2836_v12  ;;  %v611_v3 = vand.u32 2147483648, %v3396_v30 }
  0xc0   : > { %v512_v29 = vsub.f32 1.0, %v511_v40  ;;  %v392_v43 = vadd.f32 %v366_v26, %v283_v37  ;;  %v703_v50 = vadd.f32 %v690_v35, %v418_v0  ;;  %vm517_vm14 = vmor %vm515_vm13, %vm516_vm12  ;;  %v282_v10 = vmul.f32 %v3303_v32, %v3325_v55 }
  0xc1   : > { %2843 = vtanh.f32 %v707_v24  ;;  %v401_v11 = vadd.f32 %v375_v59, %v292_v53  ;;  %vm605_vm1 = vweird.f32 %v3396_v30  ;;  %v594_v15 = vand.u32 2147483647, %v3410_v34 }
  0xc2   : > { %v513_v41 = vmul.f32 %v2836_v12, %v512_v29  ;;  %2845 = vrcp.f32 %v3410_v34  ;;  %v423_v31 = vadd.f32 %v3293_v23, %v392_v43  ;;  %vm610_vm3 = vcmp.eq.f32.partialorder %v609_v61, 8.507059e+37 }
  0xc3   : > { %v2840_v45 = vpop.eup %2839  ;;  %v612_v16 = vor.u32 1.1754944e-38, %v611_v3  ;;  %v399_v40 = vadd.f32 %v373_v14, %v290_v58  ;;  %v596_v24 = vand.u32 2147483648, %v3410_v34  ;;  %vm590_vm5 = vweird.f32 %v3410_v34 }
  0xc4   : > { %v514_v47 = vadd.f32 %v2836_v12, %v513_v41  ;;  %v2842_v48 = vpop.eup %2841  ;;  %v3423_v52 = vadd.f32 1.0, %v2840_v45  ;;  %v2592_v9 = vmul.f32 -1.442695, %v423_v31  ;;  %v365_v35 = vmul.f32 %v3305_v33, %v3374_v44 }
  0xc5   : > { %v601_v54 = vmul.f32 %v2842_v48, %v3396_v30  ;;  %vm606_vm0 = vweird.f32 %v2842_v48  ;;  %v432_v30 = vadd.f32 %v3321_v49, %v401_v11  ;;  %vm595_vm6 = vcmp.eq.f32.partialorder %v594_v15, 8.507059e+37 }
  0xc6   : > { %v518_v39 = vsel %vm517_vm14, %v2836_v12, %v514_v47  ;;  %2847 = vrcp.f32 %v3423_v52  ;;  %vm607_vm2 = vmor %vm605_vm1, %vm606_vm0  ;;  %v597_v42 = vor.u32 1.1754944e-38, %v596_v24  ;;  %v534_v0 = vand.u32 2147483647, %v3423_v52  ;;  %v3491_v24 = vpop.permute.xlu2 %336 }
  0xc7   : > { %v2844_v56 = vpop.eup %2843  ;;  %v3431_v46 = vsel %vm520_vm15, %v522_v51, %v518_v39  ;;  %v602_v1 = vsub.f32 1.0, %v601_v54  ;;  %2849 = vtanh.f32 %v703_v50  ;;  %v536_v43 = vand.u32 2147483648, %v3423_v52 }
  0xc8   : > { %v691_v62 = vmul.f32 %v3431_v46, %v3327_v57  ;;  %763 = vrot.lane.b32.xlu2 %v2844_v56, %s3182_s5  ;;  %v2846_v2 = vpop.eup %2845  ;;  %2851 = vpow2.f32 %v2592_v9  ;;  %v391_v51 = vadd.f32 %v365_v35, %v282_v10  ;;  %vm530_vm9 = vweird.f32 %v3423_v52 }
  0xc9   : > { %v603_v6 = vmul.f32 %v2842_v48, %v602_v1  ;;  %v586_v8 = vmul.f32 %v2846_v2, %v3410_v34  ;;  %vm591_vm4 = vweird.f32 %v2846_v2  ;;  %v537_v53 = vor.u32 1.1754944e-38, %v536_v43 }
  0xca   : > { %v704_v5 = vadd.f32 %v691_v62, %v420_v60  ;;  %vm592_vm7 = vmor %vm590_vm5, %vm591_vm4  ;;  %vm535_vm11 = vcmp.eq.f32.partialorder %v534_v0, 8.507059e+37  ;;  %v422_v59 = vadd.f32 %v3321_v49, %v391_v51  ;;  %v367_v61 = vmul.f32 %v3305_v33, %v3401_v21 }
  0xcb   : > { %v604_v12 = vadd.f32 %v2842_v48, %v603_v6  ;;  %v587_v13 = vsub.f32 1.0, %v586_v8  ;;  %v284_v3 = vmul.f32 %v3303_v32, %v3403_v22 }
  0xcc   : > { %2853 = vtanh.f32 %v704_v5  ;;  %v2848_v19 = vpop.eup %2847 }
  0xcd   : > { %v608_v25 = vsel %vm607_vm2, %v2842_v48, %v604_v12  ;;  %v588_v26 = vmul.f32 %v2846_v2, %v587_v13  ;;  %v526_v55 = vmul.f32 %v2848_v19, %v3423_v52  ;;  %v2850_v27 = vpop.eup %2849  ;;  %vm531_vm8 = vweird.f32 %v2848_v19 }
  0xce   : > { %v3452_v29 = vsel %vm610_vm3, %v612_v16, %v608_v25  ;;  %v2852_v41 = vpop.eup %2851  ;;  %v430_v48 = vadd.f32 %v3321_v49, %v399_v40  ;;  %vm532_vm10 = vmor %vm530_vm9, %vm531_vm8  ;;  %v393_v10 = vadd.f32 %v367_v61, %v284_v3  ;;  %v3489_v40 = vpop.permute.xlu1 %249  ;;  %v729_v3 = vsub.f32 1.0, %v3398_v20 }
  0xcf   : > { %v697_v36 = vmul.f32 %v3452_v29, %v3327_v57  ;;  %v589_v37 = vadd.f32 %v2846_v2, %v588_v26  ;;  %v527_v38 = vsub.f32 1.0, %v526_v55  ;;  %v485_v47 = vadd.f32 1.0, %v2852_v41 }
  0xd0   : > { %755 = vrot.lane.b32.xlu2 %v2850_v27, %s3182_s5  ;;  %v424_v22 = vadd.f32 %v3321_v49, %v393_v10  ;;  %v293_v25 = vmul.f32 %v3287_v17, %v3489_v40  ;;  %v376_v26 = vmul.f32 %v3289_v18, %v3491_v24 }
  0xd1   : > { %v710_v45 = vadd.f32 %v697_v36, %v432_v30  ;;  %v593_v28 = vsel %vm592_vm7, %v2846_v2, %v589_v37  ;;  %v528_v44 = vmul.f32 %v2848_v19, %v527_v38  ;;  %v551_v5 = vand.u32 2147483648, %v485_v47  ;;  %v3499_v30 = vpop.permute.xlu0 %254 }
  0xd2   : > { %v2854_v34 = vpop.eup %2853  ;;  %v3463_v50 = vsel %vm595_vm6, %v597_v42, %v593_v28  ;;  %vm545_vm13 = vweird.f32 %v485_v47  ;;  %v402_v55 = vadd.f32 %v376_v26, %v293_v25  ;;  %v295_v36 = vmul.f32 %v3287_v17, %v3499_v30  ;;  %v3506_v42 = vpop.permute.xlu2 %259 }
  0xd3   : > { %757 = vrot.lane.b32.xlu0 %v2854_v34, %s3182_s5  ;;  %2855 = vtanh.f32 %v710_v45  ;;  %v696_v31 = vmul.f32 %v3463_v50, %v3327_v57  ;;  %v529_v39 = vadd.f32 %v2848_v19, %v528_v44  ;;  %v552_v12 = vor.u32 1.1754944e-38, %v551_v5 }
  0xd4   : > { %2857 = vrcp.f32 %v485_v47  ;;  %v433_v37 = vadd.f32 %v3293_v23, %v402_v55  ;;  %v297_v45 = vmul.f32 %v3287_v17, %v3506_v42 }
  0xd5   : > { %v709_v54 = vadd.f32 %v696_v31, %v430_v48  ;;  %v533_v56 = vsel %vm532_vm10, %v2848_v19, %v529_v39 }
  0xd6   : > { %v3470_v58 = vsel %vm535_vm11, %v537_v53, %v533_v56  ;;  %v3497_v27 = vpop.permute.xlu1 %340  ;;  %v2597_v41 = vmul.f32 -1.442695, %v433_v37 }
  0xd7   : > { %2859 = vtanh.f32 %v709_v54  ;;  %v692_v60 = vmul.f32 %v3470_v58, %v3327_v57  ;;  %v378_v35 = vmul.f32 %v3289_v18, %v3497_v27  ;;  %v734_v54 = vsub.f32 1.0, %v3332_v63 }
  0xd8   : > { %352 = vperm.xlu2 %2798, %v3343_v4   ;;  %v549_v4 = vand.u32 2147483647, %v485_v47 }
  0xd9   : > { %v2856_v62 = vpop.eup %2855  ;;  %v705_v1 = vadd.f32 %v692_v60, %v422_v59  ;;  %v404_v38 = vadd.f32 %v378_v35, %v295_v36  ;;  %v733_v60 = vsub.f32 1.0, %v3391_v7 }
  0xda   : > { %v2858_v52 = vpop.eup %2857  ;;  %vm550_vm15 = vcmp.eq.f32.partialorder %v549_v4, 8.507059e+37 }
  0xdb   : > { %769 = vrot.lane.b32.xlu0 %v2856_v62, %s3182_s5  ;;  %2861 = vtanh.f32 %v705_v1  ;;  %v541_v9 = vmul.f32 %v2858_v52, %v485_v47  ;;  %vm546_vm12 = vweird.f32 %v2858_v52  ;;  %v435_v0 = vadd.f32 %v3293_v23, %v404_v38  ;;  %v3515_v47 = vpop.permute.xlu0 %264 }
  0xdc   : > { %vm547_vm14 = vmor %vm545_vm13, %vm546_vm12  ;;  %v299_v62 = vmul.f32 %v3287_v17, %v3515_v47 }
  0xdd   : > { %v2860_v2 = vpop.eup %2859  ;;  %v542_v14 = vsub.f32 1.0, %v541_v9  ;;  %v2598_v28 = vmul.f32 -1.442695, %v435_v0 }
  0xde   : > { %767 = vrot.lane.b32.xlu1 %v2860_v2, %s3182_s5  ;;  %v3509_v43 = vpop.permute.xlu1 %344 }
  0xdf   : > { %v543_v6 = vmul.f32 %v2858_v52, %v542_v14  ;;  %v380_v34 = vmul.f32 %v3289_v18, %v3509_v43 }
  0xe1   : > { %v2862_v8 = vpop.eup %2861  ;;  %v544_v11 = vadd.f32 %v2858_v52, %v543_v6  ;;  %v406_v44 = vadd.f32 %v380_v34, %v297_v45 }
  0xe2   : > { %759 = vrot.lane.b32.xlu2 %v2862_v8, %s3182_s5 }
  0xe3   : > { %v548_v13 = vsel %vm547_vm14, %v2858_v52, %v544_v11  ;;  %v437_v51 = vadd.f32 %v3293_v23, %v406_v44  ;;  %v294_v44 = vmul.f32 %v3303_v32, %v3489_v40  ;;  %v731_v40 = vsub.f32 1.0, %v3470_v58 }
  0xe4   : > { %v3483_v21 = vsel %vm550_vm15, %v552_v12, %v548_v13  ;;  %v296_v58 = vmul.f32 %v3303_v32, %v3499_v30 }
  0xe5   : > { %v693_v15 = vmul.f32 %v3483_v21, %v3327_v57  ;;  %v2599_v53 = vmul.f32 -1.442695, %v437_v51 }
  0xe6   : > { %v3520_v39 = vpop.permute.xlu1 %348 }
  0xe7   : > { %v706_v19 = vadd.f32 %v693_v15, %v424_v22  ;;  %v382_v1 = vmul.f32 %v3289_v18, %v3520_v39 }
  0xe9   : > { %2863 = vtanh.f32 %v706_v19  ;;  %v408_v63 = vadd.f32 %v382_v1, %v299_v62 }
  0xea   : > { %2865 = vpow2.f32 %v2597_v41 }
  0xeb   : > { %2867 = vpow2.f32 %v2598_v28  ;;  %v439_v6 = vadd.f32 %v3293_v23, %v408_v63  ;;  %v175_v63 = vld [vmem:[#allocation2 + $0x68] sm:$0xff] }
  0xed   : > { %v2600_v13 = vmul.f32 -1.442695, %v439_v6 }
  0xee   : > { %v3549_v22 = vpop.permute.xlu1 %269 }
  0xef   : > { %v2864_v16 = vpop.eup %2863  ;;  %v301_v15 = vmul.f32 %v3287_v17, %v3549_v22 }
  0xf0   : > { %761 = vrot.lane.b32.xlu1 %v2864_v16, %s3182_s5  ;;  %v2866_v48 = vpop.eup %2865 }
  0xf1   : > { %v3518_v31 = vadd.f32 1.0, %v2866_v48  ;;  %v2868_v56 = vpop.eup %2867 }
  0xf2   : > { %v3533_v61 = vadd.f32 1.0, %v2868_v56 }
  0xf3   : > { %2869 = vrcp.f32 %v3518_v31  ;;  %vm620_vm1 = vweird.f32 %v3518_v31  ;;  %v626_v41 = vand.u32 2147483648, %v3518_v31  ;;  %v624_v34 = vand.u32 2147483647, %v3518_v31 }
  0xf4   : > { %2871 = vpow2.f32 %v2599_v53  ;;  %vm635_vm3 = vweird.f32 %v3533_v61  ;;  %v641_v56 = vand.u32 2147483648, %v3533_v61 }
  0xf5   : > { %2873 = vrcp.f32 %v3533_v61  ;;  %vm625_vm5 = vcmp.eq.f32.partialorder %v624_v34, 8.507059e+37  ;;  %v381_v34 = vmul.f32 %v3305_v33, %v3509_v43 }
  0xf9   : > { %v2870_v7 = vpop.eup %2869 }
  0xfa   : > { %v2872_v14 = vpop.eup %2871  ;;  %v616_v5 = vmul.f32 %v2870_v7, %v3518_v31  ;;  %vm621_vm0 = vweird.f32 %v2870_v7  ;;  %v377_v31 = vmul.f32 %v3305_v33, %v3491_v24 }
  0xfb   : > { %v3545_v10 = vadd.f32 1.0, %v2872_v14  ;;  %v2874_v11 = vpop.eup %2873  ;;  %vm3564_vm2 = vmor %vm620_vm1, %vm621_vm0  ;;  %v642_v14 = vor.u32 1.1754944e-38, %v641_v56 }
  0xfc   : > { %v617_v12 = vsub.f32 1.0, %v616_v5  ;;  %v631_v20 = vmul.f32 %v2874_v11, %v3533_v61  ;;  %vm636_vm4 = vweird.f32 %v2874_v11  ;;  %v403_v1 = vadd.f32 %v377_v31, %v294_v44 }
  0xfd   : > { %2875 = vrcp.f32 %v3545_v10  ;;  %vm3587_vm6 = vmor %vm635_vm3, %vm636_vm4  ;;  %vm650_vm8 = vweird.f32 %v3545_v10  ;;  %vm1054_vm4 = vcmask 523264  }
  0xfe   : > { %v618_v19 = vmul.f32 %v2870_v7, %v617_v12  ;;  %2877 = vpow2.f32 %v2600_v13  ;;  %v632_v26 = vsub.f32 1.0, %v631_v20  ;;  %v730_v20 = vsub.f32 1.0, %v3431_v46 }
  0xff   : > { %v656_v46 = vand.u32 2147483648, %v3545_v10 }
 0x100   : > { %v619_v35 = vadd.f32 %v2870_v7, %v618_v19  ;;  %v633_v45 = vmul.f32 %v2874_v11, %v632_v26 }
 0x102   : > { %v623_v48 = vsel %vm3564_vm2, %v2870_v7, %v619_v35  ;;  %v379_v7 = vmul.f32 %v3305_v33, %v3497_v27  ;;  %v434_v27 = vadd.f32 %v3321_v49, %v403_v1  ;;  %v735_v1 = vsub.f32 1.0, %v3463_v50 }
 0x103   : > { %v3559_v36 = vpop.eup %2875 }
 0x104   : > { %v2878_v38 = vpop.eup %2877  ;;  %v646_v51 = vmul.f32 %v3559_v36, %v3545_v10  ;;  %v405_v12 = vadd.f32 %v379_v7, %v296_v58  ;;  %vm651_vm9 = vweird.f32 %v3559_v36  ;;  %v3660_v58 = vld [vmem:[#allocation2 + $0x50] sm:$0xff] }
 0x105   : > { %v3576_v53 = vadd.f32 1.0, %v2878_v38  ;;  %vm3621_vm10 = vmor %vm650_vm8, %vm651_vm9  ;;  %v3052_v38 = vld [vmem:[%s3267_s4 + $0x10] sm:$0xff] }
 0x107   : > { %vm665_vm0 = vweird.f32 %v3576_v53 }
 0x121   : > { %v766_v59 = vpop.permute.xlu0 %765 }
 0x122   : > { %v3529_v52 = vmul.f32 %v766_v59, %v734_v54  ;;  %v764_v9 = vpop.permute.xlu2 %763  ;;  %v627_v54 = vor.u32 1.1754944e-38, %v626_v41  ;;  %v634_v59 = vadd.f32 %v2874_v11, %v633_v45  ;;  %v298_v45 = vmul.f32 %v3303_v32, %v3506_v42 }
 0x123   : > { %v3531_v2 = vmul.f32 %v764_v9, %v733_v60  ;;  %v639_v60 = vand.u32 2147483647, %v3533_v61 }
 0x124   : > { %1038 = vrot.lane.b32.xlu1 %v3529_v52, %s3182_s5  ;;  %v3583_v9 = vsel %vm625_vm5, %v627_v54, %v623_v48  ;;  %v638_v6 = vsel %vm3587_vm6, %v2874_v11, %v634_v59  ;;  %v657_v48 = vor.u32 1.1754944e-38, %v656_v46  ;;  %v302_v54 = vmul.f32 %v3303_v32, %v3549_v22  ;;  %v3644_v59 = vld [vmem:[#allocation2 + $0x70] sm:$0xff] }
 0x125   : > { %1036 = vrot.lane.b32.xlu2 %v3531_v2, %s3182_s5  ;;  %v698_v5 = vmul.f32 %v3583_v9, %v3327_v57  ;;  %vm640_vm7 = vcmp.eq.f32.partialorder %v639_v60, 8.507059e+37  ;;  %v3646_v60 = vld [vmem:[#allocation2 + $0x60] sm:$0xff]  ;;  %2697 = vmatpush.msra.mxu1 %v3644_v59  ;;  %v407_v22 = vadd.f32 %v381_v34, %v298_v45  ;;  %v383_v34 = vmul.f32 %v3305_v33, %v3520_v39 }
 0x126   : > { %v3606_v13 = vsel %vm640_vm7, %v642_v14, %v638_v6  ;;  %1089 = vmatpush.msra.mxu0 %v3644_v59  ;;  %2698 = vmatpush.msra.mxu2 %v3644_v59 }
 0x127   : > { %v711_v19 = vadd.f32 %v698_v5, %v434_v27  ;;  %v699_v35 = vmul.f32 %v3606_v13, %v3327_v57  ;;  %2700 = vmatpush.msra.mxu1 %v3646_v60  ;;  %2699 = vmatpush.msra.mxu3 %v3644_v59 }
 0x128   : > { %1090 = vmatpush.msra.mxu0 %v3646_v60  ;;  %2701 = vmatpush.msra.mxu2 %v3646_v60 }
 0x129   : > { %2703 = vmatpush.msra.mxu1 %v3660_v58  ;;  %2702 = vmatpush.msra.mxu3 %v3646_v60 }
 0x12a   : > { %v756_v4 = vpop.permute.xlu2 %755  ;;  %1091 = vmatpush.msra.mxu0 %v3660_v58  ;;  %2704 = vmatpush.msra.mxu2 %v3660_v58 }
 0x12b   : > { %v3543_v8 = vmul.f32 %v756_v4, %v729_v3  ;;  %v647_v3 = vsub.f32 1.0, %v646_v51  ;;  %2705 = vmatpush.msra.mxu3 %v3660_v58 }
 0x12d   : > { %1028 = vrot.lane.b32.xlu0 %v3543_v8, %s3182_s5  ;;  %v648_v30 = vmul.f32 %v3559_v36, %v647_v3 }
 0x132   : > { %v3555_v16 = vpop.permute.xlu2 %352 }
 0x133   : > { %v384_v25 = vmul.f32 %v3289_v18, %v3555_v16  ;;  %v385_v43 = vmul.f32 %v3305_v33, %v3555_v16 }
 0x135   : > { %v410_v55 = vadd.f32 %v384_v25, %v301_v15  ;;  %v654_v25 = vand.u32 2147483647, %v3545_v10  ;;  %v411_v3 = vadd.f32 %v385_v43, %v302_v54  ;;  %v162_v43 = vld [vmem:[#allocation2] sm:$0xff] }
 0x137   : > { %v441_v37 = vadd.f32 %v3293_v23, %v410_v55  ;;  %v436_v55 = vadd.f32 %v3321_v49, %v405_v12  ;;  %vm3633_vm11 = vcmp.eq.f32.partialorder %v654_v25, 8.507059e+37  ;;  %v438_v12 = vadd.f32 %v3321_v49, %v407_v22  ;;  %v177_v22 = vld [vmem:[#allocation2 + $0x78] sm:$0xff] }
 0x139   : > { %v2601_v28 = vmul.f32 -1.442695, %v441_v37  ;;  %v649_v37 = vadd.f32 %v3559_v36, %v648_v30 }
 0x13b   : > { %2879 = vpow2.f32 %v2601_v28  ;;  %v712_v28 = vadd.f32 %v699_v35, %v436_v55  ;;  %v653_v44 = vsel %vm3621_vm10, %v3559_v36, %v649_v37  ;;  %v669_v55 = vand.u32 2147483647, %v3576_v53 }
 0x13c   : > { %v760_v62 = vpop.permute.xlu2 %759  ;;  %2881 = vrcp.f32 %v3576_v53  ;;  %v3653_v16 = vsel %vm3633_vm11, %v657_v48, %v653_v44  ;;  %v442_v35 = vadd.f32 %v3321_v49, %v411_v3  ;;  %v164_v44 = vld [vmem:[#allocation2 + $0x10] sm:$0xff] }
 0x13d   : > { %v3591_v24 = vmul.f32 %v760_v62, %v731_v40  ;;  %v700_v30 = vmul.f32 %v3653_v16, %v3327_v57  ;;  %vm670_vm3 = vcmp.eq.f32.partialorder %v669_v55, 8.507059e+37  ;;  %v3184_v55 = vmov 3  }
 0x13e   : > { %2800 = vset.pattern.permute.xlu0 %v3184_v55 }
 0x13f   : > { %1032 = vrot.lane.b32.xlu1 %v3591_v24, %s3182_s5  ;;  %v713_v48 = vadd.f32 %v700_v30, %v438_v12  ;;  %v165_v30 = vld [vmem:[#allocation2 + $0x18] sm:$0xff] }
 0x141   : > { %v2880_v61 = vpop.eup %2879 }
 0x142   : > { %v494_v4 = vadd.f32 1.0, %v2880_v61  ;;  %v3609_v15 = vpop.eup %2881  ;;  %v171_v61 = vld [vmem:[#allocation2 + $0x48] sm:$0xff] }
 0x143   : > { %v661_v41 = vmul.f32 %v3609_v15, %v3576_v53  ;;  %vm666_vm1 = vweird.f32 %v3609_v15 }
 0x144   : > { %2883 = vrcp.f32 %v494_v4  ;;  %v686_v56 = vand.u32 2147483648, %v494_v4  ;;  %vm680_vm12 = vweird.f32 %v494_v4  ;;  %v684_v40 = vand.u32 2147483647, %v494_v4  ;;  %vm3706_vm2 = vmor %vm665_vm0, %vm666_vm1 }
 0x145   : > { %v758_v11 = vpop.permute.xlu0 %757  ;;  %2885 = vtanh.f32 %v711_v19  ;;  %v662_v31 = vsub.f32 1.0, %v661_v41  ;;  %v166_v41 = vld [vmem:[#allocation2 + $0x20] sm:$0xff] }
 0x146   : > { %v3614_v26 = vmul.f32 %v758_v11, %v730_v20  ;;  %2887 = vtanh.f32 %v712_v28  ;;  %v687_v7 = vor.u32 1.1754944e-38, %v686_v56  ;;  %vm3664_vm15 = vcmp.eq.f32.partialorder %v684_v40, 8.507059e+37  ;;  %v3692_v11 = vld [vmem:[#allocation2 + $0x30] sm:$0xff] }
 0x147   : > { %v663_v50 = vmul.f32 %v3609_v15, %v662_v31  ;;  %v671_v20 = vand.u32 2147483648, %v3576_v53  ;;  %v736_v28 = vsub.f32 1.0, %v3452_v29  ;;  %v732_v56 = vsub.f32 1.0, %v3483_v21 }
 0x148   : > { %1030 = vrot.lane.b32.xlu2 %v3614_v26, %s3182_s5 }
 0x149   : > { %v664_v25 = vadd.f32 %v3609_v15, %v663_v50  ;;  %v672_v53 = vor.u32 1.1754944e-38, %v671_v20  ;;  %v173_v50 = vld [vmem:[#allocation2 + $0x58] sm:$0xff] }
 0x14a   : > { %v2884_v0 = vpop.eup %2883 }
 0x14b   : > { %v676_v51 = vmul.f32 %v2884_v0, %v494_v4  ;;  %vm681_vm13 = vweird.f32 %v2884_v0  ;;  %v2886_v62 = vpop.eup %2885  ;;  %v3672_v4 = vld [vmem:[#allocation2 + $0x40] sm:$0xff] }
 0x14c   : > { %vm3655_vm14 = vmor %vm680_vm12, %vm681_vm13  ;;  %2706 = vmatpush.msra.mxu1 %v3672_v4  ;;  %1092 = vmatpush.msra.mxu0 %v3672_v4  ;;  %v2888_v46 = vpop.eup %2887 }
 0x14d   : > { %v677_v42 = vsub.f32 1.0, %v676_v51  ;;  %2707 = vmatpush.msra.mxu2 %v3672_v4  ;;  %v770_v10 = vpop.permute.xlu0 %769  ;;  %2708 = vmatpush.msra.mxu3 %v3672_v4 }
 0x14e   : > { %2709 = vmatpush.msra.mxu1 %v3692_v11  ;;  %1093 = vmatpush.msra.mxu0 %v3692_v11  ;;  %v3724_v39 = vmul.f32 %v770_v10, %v736_v28 }
 0x14f   : > { %v678_v36 = vmul.f32 %v2884_v0, %v677_v42  ;;  %2710 = vmatpush.msra.mxu2 %v3692_v11  ;;  %2711 = vmatpush.msra.mxu3 %v3692_v11 }
 0x150   : > { %771 = vrot.lane.b32.xlu2 %v2886_v62, %s3182_s5  ;;  %v768_v5 = vpop.permute.xlu1 %767  ;;  %2712 = vmatpush.msra.mxu1 %v166_v41 }
 0x151   : > { %v679_v14 = vadd.f32 %v2884_v0, %v678_v36  ;;  %v3670_v6 = vmul.f32 %v768_v5, %v735_v1  ;;  %1094 = vmatpush.msra.mxu0 %v166_v41  ;;  %2713 = vmatpush.msra.mxu2 %v166_v41  ;;  %v167_v5 = vld [vmem:[#allocation2 + $0x28] sm:$0xff] }
 0x152   : > { %2715 = vmatpush.msra.mxu1 %v164_v44  ;;  %2714 = vmatpush.msra.mxu3 %v166_v41 }
 0x153   : > { %v683_v27 = vsel %vm3655_vm14, %v2884_v0, %v679_v14  ;;  %1040 = vrot.lane.b32.xlu0 %v3670_v6, %s3182_s5  ;;  %v300_v0 = vmul.f32 %v3303_v32, %v3515_v47  ;;  %v668_v47 = vsel %vm3706_vm2, %v3609_v15, %v664_v25  ;;  %1095 = vmatpush.msra.mxu0 %v164_v44 }
 0x154   : > { %v3688_v19 = vsel %vm3664_vm15, %v687_v7, %v683_v27  ;;  %v3727_v51 = vsel %vm670_vm3, %v672_v53, %v668_v47  ;;  %2716 = vmatpush.msra.mxu2 %v164_v44  ;;  %2718 = vmatpush.msra.mxu1 %v162_v43  ;;  %v737_v7 = vsub.f32 1.0, %v3583_v9  ;;  %v169_v9 = vld [vmem:[#allocation2 + $0x38] sm:$0xff]  ;;  %v3054_v53 = vld [vmem:[%s3267_s4 + $0x20] sm:$0xff]  ;;  %v3056_v47 = vld [vmem:[%s3267_s4 + $0x30] sm:$0xff] }
 0x155   : > { %v702_v37 = vmul.f32 %v3688_v19, %v3327_v57  ;;  %v409_v29 = vadd.f32 %v383_v34, %v300_v0  ;;  %v701_v54 = vmul.f32 %v3727_v51, %v3327_v57  ;;  %1096 = vmatpush.msra.mxu0 %v162_v43  ;;  %2717 = vmatpush.msra.mxu3 %v164_v44  ;;  %v3053_v34 = vld [vmem:[%s3267_s4 + $0x18] sm:$0xff] }
 0x156   : > { %2719 = vmatpush.msra.mxu2 %v162_v43  ;;  %1145 = vmatpush.msrb.mxu1 %v177_v22 }
 0x157   : > { %v715_v45 = vadd.f32 %v702_v37, %v442_v35  ;;  %v440_v31 = vadd.f32 %v3321_v49, %v409_v29  ;;  %2720 = vmatpush.msra.mxu3 %v162_v43  ;;  %v3051_v37 = vld [vmem:[%s3267_s4 + $0x8] sm:$0xff]  ;;  %v3057_v29 = vld [vmem:[%s3267_s4 + $0x38] sm:$0xff] }
 0x158   : > { %773 = vrot.lane.b32.xlu2 %v2888_v46, %s3182_s5  ;;  %1838 = vmatpush.msrb.mxu2 %v3644_v59 }
 0x159   : > { %2889 = vtanh.f32 %v715_v45  ;;  %v714_v40 = vadd.f32 %v701_v54, %v440_v31  ;;  %1146 = vmatpush.msrb.mxu1 %v175_v63  ;;  %1894 = vmatpush.msrb.mxu3 %v177_v22  ;;  %v3060_v31 = vld [vmem:[%s3267_s4 + $0x48] sm:$0xff]  ;;  %v3061_v54 = vld [vmem:[%s3267_s4 + $0x50] sm:$0xff] }
 0x15a   : > { %2891 = vtanh.f32 %v713_v48  ;;  %1839 = vmatpush.msrb.mxu2 %v3646_v60  ;;  %v3055_v48 = vld [vmem:[%s3267_s4] sm:$0xff] }
 0x15b   : > { %1042 = vrot.lane.b32.xlu0 %v3724_v39, %s3182_s5  ;;  %2893 = vtanh.f32 %v714_v40  ;;  %1147 = vmatpush.msrb.mxu1 %v173_v50  ;;  %v3830_v40 = vld [vmem:[%s3267_s4 + $0x58] sm:$0xff] }
 0x15c   : > { %1840 = vmatpush.msrb.mxu2 %v3660_v58  ;;  %v3183_v58 = vmov 1   ;;  %1895 = vmatpush.msrb.mxu3 %v175_v63 }
 0x15d   : > { %2801 = vset.pattern.permute.xlu1 %v3183_v58  ;;  %2799 = vset.pattern.permute.xlu2 %v3183_v58 }
 0x15e   : > { %1841 = vmatpush.msrb.mxu2 %v3672_v4  ;;  %1896 = vmatpush.msrb.mxu3 %v173_v50  ;;  %v738_v4 = vsub.f32 1.0, %v3606_v13  ;;  %v741_v13 = vsub.f32 1.0, %v3688_v19  ;;  %v739_v19 = vsub.f32 1.0, %v3653_v16  ;;  %v740_v16 = vsub.f32 1.0, %v3727_v51  ;;  %v3058_v51 = vld [vmem:[%s3267_s4 + $0x40] sm:$0xff] }
 0x15f   : > { %v2890_v15 = vpop.eup %2889  ;;  %1148 = vmatpush.msrb.mxu1 %v171_v61 }
 0x160   : > { %779 = vrot.lane.b32.xlu2 %v2890_v15, %s3182_s5  ;;  %v2892_v42 = vpop.eup %2891  ;;  %1842 = vmatpush.msrb.mxu2 %v3692_v11  ;;  %v163_v11 = vld [vmem:[#allocation2 + $0x8] sm:$0xff] }
 0x161   : > { %v2894_v57 = vpop.eup %2893  ;;  %1897 = vmatpush.msrb.mxu3 %v171_v61  ;;  %1149 = vmatpush.msrb.mxu1 %v169_v9  ;;  %v3059_v15 = vld [vmem:[%s3267_s4 + $0x28] sm:$0xff] }
 0x162   : > { %v762_v62 = vpop.permute.xlu1 %761  ;;  %1843 = vmatpush.msrb.mxu2 %v166_v41 }
 0x163   : > { %v3739_v36 = vmul.f32 %v762_v62, %v732_v56  ;;  %775 = vrot.lane.b32.xlu0 %v2892_v42, %s3182_s5  ;;  %1898 = vmatpush.msrb.mxu3 %v169_v9 }
 0x164   : > { %1844 = vmatpush.msrb.mxu2 %v164_v44  ;;  %1150 = vmatpush.msrb.mxu1 %v167_v5 }
 0x165   : > { %1034 = vrot.lane.b32.xlu1 %v3739_v36, %s3182_s5  ;;  %1899 = vmatpush.msrb.mxu3 %v167_v5 }
 0x166   : > { %1845 = vmatpush.msrb.mxu2 %v162_v43  ;;  %1151 = vmatpush.msrb.mxu1 %v165_v30  ;;  %v3821_v43 = vld [vmem:[%s3267_s4 + $0x60] sm:$0xff] }
 0x167   : > { %1900 = vmatpush.msrb.mxu3 %v165_v30 }
 0x168   : > { %1152 = vmatpush.msrb.mxu1 %v163_v11 }
 0x169   : > { %1901 = vmatpush.msrb.mxu3 %v163_v11 }
 0x16d   : > { %777 = vrot.lane.b32.xlu1 %v2894_v57, %s3182_s5 }
 0x17f   : > { %v3749_v21 = vpop.permute.xlu2 %1036 }
 0x180   : > { %2606 = vmatmul.msk.f32.vlgmr.msra.gmra.mxu1 %vm1054_vm4, %v3749_v21 }
 0x196   : > { %v3753_v59 = vpop.permute.xlu1 %1038 }
 0x197   : > { %2607 = vmatmul.msk.f32.gmra.mxu1 %vm1054_vm4, %v3753_v59 }
 0x19f   : > { %v1029_v60 = vpop.permute.xlu0 %1028 }
 0x1a0   : > { %2602 = vmatmul.msk.f32.vlgmr.msra.gmra.mxu0 %vm1054_vm4, %v1029_v60 }
 0x1a2   : > { %v3758_v1 = vpop.permute.xlu2 %1030 }
 0x1a8   : > { %2603 = vmatmul.msk.f32.gmra.mxu0 %vm1054_vm4, %v3758_v1 }
 0x1aa   : > { %v772_v3 = vpop.permute.xlu2 %771 }
 0x1ab   : > { %v3765_v14 = vmul.f32 %v772_v3, %v737_v7 }
 0x1ad   : > { %1044 = vrot.lane.b32.xlu0 %v3765_v14, %s3182_s5 }
 0x1b1   : > { %v1033_v12 = vpop.permute.xlu1 %1032 }
 0x1b2   : > { %v774_v27 = vpop.permute.xlu2 %773  ;;  %2604 = vmatmul.msk.f32.gmra.mxu0 %vm1054_vm4, %v1033_v12 }
 0x1b3   : > { %v3770_v20 = vmul.f32 %v774_v27, %v738_v4 }
 0x1b5   : > { %1046 = vrot.lane.b32.xlu1 %v3770_v20, %s3182_s5 }
 0x1ba   : > { %v780_v25 = vpop.permute.xlu2 %779 }
 0x1bb   : > { %v3776_v35 = vmul.f32 %v780_v25, %v741_v13 }
 0x1bd   : > { %1052 = vrot.lane.b32.xlu1 %v3776_v35, %s3182_s5 }
 0x1c5   : > { %812 = vperm.xlu1 %2801, %v3051_v37   ;;  %v1041_v46 = vpop.permute.xlu0 %1040 }
 0x1c6   : > { %2608 = vmatmul.msk.f32.gmra.mxu1 %vm1054_vm4, %v1041_v46 }
 0x1cd   : > { %816 = vperm.xlu1 %2801, %v3052_v38   ;;  %v1043_v41 = vpop.permute.xlu0 %1042 }
 0x1ce   : > { %2609 = vmatmul.msk.f32.gmra.mxu1 %vm1054_vm4, %v1043_v41 }
 0x1d5   : > { %2804 = vset.pattern.permute.xlu1 %v3184_v55  ;;  %v776_v0 = vpop.permute.xlu0 %775 }
 0x1d6   : > { %898 = vperm.xlu1 %2804, %v3053_v34   ;;  %v3786_v45 = vmul.f32 %v776_v0, %v739_v19  ;;  %2615 = vmatmul.msk.f32.vlgmr.msrb.gmra.mxu1 %vm1054_vm4, %v1029_v60 }
 0x1d7   : > { %v1035_v10 = vpop.permute.xlu1 %1034 }
 0x1d8   : > { %2605 = vmatmul.msk.f32.gmra.mxu0 %vm1054_vm4, %v1035_v10  ;;  %1048 = vrot.lane.b32.xlu2 %v3786_v45, %s3182_s5 }
 0x1de   : > { %902 = vperm.xlu1 %2804, %v3054_v53   ;;  %2616 = vmatmul.msk.f32.gmra.mxu1 %vm1054_vm4, %v3758_v1 }
 0x1df   : > { %v778_v28 = vpop.permute.xlu1 %777 }
 0x1e0   : > { %v3796_v44 = vmul.f32 %v778_v28, %v740_v16  ;;  %808 = vperm.xlu2 %2799, %v3055_v48  }
 0x1e2   : > { %1050 = vrot.lane.b32.xlu0 %v3796_v44, %s3182_s5 }
 0x1e6   : > { %2807 = vset.pattern.permute.xlu1 %v3183_v58  ;;  %2617 = vmatmul.msk.f32.gmra.mxu1 %vm1054_vm4, %v1033_v12 }
 0x1e7   : > { %832 = vperm.xlu1 %2807, %v3056_v47  }
 0x1e8   : > { %2802 = vset.pattern.permute.xlu2 %v3184_v55 }
 0x1e9   : > { %890 = vperm.xlu2 %2802, %v3051_v37  }
 0x1ea   : > { %886 = vperm.xlu0 %2800, %v3055_v48  }
 0x1ee   : > { %2618 = vmatmul.msk.f32.gmra.mxu1 %vm1054_vm4, %v1035_v10 }
 0x1ef   : > { %836 = vperm.xlu1 %2807, %v3057_v29  }
 0x1f1   : > { %894 = vperm.xlu2 %2802, %v3052_v38  }
 0x1f2   : > { %2803 = vset.pattern.permute.xlu0 %v3183_v58 }
 0x1f3   : > { %820 = vperm.xlu0 %2803, %v3053_v34  }
 0x1f6   : > { %2619 = vmatmul.msk.f32.gmra.mxu1 %vm1054_vm4, %v3749_v21 }
 0x1f7   : > { %2810 = vset.pattern.permute.xlu1 %v3184_v55 }
 0x1f8   : > { %918 = vperm.xlu1 %2810, %v3058_v51  }
 0x1f9   : > { %2805 = vset.pattern.permute.xlu2 %v3183_v58 }
 0x1fa   : > { %824 = vperm.xlu2 %2805, %v3054_v53  }
 0x1fb   : > { %2806 = vset.pattern.permute.xlu0 %v3184_v55 }
 0x1fc   : > { %906 = vperm.xlu0 %2806, %v3059_v15  }
 0x1fd   : > { %v1110_v21 = vpop.f32.mrf.mxu1 }
 0x1fe   : > { %2620 = vmatmul.msk.f32.gmra.mxu1 %vm1054_vm4, %v3753_v59 }
 0x200   : > { %922 = vperm.xlu1 %2810, %v3060_v31  }
 0x202   : > { %828 = vperm.xlu2 %2805, %v3059_v15  }
 0x204   : > { %2809 = vset.pattern.permute.xlu0 %v3183_v58 }
 0x205   : > { %840 = vperm.xlu0 %2809, %v3058_v51  }
 0x206   : > { %2621 = vmatmul.msk.f32.gmra.mxu1 %vm1054_vm4, %v1041_v46 }
 0x20a   : > { %2808 = vset.pattern.permute.xlu2 %v3184_v55 }
 0x20b   : > { %910 = vperm.xlu2 %2808, %v3056_v47  }
 0x20d   : > { %2812 = vset.pattern.permute.xlu0 %v3184_v55 }
 0x20e   : > { %2622 = vmatmul.msk.f32.gmra.mxu1 %vm1054_vm4, %v1043_v41  ;;  %926 = vperm.xlu0 %2812, %v3061_v54  }
 0x213   : > { %914 = vperm.xlu2 %2808, %v3057_v29  }
 0x214   : > { %v3837_v1 = vpop.f32.mrf.mxu1 }
 0x216   : > { %2813 = vset.pattern.permute.xlu0 %v3183_v58 }
 0x217   : > { %856 = vperm.xlu0 %2813, %v3821_v43  }
 0x21b   : > { %2811 = vset.pattern.permute.xlu2 %v3183_v58 }
 0x21c   : > { %844 = vperm.xlu2 %2811, %v3060_v31  }
 0x21d   : > { %v1098_v63 = vpop.f32.mrf.mxu0 }
 0x21f   : > { %v1045_v56 = vpop.permute.xlu0 %1044 }
 0x220   : > { %2610 = vmatmul.msk.f32.vlgmr.msra.gmra.mxu2 %vm1054_vm4, %v1045_v56  ;;  %2623 = vmatmul.msk.f32.gmra.mxu1 %vm1054_vm4, %v1045_v56 }
 0x224   : > { %848 = vperm.xlu2 %2811, %v3061_v54  }
 0x225   : > { %v1101_v4 = vpop.f32.mrf.mxu0 }
 0x227   : > { %v1047_v42 = vpop.permute.xlu1 %1046 }
 0x228   : > { %2611 = vmatmul.msk.f32.gmra.mxu2 %vm1054_vm4, %v1047_v42  ;;  %2624 = vmatmul.msk.f32.gmra.mxu1 %vm1054_vm4, %v1047_v42 }
 0x22c   : > { %852 = vperm.xlu2 %2811, %v3830_v40  }
 0x22f   : > { %v1053_v62 = vpop.permute.xlu1 %1052  ;;  %v1104_v38 = vpop.f32.mrf.mxu0 }
 0x232   : > { %v1049_v57 = vpop.permute.xlu2 %1048 }
 0x233   : > { %2612 = vmatmul.msk.f32.vlgmr.msra.gmra.mxu3 %vm1054_vm4, %v1049_v57  ;;  %2625 = vmatmul.msk.f32.gmra.mxu1 %vm1054_vm4, %v1049_v57 }
 0x237   : > { %v813_v59 = vpop.permute.xlu1 %812 }
 0x238   : > { %v861_v7 = vmul.f32 %v813_v59, %v3287_v17  ;;  %v862_v56 = vmul.f32 %v813_v59, %v3303_v32 }
 0x23a   : > { %v3835_v60 = vpop.permute.xlu2 %808 }
 0x23b   : > { %v859_v51 = vmul.f32 %v3835_v60, %v3287_v17 }
 0x23f   : > { %v817_v22 = vpop.permute.xlu1 %816 }
 0x240   : > { %v863_v12 = vmul.f32 %v817_v22, %v3287_v17 }
 0x243   : > { %v891_v58 = vpop.permute.xlu2 %890  ;;  %v3840_v50 = vpop.f32.mrf.mxu1 }
 0x244   : > { %v939_v3 = vmul.f32 %v891_v58, %v3289_v18  ;;  %v940_v42 = vmul.f32 %v891_v58, %v3305_v33 }
 0x246   : > { %v965_v61 = vadd.f32 %v939_v3, %v861_v7  ;;  %v966_v58 = vadd.f32 %v940_v42, %v862_v56 }
 0x248   : > { %v3843_v9 = vpop.permute.xlu1 %898  ;;  %v991_v5 = vadd.f32 %v965_v61, %v3293_v23 }
 0x24a   : > { %v1194_v27 = vadd.f32 %v1101_v4, %v991_v5 }
 0x24b   : > { %v3847_v30 = vpop.permute.xlu2 %894  ;;  %v3849_v11 = vpop.f32.mrf.mxu1 }
 0x24c   : > { %v2629_v13 = vmul.f32 -1.442695, %v1194_v27  ;;  %v941_v25 = vmul.f32 %v3847_v30, %v3289_v18 }
 0x24e   : > { %2895 = vpow2.f32 %v2629_v13  ;;  %v967_v55 = vadd.f32 %v941_v25, %v863_v12 }
 0x250   : > { %v993_v37 = vadd.f32 %v967_v55, %v3293_v23  ;;  %v3854_v46 = vpop.permute.xlu1 %902 }
 0x251   : > { %v945_v0 = vmul.f32 %v3854_v46, %v3289_v18 }
 0x252   : > { %v1195_v41 = vadd.f32 %v1104_v38, %v993_v37  ;;  %v864_v38 = vmul.f32 %v817_v22, %v3303_v32 }
 0x253   : > { %v3856_v19 = vpop.f32.mrf.mxu1 }
 0x254   : > { %v2896_v34 = vpop.eup %2895  ;;  %v2630_v10 = vmul.f32 -1.442695, %v1195_v41  ;;  %v1051_v53 = vpop.permute.xlu0 %1050 }
 0x255   : > { %v3860_v16 = vpop.permute.xlu2 %824  ;;  %v1246_v28 = vadd.f32 1.0, %v2896_v34  ;;  %2613 = vmatmul.msk.f32.gmra.mxu3 %vm1054_vm4, %v1051_v53  ;;  %2626 = vmatmul.msk.f32.gmra.mxu1 %vm1054_vm4, %v1051_v53  ;;  %v943_v34 = vmul.f32 %v3843_v9, %v3289_v18 }
 0x256   : > { %v867_v48 = vmul.f32 %v3860_v16, %v3287_v17  ;;  %2897 = vpow2.f32 %v2630_v10 }
 0x257   : > { %2899 = vrcp.f32 %v1246_v28  ;;  %v1282_v13 = vand.u32 2147483647, %v1246_v28  ;;  %v1284_v25 = vand.u32 2147483648, %v1246_v28  ;;  %vm1278_vm6 = vweird.f32 %v1246_v28 }
 0x258   : > { %v971_v47 = vadd.f32 %v945_v0, %v867_v48 }
 0x259   : > { %v3883_v37 = vpop.permute.xlu1 %832  ;;  %vm1283_vm8 = vcmp.eq.f32.partialorder %v1282_v13, 8.507059e+37 }
 0x25a   : > { %v997_v29 = vadd.f32 %v971_v47, %v3293_v23  ;;  %v871_v22 = vmul.f32 %v3883_v37, %v3287_v17 }
 0x25b   : > { %v1157_v31 = vpop.f32.mrf.mxu1 }
 0x25c   : > { %v1197_v15 = vadd.f32 %v1110_v21, %v997_v29  ;;  %v2898_v54 = vpop.eup %2897  ;;  %v3871_v57 = vpop.permute.xlu0 %886  ;;  %v1285_v29 = vor.u32 1.1754944e-38, %v1284_v25 }
 0x25d   : > { %v3873_v7 = vpop.permute.xlu2 %828  ;;  %v2900_v3 = vpop.eup %2899  ;;  %v3875_v61 = vadd.f32 1.0, %v2898_v54  ;;  %v937_v4 = vmul.f32 %v3871_v57, %v3289_v18  ;;  %2614 = vmatmul.msk.f32.gmra.mxu3 %vm1054_vm4, %v1053_v62  ;;  %2627 = vmatmul.msk.f32.gmra.mxu1 %vm1054_vm4, %v1053_v62  ;;  %v992_v62 = vadd.f32 %v966_v58, %v3321_v49 }
 0x25e   : > { %v2632_v5 = vmul.f32 -1.442695, %v1197_v15  ;;  %v1274_v21 = vmul.f32 %v2900_v3, %v1246_v28  ;;  %vm1279_vm5 = vweird.f32 %v2900_v3  ;;  %v3901_v28 = vld [vmem:[#allocation2 + $0x83] ss:$0 sm:$0xff] }
 0x25f   : > { %2901 = vrcp.f32 %v3875_v61  ;;  %v963_v59 = vadd.f32 %v937_v4, %v859_v51  ;;  %vm3889_vm7 = vmor %vm1278_vm6, %vm1279_vm5  ;;  %v1454_v56 = vadd.f32 %v3901_v28, %v1157_v31  ;;  %v942_v4 = vmul.f32 %v3847_v30, %v3305_v33 }
 0x260   : > { %2903 = vpow2.f32 %v2632_v5  ;;  %v1275_v27 = vsub.f32 1.0, %v1274_v21  ;;  %v1299_v13 = vand.u32 2147483648, %v3875_v61  ;;  %vm1293_vm10 = vweird.f32 %v3875_v61 }
 0x261   : > { %v989_v12 = vadd.f32 %v963_v59, %v3293_v23 }
 0x262   : > { %v1276_v55 = vmul.f32 %v2900_v3, %v1275_v27 }
 0x263   : > { %v1193_v41 = vadd.f32 %v1098_v63, %v989_v12  ;;  %v1160_v0 = vpop.f32.mrf.mxu1  ;;  %v1297_v12 = vand.u32 2147483647, %v3875_v61 }
 0x264   : > { %v1277_v10 = vadd.f32 %v2900_v3, %v1276_v55 }
 0x265   : > { %v2902_v53 = vpop.eup %2901  ;;  %v2628_v48 = vmul.f32 -1.442695, %v1193_v41  ;;  %v3893_v51 = vpop.permute.xlu0 %820  ;;  %vm1298_vm12 = vcmp.eq.f32.partialorder %v1297_v12, 8.507059e+37 }
 0x266   : > { %v3897_v63 = vpop.permute.xlu2 %910  ;;  %v2904_v15 = vpop.eup %2903  ;;  %v1281_v54 = vsel %vm3889_vm7, %v2900_v3, %v1277_v10  ;;  %v1289_v42 = vmul.f32 %v2902_v53, %v3875_v61  ;;  %v865_v5 = vmul.f32 %v3893_v51, %v3287_v17  ;;  %vm1294_vm9 = vweird.f32 %v2902_v53 }
 0x267   : > { %v3909_v21 = vadd.f32 1.0, %v2904_v15  ;;  %2905 = vpow2.f32 %v2628_v48  ;;  %v3911_v59 = vsel %vm1283_vm8, %v1285_v29, %v1281_v54  ;;  %v949_v31 = vmul.f32 %v3897_v63, %v3289_v18  ;;  %vm1295_vm11 = vmor %vm1293_vm10, %vm1294_vm9 }
 0x268   : > { %v1467_v58 = vmul.f32 %v1454_v56, %v3911_v59  ;;  %v1290_v3 = vsub.f32 1.0, %v1289_v42  ;;  %v969_v27 = vadd.f32 %v943_v34, %v865_v5  ;;  %v968_v10 = vadd.f32 %v942_v4, %v864_v38  ;;  %v1107_v34 = vpop.f32.mrf.mxu0  ;;  %v837_v56 = vpop.permute.xlu1 %836 }
 0x269   : > { %v975_v41 = vadd.f32 %v949_v31, %v871_v22  ;;  %v946_v48 = vmul.f32 %v3854_v46, %v3305_v33  ;;  %2907 = vrcp.f32 %v3909_v21  ;;  %v868_v22 = vmul.f32 %v3860_v16, %v3303_v32 }
 0x26a   : > { %v1480_v25 = vadd.f32 %v1467_v58, %v992_v62  ;;  %v1291_v55 = vmul.f32 %v2902_v53, %v1290_v3  ;;  %v995_v30 = vadd.f32 %v969_v27, %v3293_v23  ;;  %v869_v38 = vmul.f32 %v3873_v7, %v3287_v17 }
 0x26b   : > { %v3923_v47 = vpop.f32.mrf.mxu1  ;;  %v1001_v62 = vadd.f32 %v975_v41, %v3293_v23  ;;  %v1300_v46 = vor.u32 1.1754944e-38, %v1299_v13  ;;  %v1455_v16 = vadd.f32 %v3901_v28, %v1160_v0  ;;  %v994_v12 = vadd.f32 %v968_v10, %v3321_v49 }
 0x26c   : > { %2909 = vtanh.f32 %v1480_v25  ;;  %v1292_v29 = vadd.f32 %v2902_v53, %v1291_v55  ;;  %v1196_v15 = vadd.f32 %v1107_v34, %v995_v30  ;;  %v873_v13 = vmul.f32 %v837_v56, %v3287_v17 }
 0x26d   : > { %v2906_v54 = vpop.eup %2905  ;;  %v1199_v4 = vadd.f32 %v3840_v50, %v1001_v62  ;;  %v860_v41 = vmul.f32 %v3835_v60, %v3303_v32  ;;  %v972_v34 = vadd.f32 %v946_v48, %v868_v22  ;;  %v938_v10 = vmul.f32 %v3871_v57, %v3305_v33 }
 0x26e   : > { %v3931_v61 = vadd.f32 1.0, %v2906_v54  ;;  %v1296_v42 = vsel %vm1295_vm11, %v2902_v53, %v1292_v29  ;;  %v2631_v5 = vmul.f32 -1.442695, %v1196_v15  ;;  %v3934_v58 = vpop.permute.xlu0 %906  ;;  %v915_v31 = vpop.permute.xlu2 %914  ;;  %v874_v53 = vmul.f32 %v837_v56, %v3303_v32 }
 0x26f   : > { %v3936_v3 = vsel %vm1298_vm12, %v1300_v46, %v1296_v42  ;;  %v947_v27 = vmul.f32 %v3934_v58, %v3289_v18  ;;  %v3945_v25 = vpop.eup %2907  ;;  %v2634_v55 = vmul.f32 -1.442695, %v1199_v4  ;;  %v951_v29 = vmul.f32 %v915_v31, %v3289_v18 }
 0x270   : > { %2911 = vrcp.f32 %v3931_v61  ;;  %v1468_v50 = vmul.f32 %v1455_v16, %v3936_v3  ;;  %v952_v54 = vmul.f32 %v915_v31, %v3305_v33  ;;  %v1319_v56 = vmul.f32 %v3945_v25, %v3909_v21 }
 0x271   : > { %2913 = vpow2.f32 %v2631_v5  ;;  %v973_v30 = vadd.f32 %v947_v27, %v869_v38  ;;  %v977_v46 = vadd.f32 %v951_v29, %v873_v13  ;;  %v998_v22 = vadd.f32 %v972_v34, %v3321_v49 }
 0x272   : > { %v2910_v0 = vpop.eup %2909  ;;  %v1481_v15 = vadd.f32 %v1468_v50, %v994_v12  ;;  %2915 = vpow2.f32 %v2634_v55  ;;  %v3959_v48 = vadd.f32 %v952_v54, %v874_v53  ;;  %v1320_v5 = vsub.f32 1.0, %v1319_v56 }
 0x273   : > { %v999_v62 = vadd.f32 %v973_v30, %v3293_v23  ;;  %1533 = vrot.lane.b32.xlu2 %v2910_v0, %s3182_s5  ;;  %v1166_v38 = vpop.f32.mrf.mxu1  ;;  %v1003_v42 = vadd.f32 %v977_v46, %v3293_v23  ;;  %v964_v16 = vadd.f32 %v938_v10, %v860_v41  ;;  %v1327_v12 = vand.u32 2147483647, %v3909_v21 }
 0x274   : > { %2917 = vtanh.f32 %v1481_v15  ;;  %v1329_v53 = vand.u32 2147483648, %v3909_v21  ;;  %vm1323_vm13 = vweird.f32 %v3909_v21  ;;  %vm1324_vm14 = vweird.f32 %v3945_v25 }
 0x275   : > { %v1198_v60 = vadd.f32 %v3837_v1, %v999_v62  ;;  %v1200_v50 = vadd.f32 %v3849_v11, %v1003_v42  ;;  %v1321_v1 = vmul.f32 %v3945_v25, %v1320_v5  ;;  %v1267_v0 = vand.u32 2147483647, %v3931_v61  ;;  %vm1325_vm1 = vmor %vm1323_vm13, %vm1324_vm14 }
 0x276   : > { %v2912_v57 = vpop.eup %2911  ;;  %v1269_v41 = vand.u32 2147483648, %v3931_v61  ;;  %vm1263_vm0 = vweird.f32 %v3931_v61  ;;  %vm1328_vm2 = vcmp.eq.f32.partialorder %v1327_v12, 8.507059e+37  ;;  %v1330_v21 = vor.u32 1.1754944e-38, %v1329_v53 }
 0x277   : > { %v2914_v4 = vpop.eup %2913  ;;  %v1259_v27 = vmul.f32 %v2912_v57, %v3931_v61  ;;  %v2633_v31 = vmul.f32 -1.442695, %v1198_v60  ;;  %vm1264_vm15 = vweird.f32 %v2912_v57  ;;  %v2635_v29 = vmul.f32 -1.442695, %v1200_v50 }
 0x278   : > { %v3965_v13 = vadd.f32 1.0, %v2914_v4  ;;  %v2916_v55 = vpop.eup %2915  ;;  %v1322_v15 = vadd.f32 %v3945_v25, %v1321_v1  ;;  %v1457_v46 = vadd.f32 %v3901_v28, %v1166_v38  ;;  %v1453_v56 = vadd.f32 %v3901_v28, %v3856_v19  ;;  %vm1265_vm3 = vmor %vm1263_vm0, %vm1264_vm15 }
 0x279   : > { %v1260_v30 = vsub.f32 1.0, %v1259_v27  ;;  %2919 = vpow2.f32 %v2633_v31  ;;  %v3975_v34 = vadd.f32 1.0, %v2916_v55  ;;  %v1270_v60 = vor.u32 1.1754944e-38, %v1269_v41 }
 0x27a   : > { %2921 = vrcp.f32 %v3965_v13  ;;  %v2918_v11 = vpop.eup %2917  ;;  %v1326_v54 = vsel %vm1325_vm1, %v3945_v25, %v1322_v15  ;;  %v870_v61 = vmul.f32 %v3873_v7, %v3303_v32  ;;  %vm1268_vm5 = vcmp.eq.f32.partialorder %v1267_v0, 8.507059e+37 }
 0x27b   : > { %v1261_v10 = vmul.f32 %v2912_v57, %v1260_v30  ;;  %2923 = vrcp.f32 %v3975_v34  ;;  %1535 = vrot.lane.b32.xlu2 %v2918_v11, %s3182_s5  ;;  %v3987_v42 = vsel %vm1328_vm2, %v1330_v21, %v1326_v54  ;;  %v3989_v5 = vpop.f32.mrf.mxu1  ;;  %v872_v25 = vmul.f32 %v3883_v37, %v3303_v32 }
 0x27c   : > { %2925 = vpow2.f32 %v2635_v29  ;;  %v1470_v38 = vmul.f32 %v1457_v46, %v3987_v42  ;;  %v950_v12 = vmul.f32 %v3897_v63, %v3305_v33  ;;  %v948_v7 = vmul.f32 %v3934_v58, %v3305_v33 }
 0x27d   : > { %v1262_v62 = vadd.f32 %v2912_v57, %v1261_v10  ;;  %v1357_v29 = vand.u32 2147483647, %v3975_v34  ;;  %v944_v54 = vmul.f32 %v3843_v9, %v3305_v33  ;;  %v866_v46 = vmul.f32 %v3893_v51, %v3303_v32 }
 0x27e   : > { %v1483_v53 = vadd.f32 %v1470_v38, %v998_v22  ;;  %v976_v58 = vadd.f32 %v950_v12, %v872_v25  ;;  %v974_v11 = vadd.f32 %v948_v7, %v870_v61  ;;  %v1359_v22 = vand.u32 2147483648, %v3975_v34 }
 0x27f   : > { %v2920_v4 = vpop.eup %2919  ;;  %v1266_v27 = vsel %vm1265_vm3, %v2912_v57, %v1262_v62  ;;  %v990_v57 = vadd.f32 %v964_v16, %v3321_v49  ;;  %vm1353_vm7 = vweird.f32 %v3975_v34  ;;  %v1314_v9 = vand.u32 2147483648, %v3965_v13 }
 0x280   : > { %v3994_v31 = vpop.eup %2921  ;;  %v3996_v19 = vsel %vm1268_vm5, %v1270_v60, %v1266_v27  ;;  %v4002_v50 = vadd.f32 1.0, %v2920_v4  ;;  %v1000_v60 = vadd.f32 %v974_v11, %v3321_v49  ;;  %v1312_v27 = vand.u32 2147483647, %v3965_v13 }
 0x281   : > { %v1466_v1 = vmul.f32 %v1453_v56, %v3996_v19  ;;  %v1304_v37 = vmul.f32 %v3994_v31, %v3965_v13  ;;  %v2924_v55 = vpop.eup %2923  ;;  %v1002_v56 = vadd.f32 %v976_v58, %v3321_v49  ;;  %vm1309_vm8 = vweird.f32 %v3994_v31 }
 0x282   : > { %2927 = vrcp.f32 %v4002_v50  ;;  %v2926_v30 = vpop.eup %2925  ;;  %v1349_v63 = vmul.f32 %v2924_v55, %v3975_v34  ;;  %vm1354_vm6 = vweird.f32 %v2924_v55  ;;  %vm1358_vm10 = vcmp.eq.f32.partialorder %v1357_v29, 8.507059e+37 }
 0x283   : > { %v1479_v0 = vadd.f32 %v1466_v1, %v990_v57  ;;  %v1305_v41 = vsub.f32 1.0, %v1304_v37  ;;  %2929 = vtanh.f32 %v1483_v53  ;;  %v4010_v10 = vadd.f32 1.0, %v2926_v30  ;;  %v1172_v61 = vpop.f32.mrf.mxu1  ;;  %vm1355_vm9 = vmor %vm1353_vm7, %vm1354_vm6 }
 0x284   : > { %v1350_v16 = vsub.f32 1.0, %v1349_v63  ;;  %v1360_v51 = vor.u32 1.1754944e-38, %v1359_v22  ;;  %v1459_v37 = vadd.f32 %v3901_v28, %v1172_v61  ;;  %vm1308_vm11 = vweird.f32 %v3965_v13 }
 0x285   : > { %2931 = vtanh.f32 %v1479_v0  ;;  %v1306_v15 = vmul.f32 %v3994_v31, %v1305_v41  ;;  %v1342_v34 = vand.u32 2147483647, %v4002_v50  ;;  %v1344_v30 = vand.u32 2147483648, %v4002_v50  ;;  %vm4040_vm13 = vmor %vm1308_vm11, %vm1309_vm8 }
 0x286   : > { %2933 = vrcp.f32 %v4010_v10  ;;  %v1351_v21 = vmul.f32 %v2924_v55, %v1350_v16  ;;  %vm4044_vm14 = vcmp.eq.f32.partialorder %v1312_v27, 8.507059e+37  ;;  %v1315_v11 = vor.u32 1.1754944e-38, %v1314_v9  ;;  %v4062_v9 = vpop.permute.xlu1 %918 }
 0x287   : > { %v1307_v7 = vadd.f32 %v3994_v31, %v1306_v15  ;;  %vm1338_vm15 = vweird.f32 %v4002_v50  ;;  %v1458_v16 = vadd.f32 %v3901_v28, %v3989_v5  ;;  %vm1343_vm1 = vcmp.eq.f32.partialorder %v1342_v34, 8.507059e+37 }
 0x288   : > { %v2928_v62 = vpop.eup %2927  ;;  %v1352_v38 = vadd.f32 %v2924_v55, %v1351_v21  ;;  %v1345_v61 = vor.u32 1.1754944e-38, %v1344_v30  ;;  %v1374_v27 = vand.u32 2147483648, %v4010_v10  ;;  %vm1368_vm3 = vweird.f32 %v4010_v10 }
 0x289   : > { %v2930_v4 = vpop.eup %2929  ;;  %v1334_v25 = vmul.f32 %v2928_v62, %v4002_v50  ;;  %vm1339_vm12 = vweird.f32 %v2928_v62  ;;  %v1311_v29 = vsel %vm4040_vm13, %v3994_v31, %v1307_v7 }
 0x28a   : > { %1539 = vrot.lane.b32.xlu2 %v2930_v4, %s3182_s5  ;;  %v1356_v1 = vsel %vm1355_vm9, %v2924_v55, %v1352_v38  ;;  %vm1340_vm0 = vmor %vm1338_vm15, %vm1339_vm12  ;;  %v1372_v4 = vand.u32 2147483647, %v4010_v10  ;;  %v970_v38 = vadd.f32 %v944_v54, %v866_v46  ;;  %v4058_v5 = vsel %vm4044_vm14, %v1315_v11, %v1311_v29  ;;  %v841_v46 = vpop.permute.xlu0 %840  ;;  %v845_v55 = vpop.permute.xlu2 %844 }
 0x28b   : > { %v2932_v12 = vpop.eup %2931  ;;  %v1335_v57 = vsub.f32 1.0, %v1334_v25  ;;  %v4033_v0 = vsel %vm1358_vm10, %v1360_v51, %v1356_v1  ;;  %v1456_v51 = vadd.f32 %v3901_v28, %v3923_v47  ;;  %v1375_v54 = vor.u32 1.1754944e-38, %v1374_v27 }
 0x28c   : > { %v2934_v53 = vpop.eup %2933  ;;  %1531 = vrot.lane.b32.xlu1 %v2932_v12, %s3182_s5  ;;  %v1472_v63 = vmul.f32 %v1459_v37, %v4033_v0  ;;  %vm1373_vm6 = vcmp.eq.f32.partialorder %v1372_v4, 8.507059e+37  ;;  %v996_v34 = vadd.f32 %v970_v38, %v3321_v49  ;;  %v877_v29 = vmul.f32 %v845_v55, %v3287_v17 }
 0x28d   : > { %v1336_v41 = vmul.f32 %v2928_v62, %v1335_v57  ;;  %v1364_v58 = vmul.f32 %v2934_v53, %v4010_v10  ;;  %vm1369_vm2 = vweird.f32 %v2934_v53  ;;  %v1469_v57 = vmul.f32 %v1456_v51, %v4058_v5 }
 0x28e   : > { %v1485_v15 = vadd.f32 %v1472_v63, %v1002_v56  ;;  %v1175_v56 = vpop.f32.mrf.mxu1  ;;  %vm1370_vm5 = vmor %vm1368_vm3, %vm1369_vm2 }
 0x28f   : > { %v1337_v22 = vadd.f32 %v2928_v62, %v1336_v41  ;;  %v1365_v21 = vsub.f32 1.0, %v1364_v58  ;;  %v1460_v47 = vadd.f32 %v3901_v28, %v1175_v56  ;;  %v875_v41 = vmul.f32 %v841_v46, %v3287_v17  ;;  %v923_v58 = vpop.permute.xlu1 %922 }
 0x290   : > { %2935 = vtanh.f32 %v1485_v15  ;;  %v1482_v63 = vadd.f32 %v1469_v57, %v996_v34 }
 0x291   : > { %v1341_v25 = vsel %vm1340_vm0, %v2928_v62, %v1337_v22  ;;  %v1366_v50 = vmul.f32 %v2934_v53, %v1365_v21  ;;  %v1004_v62 = vadd.f32 %v3959_v48, %v3321_v49 }
 0x292   : > { %v4060_v31 = vsel %vm1343_vm1, %v1345_v61, %v1341_v25  ;;  %v4090_v57 = vpop.permute.xlu2 %848 }
 0x293   : > { %v1471_v12 = vmul.f32 %v1458_v16, %v4060_v31  ;;  %v1367_v7 = vadd.f32 %v2934_v53, %v1366_v50  ;;  %v955_v16 = vmul.f32 %v923_v58, %v3289_v18 }
 0x294   : > { %930 = vperm.xlu1 %2810, %v3830_v40   ;;  %v953_v40 = vmul.f32 %v4062_v9, %v3289_v18 }
 0x295   : > { %v1484_v1 = vadd.f32 %v1471_v12, %v1000_v60  ;;  %v1371_v37 = vsel %vm1370_vm5, %v2934_v53, %v1367_v7  ;;  %v981_v61 = vadd.f32 %v955_v16, %v877_v29 }
 0x296   : > { %v4074_v30 = vsel %vm1373_vm6, %v1375_v54, %v1371_v37  ;;  %v2936_v10 = vpop.eup %2935  ;;  %v979_v53 = vadd.f32 %v953_v40, %v875_v41  ;;  %v876_v41 = vmul.f32 %v841_v46, %v3303_v32  ;;  %v954_v40 = vmul.f32 %v4062_v9, %v3305_v33 }
 0x297   : > { %2937 = vtanh.f32 %v1484_v1  ;;  %v1473_v48 = vmul.f32 %v1460_v47, %v4074_v30  ;;  %1543 = vrot.lane.b32.xlu2 %v2936_v10, %s3182_s5 }
 0x298   : > { %2939 = vtanh.f32 %v1482_v63  ;;  %v1005_v11 = vadd.f32 %v979_v53, %v3293_v23 }
 0x299   : > { %v4081_v60 = vadd.f32 %v1473_v48, %v1004_v62 }
 0x29a   : > { %v4095_v53 = vpop.permute.xlu2 %852 }
 0x29c   : > { %934 = vperm.xlu1 %2810, %v3821_v43   ;;  %v1007_v43 = vadd.f32 %v981_v61, %v3293_v23 }
 0x29d   : > { %v2938_v13 = vpop.eup %2937 }
 0x29e   : > { %1541 = vrot.lane.b32.xlu0 %v2938_v13, %s3182_s5  ;;  %v2940_v15 = vpop.eup %2939  ;;  %v1178_v13 = vpop.f32.mrf.mxu1 }
 0x2a3   : > { %v1122_v22 = vpop.f32.mrf.mxu2 }
 0x2a4   : > { %v1201_v21 = vadd.f32 %v1122_v22, %v1005_v11  ;;  %1537 = vrot.lane.b32.xlu1 %v2940_v15, %s3182_s5  ;;  %v980_v22 = vadd.f32 %v954_v40, %v876_v41  ;;  %v1585_v40 = vmul.f32 %v3936_v3, %v3591_v24 }
 0x2a6   : > { %v2636_v4 = vmul.f32 -1.442695, %v1201_v21  ;;  %v1461_v21 = vadd.f32 %v3901_v28, %v1178_v13  ;;  %v1006_v46 = vadd.f32 %v980_v22, %v3321_v49 }
 0x2a8   : > { %2941 = vpow2.f32 %v2636_v4  ;;  %v1506_v4 = vsub.f32 1.0, %v3911_v59 }
 0x2ab   : > { %v1125_v27 = vpop.f32.mrf.mxu2 }
 0x2ac   : > { %v1202_v25 = vadd.f32 %v1125_v27, %v1007_v43  ;;  %v956_v27 = vmul.f32 %v923_v58, %v3305_v33  ;;  %v927_v58 = vpop.permute.xlu0 %926 }
 0x2ae   : > { %v2942_v50 = vpop.eup %2941  ;;  %v2637_v38 = vmul.f32 -1.442695, %v1202_v25  ;;  %v878_v25 = vmul.f32 %v845_v55, %v3303_v32 }
 0x2af   : > { %v1253_v56 = vadd.f32 1.0, %v2942_v50 }
 0x2b0   : > { %2943 = vpow2.f32 %v2637_v38 }
 0x2b1   : > { %2945 = vrcp.f32 %v1253_v56  ;;  %v1389_v10 = vand.u32 2147483648, %v1253_v56  ;;  %vm1383_vm8 = vweird.f32 %v1253_v56  ;;  %v1387_v63 = vand.u32 2147483647, %v1253_v56 }
 0x2b3   : > { %v1390_v16 = vor.u32 1.1754944e-38, %v1389_v10  ;;  %vm1388_vm10 = vcmp.eq.f32.partialorder %v1387_v63, 8.507059e+37 }
 0x2b6   : > { %v2944_v51 = vpop.eup %2943 }
 0x2b7   : > { %v2946_v12 = vpop.eup %2945  ;;  %v1254_v7 = vadd.f32 1.0, %v2944_v51  ;;  %v1584_v51 = vmul.f32 %v3911_v59, %v3614_v26  ;;  %v957_v26 = vmul.f32 %v927_v58, %v3289_v18  ;;  %v879_v59 = vmul.f32 %v4090_v57, %v3287_v17 }
 0x2b8   : > { %v1379_v62 = vmul.f32 %v2946_v12, %v1253_v56  ;;  %vm1384_vm7 = vweird.f32 %v2946_v12 }
 0x2b9   : > { %2947 = vrcp.f32 %v1254_v7  ;;  %vm1385_vm9 = vmor %vm1383_vm8, %vm1384_vm7  ;;  %v1404_v9 = vand.u32 2147483648, %v1254_v7  ;;  %vm1398_vm12 = vweird.f32 %v1254_v7  ;;  %v1402_v50 = vand.u32 2147483647, %v1254_v7 }
 0x2ba   : > { %v1380_v54 = vsub.f32 1.0, %v1379_v62  ;;  %v1181_v62 = vpop.f32.mrf.mxu1  ;;  %v983_v13 = vadd.f32 %v957_v26, %v879_v59 }
 0x2bb   : > { %vm1403_vm14 = vcmp.eq.f32.partialorder %v1402_v50, 8.507059e+37  ;;  %v1462_v55 = vadd.f32 %v3901_v28, %v1181_v62  ;;  %v1583_v62 = vmul.f32 %v3996_v19, %v3543_v8 }
 0x2bc   : > { %v1381_v1 = vmul.f32 %v2946_v12, %v1380_v54  ;;  %v1405_v54 = vor.u32 1.1754944e-38, %v1404_v9  ;;  %v1009_v22 = vadd.f32 %v983_v13, %v3293_v23  ;;  %v1509_v9 = vsub.f32 1.0, %v3987_v42 }
 0x2be   : > { %v1382_v34 = vadd.f32 %v2946_v12, %v1381_v1 }
 0x2bf   : > { %v2948_v37 = vpop.eup %2947 }
 0x2c0   : > { %v1394_v47 = vmul.f32 %v2948_v37, %v1254_v7  ;;  %v1386_v11 = vsel %vm1385_vm9, %v2946_v12, %v1382_v34  ;;  %vm1399_vm11 = vweird.f32 %v2948_v37 }
 0x2c1   : > { %v4097_v15 = vsel %vm1388_vm10, %v1390_v16, %v1386_v11  ;;  %vm1400_vm13 = vmor %vm1398_vm12, %vm1399_vm11 }
 0x2c2   : > { %v1395_v48 = vsub.f32 1.0, %v1394_v47  ;;  %v1474_v43 = vmul.f32 %v1461_v21, %v4097_v15  ;;  %v982_v47 = vadd.f32 %v956_v27, %v878_v25  ;;  %v1128_v21 = vpop.f32.mrf.mxu3 }
 0x2c4   : > { %v1396_v29 = vmul.f32 %v2948_v37, %v1395_v48  ;;  %v1487_v1 = vadd.f32 %v1474_v43, %v1006_v46  ;;  %v1008_v7 = vadd.f32 %v982_v47, %v3321_v49  ;;  %v1507_v48 = vsub.f32 1.0, %v3936_v3 }
 0x2c6   : > { %v1397_v61 = vadd.f32 %v2948_v37, %v1396_v29  ;;  %2949 = vtanh.f32 %v1487_v1 }
 0x2c8   : > { %v1401_v56 = vsel %vm1400_vm13, %v2948_v37, %v1397_v61  ;;  %v1203_v61 = vadd.f32 %v1128_v21, %v1009_v22  ;;  %v1184_v21 = vpop.f32.mrf.mxu1 }
 0x2c9   : > { %v4109_v10 = vsel %vm1403_vm14, %v1405_v54, %v1401_v56  ;;  %v1505_v56 = vsub.f32 1.0, %v3996_v19 }
 0x2ca   : > { %v1475_v37 = vmul.f32 %v1462_v55, %v4109_v10  ;;  %v2638_v24 = vmul.f32 -1.442695, %v1203_v61  ;;  %v4146_v55 = vpop.permute.xlu0 %856 }
 0x2cc   : > { %v1488_v11 = vadd.f32 %v1475_v37, %v1008_v7  ;;  %v2950_v16 = vpop.eup %2949  ;;  %v881_v7 = vmul.f32 %v4095_v53, %v3287_v17 }
 0x2cd   : > { %v1534_v38 = vpop.permute.xlu2 %1533 }
 0x2ce   : > { %v1571_v12 = vmul.f32 %v1534_v38, %v1506_v4  ;;  %2951 = vtanh.f32 %v1488_v11  ;;  %v1587_v4 = vmul.f32 %v3987_v42, %v3531_v2  ;;  %v883_v11 = vmul.f32 %v4146_v55, %v3287_v17 }
 0x2cf   : > { %2953 = vpow2.f32 %v2638_v24 }
 0x2d0   : > { %v4107_v34 = vadd.f32 %v1584_v51, %v1571_v12 }
 0x2d2   : > { %1780 = vrot.lane.b32.xlu0 %v4107_v34, %s3182_s5 }
 0x2d4   : > { %v2952_v46 = vpop.eup %2951 }
 0x2d5   : > { %v1536_v41 = vpop.permute.xlu2 %1535  ;;  %v2954_v25 = vpop.eup %2953 }
 0x2d6   : > { %v1572_v63 = vmul.f32 %v1536_v41, %v1507_v48  ;;  %v1255_v50 = vadd.f32 1.0, %v2954_v25 }
 0x2d8   : > { %v4122_v29 = vadd.f32 %v1585_v40, %v1572_v63  ;;  %2955 = vrcp.f32 %v1255_v50  ;;  %v1131_v37 = vpop.f32.mrf.mxu3  ;;  %v1419_v48 = vand.u32 2147483648, %v1255_v50  ;;  %v880_v40 = vmul.f32 %v4090_v57, %v3303_v32 }
 0x2d9   : > { %2957 = vtanh.f32 %v4081_v60  ;;  %v958_v60 = vmul.f32 %v927_v58, %v3305_v33  ;;  %vm1413_vm0 = vweird.f32 %v1255_v50  ;;  %v1417_v63 = vand.u32 2147483647, %v1255_v50 }
 0x2da   : > { %1547 = vrot.lane.b32.xlu0 %v2950_v16, %s3182_s5  ;;  %1782 = vrot.lane.b32.xlu2 %v4122_v29, %s3182_s5  ;;  %v1420_v61 = vor.u32 1.1754944e-38, %v1419_v48  ;;  %v1510_v58 = vsub.f32 1.0, %v4060_v31  ;;  %v1588_v57 = vmul.f32 %v4060_v31, %v3529_v52  ;;  %v1508_v52 = vsub.f32 1.0, %v4058_v5 }
 0x2db   : > { %v984_v24 = vadd.f32 %v958_v60, %v880_v40  ;;  %vm1418_vm2 = vcmp.eq.f32.partialorder %v1417_v63, 8.507059e+37 }
 0x2de   : > { %v2956_v38 = vpop.eup %2955 }
 0x2df   : > { %v1409_v51 = vmul.f32 %v2956_v38, %v1255_v50  ;;  %v2958_v26 = vpop.eup %2957  ;;  %vm1414_vm15 = vweird.f32 %v2956_v38  ;;  %v1463_v50 = vadd.f32 %v3901_v28, %v1184_v21 }
 0x2e0   : > { %vm1415_vm1 = vmor %vm1413_vm0, %vm1414_vm15 }
 0x2e1   : > { %v1410_v42 = vsub.f32 1.0, %v1409_v51  ;;  %v1010_v51 = vadd.f32 %v984_v24, %v3321_v49 }
 0x2e2   : > { %1549 = vrot.lane.b32.xlu2 %v2952_v46, %s3182_s5 }
 0x2e3   : > { %v1411_v1 = vmul.f32 %v2956_v38, %v1410_v42 }
 0x2e4   : > { %v1540_v3 = vpop.permute.xlu2 %1539 }
 0x2e5   : > { %v1574_v43 = vmul.f32 %v1540_v3, %v1509_v9  ;;  %v1412_v59 = vadd.f32 %v2956_v38, %v1411_v1 }
 0x2e7   : > { %v4132_v27 = vadd.f32 %v1587_v4, %v1574_v43  ;;  %v1416_v16 = vsel %vm1415_vm1, %v2956_v38, %v1412_v59 }
 0x2e8   : > { %v4166_v4 = vsel %vm1418_vm2, %v1420_v61, %v1416_v16  ;;  %v1187_v16 = vpop.f32.mrf.mxu1 }
 0x2e9   : > { %1786 = vrot.lane.b32.xlu0 %v4132_v27, %s3182_s5 }
 0x2f1   : > { %v1544_v63 = vpop.permute.xlu2 %1543 }
 0x2fe   : > { %v1532_v12 = vpop.permute.xlu1 %1531 }
 0x2ff   : > { %v1570_v54 = vmul.f32 %v1532_v12, %v1505_v56  ;;  %v1134_v12 = vpop.f32.mrf.mxu3 }
 0x301   : > { %v4139_v2 = vadd.f32 %v1583_v62, %v1570_v54  ;;  %v1476_v62 = vmul.f32 %v1463_v50, %v4166_v4 }
 0x303   : > { %1778 = vrot.lane.b32.xlu1 %v4139_v2, %s3182_s5 }
 0x306   : > { %v4144_v47 = vpop.permute.xlu1 %930 }
 0x307   : > { %v959_v8 = vmul.f32 %v4144_v47, %v3289_v18 }
 0x309   : > { %v985_v19 = vadd.f32 %v959_v8, %v881_v7  ;;  %v1586_v7 = vmul.f32 %v4058_v5, %v3739_v36  ;;  %v1511_v36 = vsub.f32 1.0, %v4033_v0  ;;  %v960_v5 = vmul.f32 %v4144_v47, %v3305_v33 }
 0x30a   : > { %v1464_v47 = vadd.f32 %v3901_v28, %v1187_v16 }
 0x30b   : > { %v1011_v41 = vadd.f32 %v985_v19, %v3293_v23  ;;  %1545 = vrot.lane.b32.xlu1 %v2958_v26, %s3182_s5  ;;  %v1489_v26 = vadd.f32 %v1476_v62, %v1010_v51  ;;  %v1576_v61 = vmul.f32 %v1544_v63, %v1511_v36  ;;  %v884_v51 = vmul.f32 %v4146_v55, %v3303_v32 }
 0x30d   : > { %v1204_v13 = vadd.f32 %v1131_v37, %v1011_v41 }
 0x30e   : > { %v4159_v22 = vpop.permute.xlu1 %934 }
 0x30f   : > { %v2639_v46 = vmul.f32 -1.442695, %v1204_v13  ;;  %v961_v9 = vmul.f32 %v4159_v22, %v3289_v18 }
 0x310   : > { %v1542_v3 = vpop.permute.xlu0 %1541 }
 0x311   : > { %2959 = vpow2.f32 %v2639_v46  ;;  %v987_v43 = vadd.f32 %v961_v9, %v883_v11  ;;  %v1575_v25 = vmul.f32 %v1542_v3, %v1510_v58  ;;  %v882_v11 = vmul.f32 %v4095_v53, %v3303_v32 }
 0x312   : > { %v1589_v58 = vmul.f32 %v4033_v0, %v3670_v6 }
 0x313   : > { %v1013_v38 = vadd.f32 %v987_v43, %v3293_v23  ;;  %v4170_v56 = vadd.f32 %v1588_v57, %v1575_v25  ;;  %v986_v24 = vadd.f32 %v960_v5, %v882_v11 }
 0x314   : > { %v4192_v25 = vadd.f32 %v1589_v58, %v1576_v61 }
 0x315   : > { %v1205_v54 = vadd.f32 %v1134_v12, %v1013_v38  ;;  %1788 = vrot.lane.b32.xlu2 %v4170_v56, %s3182_s5  ;;  %v1012_v6 = vadd.f32 %v986_v24, %v3321_v49  ;;  %v962_v12 = vmul.f32 %v4159_v22, %v3305_v33 }
 0x316   : > { %v1538_v31 = vpop.permute.xlu1 %1537 }
 0x317   : > { %v2960_v42 = vpop.eup %2959  ;;  %v2640_v1 = vmul.f32 -1.442695, %v1205_v54  ;;  %v1573_v8 = vmul.f32 %v1538_v31, %v1508_v52 }
 0x318   : > { %v1256_v19 = vadd.f32 1.0, %v2960_v42 }
 0x319   : > { %2961 = vpow2.f32 %v2640_v1  ;;  %v4179_v59 = vadd.f32 %v1586_v7, %v1573_v8  ;;  %v1190_v1 = vpop.f32.mrf.mxu1  ;;  %v988_v7 = vadd.f32 %v962_v12, %v884_v51 }
 0x31a   : > { %2963 = vrcp.f32 %v1256_v19  ;;  %v1434_v21 = vand.u32 2147483648, %v1256_v19  ;;  %v1432_v9 = vand.u32 2147483647, %v1256_v19  ;;  %vm1428_vm5 = vweird.f32 %v1256_v19 }
 0x31b   : > { %1784 = vrot.lane.b32.xlu1 %v4179_v59, %s3182_s5  ;;  %2965 = vtanh.f32 %v1489_v26 }
 0x31c   : > { %v1435_v43 = vor.u32 1.1754944e-38, %v1434_v21  ;;  %vm1433_vm7 = vcmp.eq.f32.partialorder %v1432_v9, 8.507059e+37  ;;  %v1513_v21 = vsub.f32 1.0, %v4097_v15 }
 0x31f   : > { %v2962_v37 = vpop.eup %2961 }
 0x320   : > { %v2964_v48 = vpop.eup %2963  ;;  %v1257_v41 = vadd.f32 1.0, %v2962_v37  ;;  %v1014_v37 = vadd.f32 %v988_v7, %v3321_v49 }
 0x321   : > { %v1424_v60 = vmul.f32 %v2964_v48, %v1256_v19  ;;  %v2966_v40 = vpop.eup %2965  ;;  %vm1429_vm3 = vweird.f32 %v2964_v48  ;;  %v1465_v19 = vadd.f32 %v3901_v28, %v1190_v1  ;;  %v1592_v28 = vmul.f32 %v4109_v10, %v3770_v20 }
 0x322   : > { %2967 = vrcp.f32 %v1257_v41  ;;  %vm1430_vm6 = vmor %vm1428_vm5, %vm1429_vm3  ;;  %v1449_v54 = vand.u32 2147483648, %v1257_v41  ;;  %v1447_v42 = vand.u32 2147483647, %v1257_v41  ;;  %vm1443_vm9 = vweird.f32 %v1257_v41 }
 0x323   : > { %v1425_v13 = vsub.f32 1.0, %v1424_v60  ;;  %1551 = vrot.lane.b32.xlu1 %v2966_v40, %s3182_s5  ;;  %v1512_v20 = vsub.f32 1.0, %v4074_v30 }
 0x324   : > { %v1450_v8 = vor.u32 1.1754944e-38, %v1449_v54  ;;  %vm1448_vm11 = vcmp.eq.f32.partialorder %v1447_v42, 8.507059e+37 }
 0x325   : > { %v1426_v46 = vmul.f32 %v2964_v48, %v1425_v13 }
 0x327   : > { %v1427_v57 = vadd.f32 %v2964_v48, %v1426_v46  ;;  %v1591_v46 = vmul.f32 %v4097_v15, %v3765_v14  ;;  %v3185_v15 = vmov 2  }
 0x328   : > { %v2968_v3 = vpop.eup %2967  ;;  %2814 = vset.pattern.permute.xlu0 %v3185_v15  ;;  %2816 = vset.pattern.permute.xlu2 %v3185_v15 }
 0x329   : > { %v1431_v53 = vsel %vm1430_vm6, %v2964_v48, %v1427_v57  ;;  %v1439_v50 = vmul.f32 %v2968_v3, %v1257_v41  ;;  %vm1444_vm8 = vweird.f32 %v2968_v3  ;;  %v1514_v41 = vsub.f32 1.0, %v4109_v10  ;;  %2815 = vset.pattern.permute.xlu1 %v3185_v15 }
 0x32a   : > { %v4194_v38 = vsel %vm1433_vm7, %v1435_v43, %v1431_v53  ;;  %vm1445_vm10 = vmor %vm1443_vm9, %vm1444_vm8  ;;  %v1590_v57 = vmul.f32 %v4074_v30, %v3724_v39  ;;  %v1515_v30 = vsub.f32 1.0, %v4166_v4 }
 0x32b   : > { %v1477_v0 = vmul.f32 %v1464_v47, %v4194_v38  ;;  %v1440_v62 = vsub.f32 1.0, %v1439_v50  ;;  %1790 = vrot.lane.b32.xlu1 %v4192_v25, %s3182_s5  ;;  %v1593_v50 = vmul.f32 %v4166_v4, %v3786_v45  ;;  %v3065_v45 = vld [vmem:[%s3267_s4] sm:$0xff]  ;;  %v1594_v1 = vmul.f32 %v4194_v38, %v3796_v44  ;;  %v3072_v44 = vld [vmem:[%s3267_s4 + $0x18] sm:$0xff] }
 0x32d   : > { %v1490_v52 = vadd.f32 %v1477_v0, %v1012_v6  ;;  %v1441_v31 = vmul.f32 %v2968_v3, %v1440_v62 }
 0x32f   : > { %2969 = vtanh.f32 %v1490_v52  ;;  %v1442_v55 = vadd.f32 %v2968_v3, %v1441_v31  ;;  %v1516_v31 = vsub.f32 1.0, %v4194_v38  ;;  %v3073_v38 = vld [vmem:[%s3267_s4 + $0x50] sm:$0xff] }
 0x331   : > { %v1446_v26 = vsel %vm1445_vm10, %v2968_v3, %v1442_v55  ;;  %v3067_v55 = vld [vmem:[%s3267_s4 + $0x28] sm:$0xff] }
 0x332   : > { %v1451_v22 = vsel %vm1448_vm11, %v1450_v8, %v1446_v26  ;;  %v3069_v26 = vld [vmem:[%s3267_s4 + $0x40] sm:$0xff] }
 0x333   : > { %v1478_v48 = vmul.f32 %v1465_v19, %v1451_v22  ;;  %v1517_v6 = vsub.f32 1.0, %v1451_v22  ;;  %v1595_v62 = vmul.f32 %v1451_v22, %v3776_v35  ;;  %v3066_v35 = vld [vmem:[%s3267_s4 + $0x10] sm:$0xff]  ;;  %v3068_v19 = vld [vmem:[%s3267_s4 + $0x20] sm:$0xff]  ;;  %v3070_v22 = vld [vmem:[%s3267_s4 + $0x8] sm:$0xff] }
 0x334   : > { %v1783_v63 = vpop.permute.xlu2 %1782 }
 0x335   : > { %v2970_v60 = vpop.eup %2969  ;;  %v1491_v40 = vadd.f32 %v1478_v48, %v1014_v37  ;;  %v3071_v37 = vld [vmem:[%s3267_s4 + $0x38] sm:$0xff]  ;;  %v3074_v48 = vld [vmem:[%s3267_s4 + $0x30] sm:$0xff] }
 0x336   : > { %1553 = vrot.lane.b32.xlu0 %v2970_v60, %s3182_s5  ;;  %v3075_v60 = vld [vmem:[%s3267_s4 + $0x48] sm:$0xff] }
 0x337   : > { %2971 = vtanh.f32 %v1491_v40  ;;  %v3076_v40 = vld [vmem:[%s3267_s4 + $0x58] sm:$0xff] }
 0x33c   : > { %v1550_v5 = vpop.permute.xlu2 %1549 }
 0x33d   : > { %v2972_v36 = vpop.eup %2971  ;;  %v1579_v13 = vmul.f32 %v1550_v5, %v1514_v41 }
 0x33e   : > { %1555 = vrot.lane.b32.xlu2 %v2972_v36, %s3182_s5 }
 0x33f   : > { %v4211_v11 = vadd.f32 %v1592_v28, %v1579_v13 }
 0x344   : > { %v1781_v16 = vpop.permute.xlu0 %1780 }
 0x346   : > { %1796 = vrot.lane.b32.xlu2 %v4211_v11, %s3182_s5 }
 0x34c   : > { %v1548_v61 = vpop.permute.xlu0 %1547 }
 0x34d   : > { %v1578_v9 = vmul.f32 %v1548_v61, %v1513_v21 }
 0x34f   : > { %v4218_v58 = vadd.f32 %v1591_v46, %v1578_v9 }
 0x351   : > { %1794 = vrot.lane.b32.xlu1 %v4218_v58, %s3182_s5 }
 0x35b   : > { %v1787_v43 = vpop.permute.xlu0 %1786 }
 0x36f   : > { %v1789_v39 = vpop.permute.xlu2 %1788 }
 0x375   : > { %v1779_v24 = vpop.permute.xlu1 %1778 }
 0x376   : > { %2641 = vmatmul.msk.f32.vlgmr.msrb.gmra.mxu2 %vm1054_vm4, %v1779_v24  ;;  %2654 = vmatmul.msk.f32.vlgmr.msrb.gmra.mxu3 %vm1054_vm4, %v1779_v24 }
 0x37d   : > { %v1546_v10 = vpop.permute.xlu1 %1545 }
 0x37e   : > { %v1577_v3 = vmul.f32 %v1546_v10, %v1512_v20  ;;  %2642 = vmatmul.msk.f32.gmra.mxu2 %vm1054_vm4, %v1781_v16  ;;  %2655 = vmatmul.msk.f32.gmra.mxu3 %vm1054_vm4, %v1781_v16 }
 0x380   : > { %v4229_v14 = vadd.f32 %v1590_v57, %v1577_v3 }
 0x382   : > { %1792 = vrot.lane.b32.xlu0 %v4229_v14, %s3182_s5 }
 0x386   : > { %2643 = vmatmul.msk.f32.gmra.mxu2 %vm1054_vm4, %v1783_v63  ;;  %2656 = vmatmul.msk.f32.gmra.mxu3 %vm1054_vm4, %v1783_v63 }
 0x38d   : > { %v1785_v47 = vpop.permute.xlu1 %1784 }
 0x38e   : > { %2644 = vmatmul.msk.f32.gmra.mxu2 %vm1054_vm4, %v1785_v47  ;;  %2657 = vmatmul.msk.f32.gmra.mxu3 %vm1054_vm4, %v1785_v47 }
 0x395   : > { %v1552_v53 = vpop.permute.xlu1 %1551 }
 0x396   : > { %v1580_v51 = vmul.f32 %v1552_v53, %v1515_v30  ;;  %2645 = vmatmul.msk.f32.gmra.mxu2 %vm1054_vm4, %v1787_v43  ;;  %2658 = vmatmul.msk.f32.gmra.mxu3 %vm1054_vm4, %v1787_v43 }
 0x398   : > { %v4242_v0 = vadd.f32 %v1593_v50, %v1580_v51  ;;  %v1556_v12 = vpop.permute.xlu2 %1555 }
 0x399   : > { %v1582_v54 = vmul.f32 %v1556_v12, %v1517_v6 }
 0x39a   : > { %1798 = vrot.lane.b32.xlu0 %v4242_v0, %s3182_s5 }
 0x39b   : > { %v4247_v52 = vadd.f32 %v1595_v62, %v1582_v54 }
 0x39d   : > { %1802 = vrot.lane.b32.xlu2 %v4247_v52, %s3182_s5  ;;  %v1791_v4 = vpop.permute.xlu1 %1790 }
 0x39e   : > { %2646 = vmatmul.msk.f32.gmra.mxu2 %vm1054_vm4, %v1789_v39  ;;  %2659 = vmatmul.msk.f32.gmra.mxu3 %vm1054_vm4, %v1789_v39 }
 0x3a0   : > { %v1797_v63 = vpop.permute.xlu2 %1796 }
 0x3a2   : > { %1610 = vperm.xlu0 %2814, %v3065_v45  }
 0x3a5   : > { %1618 = vperm.xlu2 %2816, %v3066_v35  }
 0x3a6   : > { %2647 = vmatmul.msk.f32.gmra.mxu2 %vm1054_vm4, %v1791_v4  ;;  %2660 = vmatmul.msk.f32.gmra.mxu3 %vm1054_vm4, %v1791_v4 }
 0x3a8   : > { %v1554_v42 = vpop.permute.xlu0 %1553 }
 0x3a9   : > { %v1581_v7 = vmul.f32 %v1554_v42, %v1516_v31 }
 0x3aa   : > { %1630 = vperm.xlu0 %2814, %v3067_v55  }
 0x3ab   : > { %v4261_v8 = vadd.f32 %v1594_v1, %v1581_v7 }
 0x3ad   : > { %1800 = vrot.lane.b32.xlu1 %v4261_v8, %s3182_s5  ;;  %1626 = vperm.xlu2 %2816, %v3068_v19  }
 0x3b2   : > { %1642 = vperm.xlu0 %2814, %v3069_v26  }
 0x3b5   : > { %1614 = vperm.xlu1 %2815, %v3070_v22   ;;  %1638 = vperm.xlu2 %2816, %v3071_v37  }
 0x3bd   : > { %1622 = vperm.xlu1 %2815, %v3072_v44   ;;  %1650 = vperm.xlu2 %2816, %v3073_v38  }
 0x3c3   : > { %v1795_v13 = vpop.permute.xlu1 %1794 }
 0x3c5   : > { %1634 = vperm.xlu1 %2815, %v3074_v48  }
 0x3cd   : > { %1646 = vperm.xlu1 %2815, %v3075_v60  }
 0x3d5   : > { %1654 = vperm.xlu1 %2815, %v3076_v40  }
 0x3f4   : > { %v1793_v36 = vpop.permute.xlu0 %1792 }
 0x3f5   : > { %2648 = vmatmul.msk.f32.gmra.mxu2 %vm1054_vm4, %v1793_v36  ;;  %2661 = vmatmul.msk.f32.gmra.mxu3 %vm1054_vm4, %v1793_v36 }
 0x3f7   : > { %v4276_v5 = vpop.permute.xlu2 %1802 }
 0x3f9   : > { %v1847_v41 = vpop.f32.mrf.mxu2  ;;  %v4287_v20 = vpop.f32.mrf.mxu3 }
 0x3fd   : > { %2649 = vmatmul.msk.f32.gmra.mxu2 %vm1054_vm4, %v1795_v13  ;;  %2662 = vmatmul.msk.f32.gmra.mxu3 %vm1054_vm4, %v1795_v13 }
 0x3ff   : > { %v1619_v28 = vpop.permute.xlu2 %1618 }
 0x400   : > { %v1665_v16 = vmul.f32 %v1619_v28, %v3287_v17  ;;  %v1691_v21 = vmul.f32 %v1619_v28, %v3289_v18  ;;  %v1666_v19 = vmul.f32 %v1619_v28, %v3303_v32  ;;  %v1692_v37 = vmul.f32 %v1619_v28, %v3305_v33 }
 0x401   : > { %v4282_v61 = vpop.f32.mrf.mxu2  ;;  %v4299_v50 = vpop.f32.mrf.mxu3 }
 0x402   : > { %v1717_v46 = vadd.f32 %v1691_v21, %v1665_v16  ;;  %v1718_v16 = vadd.f32 %v1692_v37, %v1666_v19 }
 0x404   : > { %v1743_v9 = vadd.f32 %v1717_v46, %v3293_v23 }
 0x405   : > { %2650 = vmatmul.msk.f32.gmra.mxu2 %vm1054_vm4, %v1797_v63  ;;  %2663 = vmatmul.msk.f32.gmra.mxu3 %vm1054_vm4, %v1797_v63 }
 0x407   : > { %v4289_v57 = vpop.permute.xlu2 %1626 }
 0x408   : > { %v1669_v47 = vmul.f32 %v4289_v57, %v3287_v17  ;;  %v1695_v39 = vmul.f32 %v4289_v57, %v3289_v18 }
 0x409   : > { %v1853_v24 = vpop.f32.mrf.mxu2  ;;  %v1909_v38 = vpop.f32.mrf.mxu3 }
 0x40a   : > { %v1944_v10 = vadd.f32 %v1853_v24, %v1743_v9  ;;  %v1721_v43 = vadd.f32 %v1695_v39, %v1669_v47  ;;  %v1744_v39 = vadd.f32 %v1718_v16, %v3321_v49 }
 0x40c   : > { %v2669_v3 = vmul.f32 -1.442695, %v1944_v10  ;;  %v1799_v15 = vpop.permute.xlu0 %1798  ;;  %v1747_v54 = vadd.f32 %v1721_v43, %v3293_v23 }
 0x40d   : > { %2651 = vmatmul.msk.f32.gmra.mxu2 %vm1054_vm4, %v1799_v15  ;;  %2664 = vmatmul.msk.f32.gmra.mxu3 %vm1054_vm4, %v1799_v15 }
 0x40e   : > { %2973 = vpow2.f32 %v2669_v3 }
 0x411   : > { %v4297_v30 = vpop.f32.mrf.mxu2 }
 0x414   : > { %v2974_v53 = vpop.eup %2973  ;;  %v4301_v51 = vpop.permute.xlu0 %1610 }
 0x415   : > { %v1996_v6 = vadd.f32 1.0, %v2974_v53  ;;  %v1661_v12 = vmul.f32 %v4301_v51, %v3287_v17  ;;  %v1687_v62 = vmul.f32 %v4301_v51, %v3289_v18  ;;  %v4323_v53 = vld [vmem:[#allocation2 + $0x83] ss:$0 sm:$0xff]  ;;  %v1662_v19 = vmul.f32 %v4301_v51, %v3303_v32 }
 0x417   : > { %2975 = vrcp.f32 %v1996_v6  ;;  %v1713_v45 = vadd.f32 %v1687_v62, %v1661_v12  ;;  %v2048_v36 = vand.u32 2147483648, %v1996_v6  ;;  %v2046_v28 = vand.u32 2147483647, %v1996_v6 }
 0x418   : > { %vm2042_vm13 = vweird.f32 %v1996_v6  ;;  %v2204_v12 = vadd.f32 %v4323_v53, %v1909_v38 }
 0x419   : > { %v1859_v4 = vpop.f32.mrf.mxu2  ;;  %v1739_v35 = vadd.f32 %v1713_v45, %v3293_v23  ;;  %v2049_v10 = vor.u32 1.1754944e-38, %v2048_v36  ;;  %vm2047_vm15 = vcmp.eq.f32.partialorder %v2046_v28, 8.507059e+37 }
 0x41a   : > { %v1946_v31 = vadd.f32 %v1859_v4, %v1747_v54  ;;  %v4332_v4 = vpop.f32.mrf.mxu3 }
 0x41b   : > { %v1942_v42 = vadd.f32 %v1847_v41, %v1739_v35 }
 0x41c   : > { %v2671_v1 = vmul.f32 -1.442695, %v1946_v31  ;;  %v4309_v7 = vpop.permute.xlu0 %1630 }
 0x41d   : > { %v2976_v55 = vpop.eup %2975  ;;  %v1671_v26 = vmul.f32 %v4309_v7, %v3287_v17  ;;  %v1697_v22 = vmul.f32 %v4309_v7, %v3289_v18  ;;  %v2667_v48 = vmul.f32 -1.442695, %v1942_v42 }
 0x41e   : > { %v2038_v44 = vmul.f32 %v2976_v55, %v1996_v6  ;;  %2977 = vpow2.f32 %v2671_v1  ;;  %vm2043_vm12 = vweird.f32 %v2976_v55 }
 0x41f   : > { %v1801_v60 = vpop.permute.xlu1 %1800  ;;  %v1723_v40 = vadd.f32 %v1697_v22, %v1671_v26  ;;  %2979 = vpow2.f32 %v2667_v48  ;;  %vm2044_vm14 = vmor %vm2042_vm13, %vm2043_vm12  ;;  %v1688_v26 = vmul.f32 %v4301_v51, %v3305_v33 }
 0x420   : > { %v2039_v63 = vsub.f32 1.0, %v2038_v44  ;;  %2652 = vmatmul.msk.f32.gmra.mxu2 %vm1054_vm4, %v1801_v60  ;;  %2665 = vmatmul.msk.f32.gmra.mxu3 %vm1054_vm4, %v1801_v60 }
 0x421   : > { %v1749_v41 = vadd.f32 %v1723_v40, %v3293_v23  ;;  %v1862_v13 = vpop.f32.mrf.mxu2 }
 0x422   : > { %v2040_v21 = vmul.f32 %v2976_v55, %v2039_v63  ;;  %v1714_v63 = vadd.f32 %v1688_v26, %v1662_v19 }
 0x423   : > { %v1947_v46 = vadd.f32 %v1862_v13, %v1749_v41  ;;  %v4356_v41 = vpop.f32.mrf.mxu3 }
 0x424   : > { %v2978_v9 = vpop.eup %2977  ;;  %v2041_v24 = vadd.f32 %v2976_v55, %v2040_v21 }
 0x425   : > { %v4320_v3 = vadd.f32 1.0, %v2978_v9  ;;  %v2672_v15 = vmul.f32 -1.442695, %v1947_v46  ;;  %v2980_v47 = vpop.eup %2979 }
 0x426   : > { %v2045_v43 = vsel %vm2044_vm14, %v2976_v55, %v2041_v24  ;;  %v1994_v54 = vadd.f32 1.0, %v2980_v47  ;;  %v2202_v47 = vadd.f32 %v4323_v53, %v4287_v20 }
 0x427   : > { %v4326_v62 = vsel %vm2047_vm15, %v2049_v10, %v2045_v43  ;;  %2981 = vrcp.f32 %v4320_v3  ;;  %v4329_v6 = vpop.permute.xlu1 %1614  ;;  %v1672_v10 = vmul.f32 %v4309_v7, %v3303_v32  ;;  %vm2072_vm5 = vweird.f32 %v4320_v3 }
 0x428   : > { %v2217_v45 = vmul.f32 %v2204_v12, %v4326_v62  ;;  %2983 = vpow2.f32 %v2672_v15  ;;  %2653 = vmatmul.msk.f32.gmra.mxu2 %vm1054_vm4, %v4276_v5  ;;  %2666 = vmatmul.msk.f32.gmra.mxu3 %vm1054_vm4, %v4276_v5  ;;  %v1663_v31 = vmul.f32 %v4329_v6, %v3287_v17  ;;  %v1689_v42 = vmul.f32 %v4329_v6, %v3289_v18 }
 0x429   : > { %2985 = vrcp.f32 %v1994_v54  ;;  %v2016_v13 = vand.u32 2147483647, %v1994_v54  ;;  %v2018_v16 = vand.u32 2147483648, %v1994_v54  ;;  %vm2012_vm1 = vweird.f32 %v1994_v54 }
 0x42a   : > { %v2230_v35 = vadd.f32 %v2217_v45, %v1744_v39  ;;  %v1715_v22 = vadd.f32 %v1689_v42, %v1663_v31  ;;  %v1670_v12 = vmul.f32 %v4289_v57, %v3303_v32  ;;  %v1740_v45 = vadd.f32 %v1714_v63, %v3321_v49 }
 0x42b   : > { %vm2017_vm3 = vcmp.eq.f32.partialorder %v2016_v13, 8.507059e+37  ;;  %v1918_v13 = vpop.f32.mrf.mxu3 }
 0x42c   : > { %2987 = vtanh.f32 %v2230_v35  ;;  %v1741_v60 = vadd.f32 %v1715_v22, %v3293_v23  ;;  %v2019_v35 = vor.u32 1.1754944e-38, %v2018_v16 }
 0x42d   : > { %v4342_v1 = vpop.eup %2981 }
 0x42e   : > { %v2984_v55 = vpop.eup %2983  ;;  %v2068_v48 = vmul.f32 %v4342_v1, %v4320_v3  ;;  %v1943_v51 = vadd.f32 %v4282_v61, %v1741_v60  ;;  %v1698_v61 = vmul.f32 %v4309_v7, %v3305_v33  ;;  %vm2073_vm6 = vweird.f32 %v4342_v1 }
 0x42f   : > { %v2986_v5 = vpop.eup %2985  ;;  %v4348_v37 = vadd.f32 1.0, %v2984_v55  ;;  %v4350_v44 = vpop.permute.xlu1 %1622  ;;  %vm4398_vm8 = vmor %vm2072_vm5, %vm2073_vm6 }
 0x430   : > { %v2008_v38 = vmul.f32 %v2986_v5, %v1994_v54  ;;  %v1667_v21 = vmul.f32 %v4350_v44, %v3287_v17  ;;  %v1693_v28 = vmul.f32 %v4350_v44, %v3289_v18  ;;  %vm2013_vm0 = vweird.f32 %v2986_v5 }
 0x431   : > { %2989 = vrcp.f32 %v4348_v37  ;;  %v2069_v9 = vsub.f32 1.0, %v2068_v48  ;;  %v2668_v24 = vmul.f32 -1.442695, %v1943_v51  ;;  %vm2014_vm2 = vmor %vm2012_vm1, %vm2013_vm0  ;;  %v1724_v19 = vadd.f32 %v1698_v61, %v1672_v10 }
 0x432   : > { %v2988_v40 = vpop.eup %2987  ;;  %v2009_v36 = vsub.f32 1.0, %v2008_v38  ;;  %v1719_v15 = vadd.f32 %v1693_v28, %v1667_v21  ;;  %v2091_v60 = vand.u32 2147483647, %v4348_v37  ;;  %v2078_v21 = vand.u32 2147483648, %v4320_v3 }
 0x433   : > { %2284 = vrot.lane.b32.xlu1 %v2988_v40, %s3182_s5  ;;  %2991 = vpow2.f32 %v2668_v24  ;;  %v2070_v55 = vmul.f32 %v4342_v1, %v2069_v9  ;;  %v2093_v40 = vand.u32 2147483648, %v4348_v37  ;;  %v2076_v24 = vand.u32 2147483647, %v4320_v3 }
 0x434   : > { %v2010_v46 = vmul.f32 %v2986_v5, %v2009_v36  ;;  %v1745_v31 = vadd.f32 %v1719_v15, %v3293_v23  ;;  %vm2087_vm9 = vweird.f32 %v4348_v37  ;;  %v1696_v61 = vmul.f32 %v4289_v57, %v3305_v33 }
 0x435   : > { %v2071_v51 = vadd.f32 %v4342_v1, %v2070_v55  ;;  %v2094_v15 = vor.u32 1.1754944e-38, %v2093_v40  ;;  %vm2092_vm11 = vcmp.eq.f32.partialorder %v2091_v60, 8.507059e+37  ;;  %vm2077_vm12 = vcmp.eq.f32.partialorder %v2076_v24, 8.507059e+37 }
 0x436   : > { %v2011_v39 = vadd.f32 %v2986_v5, %v2010_v46  ;;  %v1945_v26 = vadd.f32 %v4297_v30, %v1745_v31  ;;  %v1750_v57 = vadd.f32 %v1724_v19, %v3321_v49  ;;  %v1664_v40 = vmul.f32 %v4329_v6, %v3303_v32 }
 0x437   : > { %v2990_v43 = vpop.eup %2989  ;;  %v4374_v42 = vpop.permute.xlu1 %1634  ;;  %v1690_v19 = vmul.f32 %v4329_v6, %v3305_v33 }
 0x438   : > { %v2015_v7 = vsel %vm2014_vm2, %v2986_v5, %v2011_v39  ;;  %v2083_v20 = vmul.f32 %v2990_v43, %v4348_v37  ;;  %v1673_v22 = vmul.f32 %v4374_v42, %v3287_v17  ;;  %v1699_v5 = vmul.f32 %v4374_v42, %v3289_v18  ;;  %v1865_v37 = vpop.f32.mrf.mxu2 }
 0x439   : > { %v4378_v54 = vsel %vm2017_vm3, %v2019_v35, %v2015_v7  ;;  %v2670_v63 = vmul.f32 -1.442695, %v1945_v26  ;;  %v2992_v36 = vpop.eup %2991  ;;  %vm2088_vm7 = vweird.f32 %v2990_v43  ;;  %v2075_v39 = vsel %vm4398_vm8, %v4342_v1, %v2071_v51 }
 0x43a   : > { %v2215_v38 = vmul.f32 %v2202_v47, %v4378_v54  ;;  %v2084_v48 = vsub.f32 1.0, %v2083_v20  ;;  %v4392_v28 = vadd.f32 1.0, %v2992_v36  ;;  %v1725_v46 = vadd.f32 %v1699_v5, %v1673_v22  ;;  %vm2089_vm10 = vmor %vm2087_vm9, %vm2088_vm7 }
 0x43b   : > { %2993 = vpow2.f32 %v2670_v63  ;;  %v2207_v47 = vadd.f32 %v4323_v53, %v1918_v13  ;;  %v2079_v35 = vor.u32 1.1754944e-38, %v2078_v21  ;;  %v1722_v26 = vadd.f32 %v1696_v61, %v1670_v12 }
 0x43c   : > { %v2228_v30 = vadd.f32 %v2215_v38, %v1740_v45  ;;  %v2085_v16 = vmul.f32 %v2990_v43, %v2084_v48  ;;  %v1751_v3 = vadd.f32 %v1725_v46, %v3293_v23  ;;  %v2206_v1 = vadd.f32 %v4323_v53, %v4356_v41 }
 0x43d   : > { %v4416_v22 = vsel %vm2077_vm12, %v2079_v35, %v2075_v39  ;;  %v1748_v41 = vadd.f32 %v1722_v26, %v3321_v49  ;;  %v2033_v51 = vand.u32 2147483648, %v4392_v28  ;;  %v2031_v6 = vand.u32 2147483647, %v4392_v28  ;;  %v3078_v39 = vld [vmem:[%s3267_s4 + $0x60] sm:$0xff] }
 0x43e   : > { %2995 = vtanh.f32 %v2228_v30  ;;  %v2086_v10 = vadd.f32 %v2990_v43, %v2085_v16  ;;  %v1948_v55 = vadd.f32 %v1865_v37, %v1751_v3  ;;  %v2219_v12 = vmul.f32 %v2206_v1, %v4416_v22 }
 0x43f   : > { %2997 = vrcp.f32 %v4392_v28  ;;  %v1716_v30 = vadd.f32 %v1690_v19, %v1664_v40  ;;  %v2203_v46 = vadd.f32 %v4323_v53, %v4299_v50  ;;  %vm2027_vm14 = vweird.f32 %v4392_v28 }
 0x440   : > { %v2090_v45 = vsel %vm2089_vm10, %v2990_v43, %v2086_v10  ;;  %v2673_v5 = vmul.f32 -1.442695, %v1948_v55  ;;  %v2232_v13 = vadd.f32 %v2219_v12, %v1748_v41  ;;  %v2034_v61 = vor.u32 1.1754944e-38, %v2033_v51 }
 0x441   : > { %v4412_v31 = vsel %vm2092_vm11, %v2094_v15, %v2090_v45  ;;  %v2994_v20 = vpop.eup %2993  ;;  %v1742_v10 = vadd.f32 %v1716_v30, %v3321_v49  ;;  %v1668_v15 = vmul.f32 %v4350_v44, %v3303_v32  ;;  %vm2032_vm0 = vcmp.eq.f32.partialorder %v2031_v6, 8.507059e+37 }
 0x442   : > { %v2220_v7 = vmul.f32 %v2207_v47, %v4412_v31  ;;  %v1997_v48 = vadd.f32 1.0, %v2994_v20  ;;  %v1694_v47 = vmul.f32 %v4350_v44, %v3305_v33  ;;  %v1700_v51 = vmul.f32 %v4374_v42, %v3305_v33 }
 0x444   : > { %v2996_v38 = vpop.eup %2995  ;;  %v2233_v43 = vadd.f32 %v2220_v7, %v1750_v57  ;;  %v1720_v7 = vadd.f32 %v1694_v47, %v1668_v15  ;;  %v2063_v55 = vand.u32 2147483648, %v1997_v48  ;;  %v2061_v26 = vand.u32 2147483647, %v1997_v48 }
 0x445   : > { %v2998_v60 = vpop.eup %2997  ;;  %2280 = vrot.lane.b32.xlu0 %v2996_v38, %s3182_s5  ;;  %vm2057_vm2 = vweird.f32 %v1997_v48 }
 0x446   : > { %2999 = vtanh.f32 %v2233_v43  ;;  %v2023_v63 = vmul.f32 %v2998_v60, %v4392_v28  ;;  %vm2028_vm13 = vweird.f32 %v2998_v60  ;;  %v2064_v43 = vor.u32 1.1754944e-38, %v2063_v55 }
 0x447   : > { %3001 = vrcp.f32 %v1997_v48  ;;  %vm2029_vm15 = vmor %vm2027_vm14, %vm2028_vm13  ;;  %vm2062_vm5 = vcmp.eq.f32.partialorder %v2061_v26, 8.507059e+37 }
 0x448   : > { %v2024_v36 = vsub.f32 1.0, %v2023_v63  ;;  %3003 = vpow2.f32 %v2673_v5  ;;  %v2205_v5 = vadd.f32 %v4323_v53, %v4332_v4 }
 0x449   : > { %3005 = vtanh.f32 %v2232_v13 }
 0x44a   : > { %v2025_v16 = vmul.f32 %v2998_v60, %v2024_v36 }
 0x44c   : > { %v3000_v21 = vpop.eup %2999  ;;  %v2026_v9 = vadd.f32 %v2998_v60, %v2025_v16 }
 0x44d   : > { %v3002_v24 = vpop.eup %3001  ;;  %1658 = vperm.xlu0 %2814, %v3078_v39   ;;  %2290 = vrot.lane.b32.xlu1 %v3000_v21, %s3182_s5  ;;  %v1921_v21 = vpop.f32.mrf.mxu3 }
 0x44e   : > { %v3004_v45 = vpop.eup %3003  ;;  %v2030_v50 = vsel %vm2029_vm15, %v2998_v60, %v2026_v9  ;;  %v2053_v28 = vmul.f32 %v3002_v24, %v1997_v48  ;;  %vm2058_vm1 = vweird.f32 %v3002_v24  ;;  %v1746_v60 = vadd.f32 %v1720_v7, %v3321_v49 }
 0x44f   : > { %v4440_v3 = vsel %vm2032_vm0, %v2034_v61, %v2030_v50  ;;  %v2000_v35 = vadd.f32 1.0, %v3004_v45  ;;  %v3006_v38 = vpop.eup %3005  ;;  %vm2059_vm3 = vmor %vm2057_vm2, %vm2058_vm1  ;;  %v1674_v48 = vmul.f32 %v4374_v42, %v3303_v32 }
 0x450   : > { %v2216_v37 = vmul.f32 %v2203_v46, %v4440_v3  ;;  %v2054_v57 = vsub.f32 1.0, %v2053_v28  ;;  %v4462_v28 = vpop.permute.xlu0 %1642 }
 0x451   : > { %3007 = vrcp.f32 %v2000_v35  ;;  %v2108_v4 = vand.u32 2147483648, %v2000_v35  ;;  %v2106_v6 = vand.u32 2147483647, %v2000_v35  ;;  %v1726_v46 = vadd.f32 %v1700_v51, %v1674_v48 }
 0x452   : > { %v2229_v20 = vadd.f32 %v2216_v37, %v1742_v10  ;;  %v2055_v44 = vmul.f32 %v3002_v24, %v2054_v57  ;;  %vm2102_vm7 = vweird.f32 %v2000_v35  ;;  %v2208_v10 = vadd.f32 %v4323_v53, %v1921_v21 }
 0x453   : > { %vm2107_vm9 = vcmp.eq.f32.partialorder %v2106_v6, 8.507059e+37  ;;  %v1752_v47 = vadd.f32 %v1726_v46, %v3321_v49  ;;  %v1677_v7 = vmul.f32 %v4462_v28, %v3287_v17  ;;  %v1703_v55 = vmul.f32 %v4462_v28, %v3289_v18 }
 0x454   : > { %3009 = vtanh.f32 %v2229_v20  ;;  %v2056_v1 = vadd.f32 %v3002_v24, %v2055_v44 }
 0x455   : > { %2288 = vrot.lane.b32.xlu0 %v3006_v38, %s3182_s5  ;;  %v1729_v26 = vadd.f32 %v1703_v55, %v1677_v7  ;;  %v1647_v38 = vpop.permute.xlu1 %1646 }
 0x456   : > { %v2060_v40 = vsel %vm2059_vm3, %v3002_v24, %v2056_v1  ;;  %v2109_v24 = vor.u32 1.1754944e-38, %v2108_v4 }
 0x457   : > { %v3008_v19 = vpop.eup %3007  ;;  %v4447_v12 = vsel %vm2062_vm5, %v2064_v43, %v2060_v40  ;;  %v1679_v43 = vmul.f32 %v1647_v38, %v3287_v17 }
 0x458   : > { %v2218_v63 = vmul.f32 %v2205_v5, %v4447_v12  ;;  %v2098_v41 = vmul.f32 %v3008_v19, %v2000_v35  ;;  %vm2103_vm6 = vweird.f32 %v3008_v19  ;;  %v4464_v35 = vpop.permute.xlu2 %1638  ;;  %v1705_v5 = vmul.f32 %v1647_v38, %v3289_v18 }
 0x459   : > { %vm2104_vm8 = vmor %vm2102_vm7, %vm2103_vm6  ;;  %v1675_v37 = vmul.f32 %v4464_v35, %v3287_v17  ;;  %v1701_v57 = vmul.f32 %v4464_v35, %v3289_v18 }
 0x45a   : > { %v3010_v36 = vpop.eup %3009  ;;  %v2231_v30 = vadd.f32 %v2218_v63, %v1746_v60  ;;  %v2099_v13 = vsub.f32 1.0, %v2098_v41  ;;  %v1755_v60 = vadd.f32 %v1729_v26, %v3293_v23 }
 0x45b   : > { %2282 = vrot.lane.b32.xlu2 %v3010_v36, %s3182_s5  ;;  %v1727_v44 = vadd.f32 %v1701_v57, %v1675_v37  ;;  %v1731_v36 = vadd.f32 %v1705_v5, %v1679_v43 }
 0x45c   : > { %3011 = vtanh.f32 %v2231_v30  ;;  %v2100_v16 = vmul.f32 %v3008_v19, %v2099_v13 }
 0x45d   : > { %v1753_v1 = vadd.f32 %v1727_v44, %v3293_v23  ;;  %v1757_v4 = vadd.f32 %v1731_v36, %v3293_v23  ;;  %v4494_v7 = vpop.permute.xlu1 %1654 }
 0x45e   : > { %v2101_v9 = vadd.f32 %v3008_v19, %v2100_v16  ;;  %v1683_v44 = vmul.f32 %v4494_v7, %v3287_v17  ;;  %v1709_v26 = vmul.f32 %v4494_v7, %v3289_v18 }
 0x460   : > { %v2105_v61 = vsel %vm2104_vm8, %v3008_v19, %v2101_v9  ;;  %v4478_v30 = vpop.permute.xlu2 %1650 }
 0x461   : > { %v4456_v15 = vsel %vm2107_vm9, %v2109_v24, %v2105_v61  ;;  %v1681_v51 = vmul.f32 %v4478_v30, %v3287_v17  ;;  %v1707_v13 = vmul.f32 %v4478_v30, %v3289_v18 }
 0x462   : > { %v3012_v42 = vpop.eup %3011  ;;  %v2221_v39 = vmul.f32 %v2208_v10, %v4456_v15 }
 0x463   : > { %2286 = vrot.lane.b32.xlu2 %v3012_v42, %s3182_s5  ;;  %v1733_v46 = vadd.f32 %v1707_v13, %v1681_v51 }
 0x464   : > { %v2234_v45 = vadd.f32 %v2221_v39, %v1752_v47 }
 0x465   : > { %v1759_v61 = vadd.f32 %v1733_v46, %v3293_v23 }
 0x466   : > { %3013 = vtanh.f32 %v2234_v45 }
 0x46c   : > { %v3014_v50 = vpop.eup %3013 }
 0x46d   : > { %2292 = vrot.lane.b32.xlu0 %v3014_v50, %s3182_s5 }
 0x478   : > { %v1868_v20 = vpop.f32.mrf.mxu2  ;;  %v4485_v24 = vpop.f32.mrf.mxu3 }
 0x479   : > { %v1949_v40 = vadd.f32 %v1868_v20, %v1753_v1 }
 0x47b   : > { %v2674_v48 = vmul.f32 -1.442695, %v1949_v40 }
 0x480   : > { %v1871_v19 = vpop.f32.mrf.mxu2  ;;  %v4496_v55 = vpop.f32.mrf.mxu3 }
 0x481   : > { %v1950_v63 = vadd.f32 %v1871_v19, %v1755_v60  ;;  %v1735_v19 = vadd.f32 %v1709_v26, %v1683_v44 }
 0x483   : > { %v2675_v41 = vmul.f32 -1.442695, %v1950_v63  ;;  %v1680_v63 = vmul.f32 %v1647_v38, %v3303_v32  ;;  %v1761_v46 = vadd.f32 %v1735_v19, %v3293_v23 }
 0x485   : > { %3015 = vpow2.f32 %v2675_v41  ;;  %v1706_v41 = vmul.f32 %v1647_v38, %v3305_v33 }
 0x486   : > { %3017 = vpow2.f32 %v2674_v48 }
 0x488   : > { %v1874_v16 = vpop.f32.mrf.mxu2 }
 0x489   : > { %v1951_v6 = vadd.f32 %v1874_v16, %v1757_v4  ;;  %v1930_v16 = vpop.f32.mrf.mxu3 }
 0x48b   : > { %v2676_v21 = vmul.f32 -1.442695, %v1951_v6  ;;  %v3016_v9 = vpop.eup %3015 }
 0x48c   : > { %v3018_v10 = vpop.eup %3017  ;;  %v4488_v42 = vadd.f32 1.0, %v3016_v9  ;;  %v1732_v9 = vadd.f32 %v1706_v41, %v1680_v63 }
 0x48d   : > { %3019 = vpow2.f32 %v2676_v21  ;;  %v4490_v39 = vadd.f32 1.0, %v3018_v10 }
 0x48e   : > { %3021 = vrcp.f32 %v4488_v42  ;;  %v1758_v41 = vadd.f32 %v1732_v9, %v3321_v49  ;;  %vm2132_vm0 = vweird.f32 %v4488_v42  ;;  %v1704_v9 = vmul.f32 %v4462_v28, %v3305_v33 }
 0x48f   : > { %3023 = vrcp.f32 %v4490_v39  ;;  %vm2117_vm2 = vweird.f32 %v4490_v39 }
 0x490   : > { %v1877_v47 = vpop.f32.mrf.mxu2 }
 0x491   : > { %v1952_v45 = vadd.f32 %v1877_v47, %v1759_v61 }
 0x493   : > { %v3020_v50 = vpop.eup %3019  ;;  %v2677_v57 = vmul.f32 -1.442695, %v1952_v45  ;;  %v2211_v45 = vadd.f32 %v4323_v53, %v1930_v16  ;;  %v1678_v16 = vmul.f32 %v4462_v28, %v3303_v32  ;;  %v1702_v28 = vmul.f32 %v4464_v35, %v3305_v33 }
 0x494   : > { %v2003_v37 = vadd.f32 1.0, %v3020_v50  ;;  %v4498_v20 = vpop.eup %3021 }
 0x495   : > { %v4504_v1 = vpop.eup %3023  ;;  %v2128_v5 = vmul.f32 %v4498_v20, %v4488_v42  ;;  %vm2133_vm14 = vweird.f32 %v4498_v20 }
 0x496   : > { %3025 = vrcp.f32 %v2003_v37  ;;  %v2113_v36 = vmul.f32 %v4504_v1, %v4490_v39  ;;  %v2151_v51 = vand.u32 2147483647, %v2003_v37  ;;  %v2153_v13 = vand.u32 2147483648, %v2003_v37  ;;  %vm4539_vm1 = vmor %vm2132_vm0, %vm2133_vm14 }
 0x497   : > { %3027 = vpow2.f32 %v2677_v57  ;;  %v2129_v4 = vsub.f32 1.0, %v2128_v5  ;;  %vm2147_vm11 = vweird.f32 %v2003_v37  ;;  %v2256_v57 = vsub.f32 1.0, %v4326_v62 }
 0x498   : > { %v2114_v10 = vsub.f32 1.0, %v2113_v36  ;;  %v2154_v38 = vor.u32 1.1754944e-38, %v2153_v13  ;;  %vm2152_vm13 = vcmp.eq.f32.partialorder %v2151_v51, 8.507059e+37  ;;  %vm2118_vm15 = vweird.f32 %v4504_v1 }
 0x499   : > { %v2130_v44 = vmul.f32 %v4498_v20, %v2129_v4  ;;  %v2138_v13 = vand.u32 2147483648, %v4488_v42  ;;  %v2136_v4 = vand.u32 2147483647, %v4488_v42  ;;  %vm2119_vm3 = vmor %vm2117_vm2, %vm2118_vm15 }
 0x49a   : > { %v2115_v63 = vmul.f32 %v4504_v1, %v2114_v10  ;;  %v2121_v10 = vand.u32 2147483647, %v4490_v39 }
 0x49b   : > { %vm2137_vm5 = vcmp.eq.f32.partialorder %v2136_v4, 8.507059e+37 }
 0x49c   : > { %v3026_v43 = vpop.eup %3025  ;;  %vm2122_vm6 = vcmp.eq.f32.partialorder %v2121_v10, 8.507059e+37  ;;  %v2332_v10 = vmul.f32 %v4378_v54, %v4139_v2 }
 0x49d   : > { %v2143_v60 = vmul.f32 %v3026_v43, %v2003_v37  ;;  %v3028_v40 = vpop.eup %3027  ;;  %vm2148_vm10 = vweird.f32 %v3026_v43  ;;  %v2334_v37 = vmul.f32 %v4326_v62, %v4122_v29  ;;  %v2116_v62 = vadd.f32 %v4504_v1, %v2115_v63 }
 0x49e   : > { %v4512_v21 = vadd.f32 1.0, %v3028_v40  ;;  %vm2149_vm12 = vmor %vm2147_vm11, %vm2148_vm10  ;;  %v2255_v63 = vsub.f32 1.0, %v4440_v3 }
 0x49f   : > { %v2144_v48 = vsub.f32 1.0, %v2143_v60 }
 0x4a0   : > { %3029 = vrcp.f32 %v4512_v21  ;;  %vm2162_vm8 = vweird.f32 %v4512_v21 }
 0x4a1   : > { %v2145_v6 = vmul.f32 %v3026_v43, %v2144_v48 }
 0x4a3   : > { %v2146_v61 = vadd.f32 %v3026_v43, %v2145_v6  ;;  %v1880_v47 = vpop.f32.mrf.mxu2  ;;  %v2123_v6 = vand.u32 2147483648, %v4490_v39  ;;  %v2120_v39 = vsel %vm2119_vm3, %v4504_v1, %v2116_v62  ;;  %v2209_v1 = vadd.f32 %v4323_v53, %v4485_v24 }
 0x4a4   : > { %v1953_v50 = vadd.f32 %v1880_v47, %v1761_v46  ;;  %v1676_v47 = vmul.f32 %v4464_v35, %v3303_v32 }
 0x4a5   : > { %v2150_v26 = vsel %vm2149_vm12, %v3026_v43, %v2146_v61  ;;  %v2285_v5 = vpop.permute.xlu1 %2284  ;;  %v2131_v43 = vadd.f32 %v4498_v20, %v2130_v44 }
 0x4a6   : > { %v4519_v60 = vsel %vm2152_vm13, %v2154_v38, %v2150_v26  ;;  %v2678_v40 = vmul.f32 -1.442695, %v1953_v50  ;;  %v2321_v19 = vmul.f32 %v2285_v5, %v2256_v57  ;;  %v4531_v29 = vpop.eup %3029  ;;  %v2139_v38 = vor.u32 1.1754944e-38, %v2138_v13 }
 0x4a7   : > { %v2224_v36 = vmul.f32 %v2211_v45, %v4519_v60  ;;  %v2135_v42 = vsel %vm4539_vm1, %v4498_v20, %v2131_v43  ;;  %v2158_v45 = vmul.f32 %v4531_v29, %v4512_v21  ;;  %v2124_v20 = vor.u32 1.1754944e-38, %v2123_v6  ;;  %v1933_v6 = vpop.f32.mrf.mxu3 }
 0x4a8   : > { %3031 = vpow2.f32 %v2678_v40  ;;  %v2347_v48 = vadd.f32 %v2334_v37, %v2321_v19  ;;  %v4561_v57 = vsel %vm2137_vm5, %v2139_v38, %v2135_v42  ;;  %v1730_v26 = vadd.f32 %v1704_v9, %v1678_v16 }
 0x4a9   : > { %v2237_v51 = vadd.f32 %v2224_v36, %v1758_v41  ;;  %v2210_v5 = vadd.f32 %v4323_v53, %v4496_v55  ;;  %v4566_v40 = vsel %vm2122_vm6, %v2124_v20, %v2120_v39  ;;  %v2159_v37 = vsub.f32 1.0, %v2158_v45 }
 0x4aa   : > { %2375 = vrot.lane.b32.xlu0 %v2347_v48, %s3182_s5  ;;  %v1728_v35 = vadd.f32 %v1702_v28, %v1676_v47  ;;  %v2222_v41 = vmul.f32 %v2209_v1, %v4566_v40  ;;  %v1756_v36 = vadd.f32 %v1730_v26, %v3321_v49  ;;  %v2333_v43 = vmul.f32 %v4440_v3, %v4107_v34  ;;  %v187_v1 = vld [vmem:[#allocation2 + $0xb0] sm:$0xff] }
 0x4ab   : > { %3033 = vtanh.f32 %v2237_v51  ;;  %v2223_v19 = vmul.f32 %v2210_v5, %v4561_v57  ;;  %v2160_v48 = vmul.f32 %v4531_v29, %v2159_v37  ;;  %v2254_v13 = vsub.f32 1.0, %v4378_v54 }
 0x4ac   : > { %v1754_v24 = vadd.f32 %v1728_v35, %v3321_v49  ;;  %vm2163_vm7 = vweird.f32 %v4531_v29  ;;  %v2168_v38 = vand.u32 2147483648, %v4512_v21  ;;  %v2166_v45 = vand.u32 2147483647, %v4512_v21 }
 0x4ad   : > { %v2236_v4 = vadd.f32 %v2223_v19, %v1756_v36  ;;  %v2161_v47 = vadd.f32 %v4531_v29, %v2160_v48  ;;  %v1682_v54 = vmul.f32 %v4478_v30, %v3303_v32  ;;  %v1708_v39 = vmul.f32 %v4478_v30, %v3305_v33  ;;  %vm4597_vm10 = vmor %vm2162_vm8, %vm2163_vm7 }
 0x4ae   : > { %v3032_v61 = vpop.eup %3031  ;;  %v2259_v5 = vsub.f32 1.0, %v4412_v31  ;;  %v1684_v30 = vmul.f32 %v4494_v7, %v3303_v32  ;;  %v1710_v37 = vmul.f32 %v4494_v7, %v3305_v33  ;;  %v2169_v35 = vor.u32 1.1754944e-38, %v2168_v38 }
 0x4af   : > { %v4559_v50 = vadd.f32 1.0, %v3032_v61  ;;  %v2235_v61 = vadd.f32 %v2222_v41, %v1754_v24  ;;  %vm2167_vm13 = vcmp.eq.f32.partialorder %v2166_v45, 8.507059e+37 }
 0x4b0   : > { %v1736_v24 = vadd.f32 %v1710_v37, %v1684_v30  ;;  %v190_v37 = vld [vmem:[#allocation2 + $0xe0] sm:$0xff] }
 0x4b1   : > { %v3034_v44 = vpop.eup %3033  ;;  %3035 = vrcp.f32 %v4559_v50  ;;  %v2183_v2 = vand.u32 2147483648, %v4559_v50  ;;  %v2181_v21 = vand.u32 2147483647, %v4559_v50  ;;  %vm2177_vm11 = vweird.f32 %v4559_v50 }
 0x4b2   : > { %2298 = vrot.lane.b32.xlu0 %v3034_v44, %s3182_s5  ;;  %3037 = vtanh.f32 %v2236_v4  ;;  %v2165_v44 = vsel %vm4597_vm10, %v4531_v29, %v2161_v47  ;;  %v2337_v29 = vmul.f32 %v4412_v31, %v4170_v56  ;;  %v2212_v56 = vadd.f32 %v4323_v53, %v1933_v6 }
 0x4b3   : > { %3039 = vtanh.f32 %v2235_v61  ;;  %v2184_v36 = vor.u32 1.1754944e-38, %v2183_v2  ;;  %v4624_v48 = vsel %vm2167_vm13, %v2169_v35, %v2165_v44  ;;  %vm2182_vm14 = vcmp.eq.f32.partialorder %v2181_v21, 8.507059e+37  ;;  %v1883_v61 = vpop.f32.mrf.mxu2  ;;  %v188_v35 = vld [vmem:[#allocation2 + $0xc0] sm:$0xff] }
 0x4b4   : > { %v2335_v2 = vmul.f32 %v4447_v12, %v4179_v59 }
 0x4b5   : > { %v2283_v55 = vpop.permute.xlu2 %2282 }
 0x4b6   : > { %v2320_v51 = vmul.f32 %v2283_v55, %v2255_v63  ;;  %v1936_v63 = vpop.f32.mrf.mxu3 }
 0x4b7   : > { %v3036_v62 = vpop.eup %3035  ;;  %v2281_v16 = vpop.permute.xlu0 %2280  ;;  %v2213_v4 = vadd.f32 %v4323_v53, %v1936_v63 }
 0x4b8   : > { %v2173_v46 = vmul.f32 %v3036_v62, %v4559_v50  ;;  %v2346_v9 = vadd.f32 %v2333_v43, %v2320_v51  ;;  %v2319_v42 = vmul.f32 %v2281_v16, %v2254_v13  ;;  %vm2178_vm9 = vweird.f32 %v3036_v62  ;;  %v3038_v55 = vpop.eup %3037 }
 0x4b9   : > { %vm4612_vm12 = vmor %vm2177_vm11, %vm2178_vm9  ;;  %v1734_v13 = vadd.f32 %v1708_v39, %v1682_v54  ;;  %v2336_v54 = vmul.f32 %v4416_v22, %v4132_v27 }
 0x4ba   : > { %v2174_v34 = vsub.f32 1.0, %v2173_v46  ;;  %v2345_v3 = vadd.f32 %v2332_v10, %v2319_v42  ;;  %2373 = vrot.lane.b32.xlu1 %v2346_v9, %s3182_s5  ;;  %v2225_v9 = vmul.f32 %v2212_v56, %v4624_v48  ;;  %v2257_v10 = vsub.f32 1.0, %v4447_v12 }
 0x4bb   : > { %v1760_v42 = vadd.f32 %v1734_v13, %v3321_v49 }
 0x4bc   : > { %v2175_v28 = vmul.f32 %v3036_v62, %v2174_v34  ;;  %2371 = vrot.lane.b32.xlu2 %v2345_v3, %s3182_s5  ;;  %v2258_v34 = vsub.f32 1.0, %v4416_v22  ;;  %v1762_v3 = vadd.f32 %v1736_v24, %v3321_v49  ;;  %v189_v22 = vld [vmem:[#allocation2 + $0xd0] sm:$0xff] }
 0x4be   : > { %v2176_v26 = vadd.f32 %v3036_v62, %v2175_v28  ;;  %v2238_v28 = vadd.f32 %v2225_v9, %v1760_v42  ;;  %v1939_v24 = vpop.f32.mrf.mxu3 }
 0x4bf   : > { %v4616_v19 = vpop.permute.xlu0 %1658  ;;  %v2291_v50 = vpop.permute.xlu1 %2290 }
 0x4c0   : > { %v2180_v41 = vsel %vm4612_vm12, %v3036_v62, %v2176_v26  ;;  %v1685_v7 = vmul.f32 %v4616_v19, %v3287_v17  ;;  %v1711_v43 = vmul.f32 %v4616_v19, %v3289_v18  ;;  %v2324_v51 = vmul.f32 %v2291_v50, %v2259_v5  ;;  %v3040_v62 = vpop.eup %3039  ;;  %v2287_v17 = vpop.permute.xlu2 %2286  ;;  %v192_v26 = vld [vmem:[#allocation2 + $0x100] sm:$0xff]  ;;  %v191_v5 = vld [vmem:[#allocation2 + $0xf0] sm:$0xff] }
 0x4c1   : > { %v4629_v31 = vsel %vm2182_vm14, %v2184_v36, %v2180_v41  ;;  %v2322_v47 = vmul.f32 %v2287_v17, %v2257_v10  ;;  %2431 = vmatpush.msrb.mxu0 %v192_v26  ;;  %v186_v50 = vld [vmem:[#allocation2 + $0xa0] sm:$0xff]  ;;  %v185_v41 = vld [vmem:[#allocation2 + $0x90] sm:$0xff]  ;;  %v1686_v36 = vmul.f32 %v4616_v19, %v3303_v32  ;;  %v2262_v26 = vsub.f32 1.0, %v4561_v57 }
 0x4c2   : > { %2296 = vrot.lane.b32.xlu1 %v3038_v55, %s3182_s5  ;;  %v1737_v16 = vadd.f32 %v1711_v43, %v1685_v7  ;;  %v2350_v46 = vadd.f32 %v2337_v29, %v2324_v51  ;;  %v2226_v18 = vmul.f32 %v2213_v4, %v4629_v31  ;;  %v1712_v7 = vmul.f32 %v4616_v19, %v3305_v33 }
 0x4c3   : > { %v2348_v21 = vadd.f32 %v2335_v2, %v2322_v47  ;;  %2432 = vmatpush.msrb.mxu0 %v191_v5  ;;  %v2260_v51 = vsub.f32 1.0, %v4456_v15  ;;  %v2338_v4 = vmul.f32 %v4456_v15, %v4192_v25  ;;  %v2261_v47 = vsub.f32 1.0, %v4566_v40 }
 0x4c4   : > { %2294 = vrot.lane.b32.xlu2 %v3040_v62, %s3182_s5  ;;  %v1763_v6 = vadd.f32 %v1737_v16, %v3293_v23  ;;  %2381 = vrot.lane.b32.xlu0 %v2350_v46, %s3182_s5  ;;  %v2239_v39 = vadd.f32 %v2226_v18, %v1762_v3  ;;  %v1738_v16 = vadd.f32 %v1712_v7, %v1686_v36 }
 0x4c5   : > { %2433 = vmatpush.msrb.mxu0 %v190_v37  ;;  %v2214_v46 = vadd.f32 %v4323_v53, %v1939_v24 }
 0x4c6   : > { %v1954_v38 = vadd.f32 %v1883_v61, %v1763_v6  ;;  %v1764_v18 = vadd.f32 %v1738_v16, %v3321_v49  ;;  %v2263_v49 = vsub.f32 1.0, %v4519_v60 }
 0x4c7   : > { %v2289_v45 = vpop.permute.xlu0 %2288  ;;  %2434 = vmatpush.msrb.mxu0 %v189_v22 }
 0x4c8   : > { %v2323_v23 = vmul.f32 %v2289_v45, %v2258_v34  ;;  %v2679_v20 = vmul.f32 -1.442695, %v1954_v38  ;;  %v2339_v34 = vmul.f32 %v4566_v40, %v4229_v14  ;;  %v2264_v14 = vsub.f32 1.0, %v4624_v48 }
 0x4c9   : > { %2435 = vmatpush.msrb.mxu0 %v188_v35 }
 0x4ca   : > { %v2349_v44 = vadd.f32 %v2336_v54, %v2323_v23  ;;  %3041 = vpow2.f32 %v2679_v20  ;;  %v2342_v20 = vmul.f32 %v4624_v48, %v4242_v0  ;;  %v2265_v0 = vsub.f32 1.0, %v4629_v31 }
 0x4cb   : > { %3043 = vtanh.f32 %v2238_v28  ;;  %2436 = vmatpush.msrb.mxu0 %v187_v1  ;;  %v2341_v28 = vmul.f32 %v4519_v60, %v4211_v11  ;;  %v2340_v60 = vmul.f32 %v4561_v57, %v4218_v58 }
 0x4cc   : > { %2379 = vrot.lane.b32.xlu1 %v2349_v44, %s3182_s5  ;;  %2377 = vrot.lane.b32.xlu2 %v2348_v21, %s3182_s5  ;;  %3045 = vtanh.f32 %v2239_v39 }
 0x4cd   : > { %2437 = vmatpush.msrb.mxu0 %v186_v50 }
 0x4cf   : > { %2438 = vmatpush.msrb.mxu0 %v185_v41 }
 0x4d0   : > { %v3042_v30 = vpop.eup %3041 }
 0x4d1   : > { %v3044_v59 = vpop.eup %3043  ;;  %v2006_v12 = vadd.f32 1.0, %v3042_v30 }
 0x4d2   : > { %v3046_v27 = vpop.eup %3045 }
 0x4d3   : > { %3047 = vrcp.f32 %v2006_v12  ;;  %v2198_v43 = vand.u32 2147483648, %v2006_v12  ;;  %v2196_v56 = vand.u32 2147483647, %v2006_v12  ;;  %vm2192_vm0 = vweird.f32 %v2006_v12 }
 0x4d4   : > { %2300 = vrot.lane.b32.xlu2 %v3044_v59, %s3182_s5  ;;  %2302 = vrot.lane.b32.xlu1 %v3046_v27, %s3182_s5 }
 0x4d5   : > { %v2199_v33 = vor.u32 1.1754944e-38, %v2198_v43  ;;  %vm2197_vm2 = vcmp.eq.f32.partialorder %v2196_v56, 8.507059e+37 }
 0x4d9   : > { %v3048_v29 = vpop.eup %3047 }
 0x4da   : > { %v2188_v63 = vmul.f32 %v3048_v29, %v2006_v12  ;;  %vm2193_vm15 = vweird.f32 %v3048_v29  ;;  %v2343_v12 = vmul.f32 %v4629_v31, %v4261_v8  ;;  %v193_v8 = vld [vmem:[#allocation2 + $0x110] ss:$0 sm:$0xff] }
 0x4db   : > { %vm2194_vm1 = vmor %vm2192_vm0, %vm2193_vm15 }
 0x4dc   : > { %v2189_v55 = vsub.f32 1.0, %v2188_v63 }
 0x4de   : > { %v2190_v13 = vmul.f32 %v3048_v29, %v2189_v55 }
 0x4df   : > { %v2293_v62 = vpop.permute.xlu0 %2292 }
 0x4e0   : > { %v2325_v17 = vmul.f32 %v2293_v62, %v2260_v51  ;;  %v2191_v32 = vadd.f32 %v3048_v29, %v2190_v13 }
 0x4e2   : > { %v2351_v19 = vadd.f32 %v2338_v4, %v2325_v17  ;;  %v2195_v9 = vsel %vm2194_vm1, %v3048_v29, %v2191_v32 }
 0x4e3   : > { %v2200_v10 = vsel %vm2197_vm2, %v2199_v33, %v2195_v9 }
 0x4e4   : > { %2383 = vrot.lane.b32.xlu2 %v2351_v19, %s3182_s5  ;;  %v2227_v6 = vmul.f32 %v2214_v46, %v2200_v10  ;;  %v2266_v22 = vsub.f32 1.0, %v2200_v10  ;;  %v2344_v1 = vmul.f32 %v2200_v10, %v4247_v52 }
 0x4e6   : > { %v2240_v42 = vadd.f32 %v2227_v6, %v1764_v18 }
 0x4e8   : > { %3049 = vtanh.f32 %v2240_v42 }
 0x4ee   : > { %v3050_v25 = vpop.eup %3049 }
 0x4ef   : > { %2304 = vrot.lane.b32.xlu0 %v3050_v25, %s3182_s5 }
 0x516   : > { %v2372_v15 = vpop.permute.xlu2 %2371 }
 0x517   : > { %2680 = vmatmul.msk.f32.vlgmr.msrb.gmra.mxu0 %vm1054_vm4, %v2372_v15 }
 0x51c   : > { %v2376_v61 = vpop.permute.xlu0 %2375 }
 0x51e   : > { %v2295_v53 = vpop.permute.xlu2 %2294 }
 0x51f   : > { %v2326_v3 = vmul.f32 %v2295_v53, %v2261_v47 }
 0x521   : > { %v2352_v38 = vadd.f32 %v2339_v34, %v2326_v3 }
 0x523   : > { %2385 = vrot.lane.b32.xlu1 %v2352_v38, %s3182_s5 }
 0x524   : > { %v2299_v45 = vpop.permute.xlu0 %2298 }
 0x525   : > { %v2328_v2 = vmul.f32 %v2299_v45, %v2263_v49 }
 0x526   : > { %v2378_v54 = vpop.permute.xlu2 %2377 }
 0x527   : > { %v2354_v23 = vadd.f32 %v2341_v28, %v2328_v2 }
 0x529   : > { %2389 = vrot.lane.b32.xlu0 %v2354_v23, %s3182_s5 }
 0x52c   : > { %v2374_v39 = vpop.permute.xlu1 %2373 }
 0x52d   : > { %2681 = vmatmul.msk.f32.gmra.mxu0 %vm1054_vm4, %v2374_v39 }
 0x52e   : > { %v2301_v40 = vpop.permute.xlu2 %2300 }
 0x52f   : > { %v2329_v21 = vmul.f32 %v2301_v40, %v2264_v14 }
 0x531   : > { %v2355_v44 = vadd.f32 %v2342_v20, %v2329_v21 }
 0x533   : > { %2391 = vrot.lane.b32.xlu1 %v2355_v44, %s3182_s5 }
 0x534   : > { %v2297_v11 = vpop.permute.xlu1 %2296 }
 0x535   : > { %v2327_v5 = vmul.f32 %v2297_v11, %v2262_v26  ;;  %2682 = vmatmul.msk.f32.gmra.mxu0 %vm1054_vm4, %v2376_v61 }
 0x536   : > { %v2382_v37 = vpop.permute.xlu0 %2381 }
 0x537   : > { %v2353_v30 = vadd.f32 %v2340_v60, %v2327_v5 }
 0x539   : > { %2387 = vrot.lane.b32.xlu2 %v2353_v30, %s3182_s5 }
 0x53d   : > { %2683 = vmatmul.msk.f32.gmra.mxu0 %vm1054_vm4, %v2378_v54 }
 0x53e   : > { %v2380_v59 = vpop.permute.xlu1 %2379  ;;  %v2384_v27 = vpop.permute.xlu2 %2383 }
 0x545   : > { %2684 = vmatmul.msk.f32.gmra.mxu0 %vm1054_vm4, %v2380_v59 }
 0x546   : > { %v2303_v48 = vpop.permute.xlu1 %2302 }
 0x547   : > { %v2330_v58 = vmul.f32 %v2303_v48, %v2265_v0 }
 0x549   : > { %v2356_v57 = vadd.f32 %v2343_v12, %v2330_v58 }
 0x54b   : > { %2393 = vrot.lane.b32.xlu2 %v2356_v57, %s3182_s5 }
 0x54d   : > { %2685 = vmatmul.msk.f32.gmra.mxu0 %vm1054_vm4, %v2382_v37 }
 0x555   : > { %2686 = vmatmul.msk.f32.gmra.mxu0 %vm1054_vm4, %v2384_v27 }
 0x561   : > { %v2305_v35 = vpop.permute.xlu0 %2304 }
 0x562   : > { %v2331_v29 = vmul.f32 %v2305_v35, %v2266_v22 }
 0x564   : > { %v2357_v50 = vadd.f32 %v2344_v1, %v2331_v29 }
 0x566   : > { %2395 = vrot.lane.b32.xlu0 %v2357_v50, %s3182_s5 }
 0x593   : > { %v2388_v52 = vpop.permute.xlu2 %2387 }
 0x594   : > { %v2440_v31 = vpop.f32.mrf.mxu0 }
 0x595   : > { %v2441_v63 = vadd.f32 %v2440_v31, %v193_v8  ;;  %v2386_v41 = vpop.permute.xlu1 %2385 }
 0x596   : > { %2687 = vmatmul.msk.f32.gmra.mxu0 %vm1054_vm4, %v2386_v41 }
 0x597   : > { %2479 = vst [vmem:[%s4694_s8] sm:$0xff] %v2441_v63 }
 0x59b   : > { %v2390_v36 = vpop.permute.xlu0 %2389 }
 0x59e   : > { %2688 = vmatmul.msk.f32.gmra.mxu0 %vm1054_vm4, %v2388_v52 }
 0x5a5   : > { %v2392_v43 = vpop.permute.xlu1 %2391  ;;  %v2394_v56 = vpop.permute.xlu2 %2393 }
 0x5a6   : > { %2689 = vmatmul.msk.f32.gmra.mxu0 %vm1054_vm4, %v2390_v36 }
 0x5aa   : > { %v2443_v7 = vpop.f32.mrf.mxu0 }
 0x5ab   : > { %v2444_v55 = vadd.f32 %v2443_v7, %v193_v8 }
 0x5ad   : > { %2480 = vst [vmem:[%s4694_s8 + $0x8] sm:$0xff] %v2444_v55 }
 0x5ae   : > { %2690 = vmatmul.msk.f32.gmra.mxu0 %vm1054_vm4, %v2392_v43 }
 0x5b2   : > { %v2446_v51 = vpop.f32.mrf.mxu0 }
 0x5b3   : > { %v2447_v13 = vadd.f32 %v2446_v51, %v193_v8 }
 0x5b5   : > { %2481 = vst [vmem:[%s4694_s8 + $0x10] sm:$0xff] %v2447_v13 }
 0x5b6   : > { %2691 = vmatmul.msk.f32.gmra.mxu0 %vm1054_vm4, %v2394_v56 }
 0x5ba   : > { %v2449_v62 = vpop.f32.mrf.mxu0 }
 0x5bb   : > { %v2450_v24 = vadd.f32 %v2449_v62, %v193_v8 }
 0x5bd   : > { %2482 = vst [vmem:[%s4694_s8 + $0x18] sm:$0xff] %v2450_v24 }
 0x5c2   : > { %v2452_v4 = vpop.f32.mrf.mxu0 }
 0x5c3   : > { %v2453_v17 = vadd.f32 %v2452_v4, %v193_v8 }
 0x5c5   : > { %2483 = vst [vmem:[%s4694_s8 + $0x20] sm:$0xff] %v2453_v17 }
 0x5ca   : > { %v2455_v16 = vpop.f32.mrf.mxu0 }
 0x5cb   : > { %v2456_v32 = vadd.f32 %v2455_v16, %v193_v8 }
 0x5cd   : > { %2484 = vst [vmem:[%s4694_s8 + $0x28] sm:$0xff] %v2456_v32 }
 0x5d2   : > { %v2458_v33 = vpop.f32.mrf.mxu0 }
 0x5d3   : > { %v2459_v19 = vadd.f32 %v2458_v33, %v193_v8 }
 0x5d5   : > { %2485 = vst [vmem:[%s4694_s8 + $0x30] sm:$0xff] %v2459_v19 }
 0x5d8   : > { %v2396_v46 = vpop.permute.xlu0 %2395 }
 0x5d9   : > { %2692 = vmatmul.msk.f32.gmra.mxu0 %vm1054_vm4, %v2396_v46 }
 0x613   : > { %v2461_v9 = vpop.f32.mrf.mxu0 }
 0x614   : > { %v2462_v10 = vadd.f32 %v2461_v9, %v193_v8 }
 0x616   : > { %2486 = vst [vmem:[%s4694_s8 + $0x38] sm:$0xff] %v2462_v10 }
 0x61b   : > { %v2464_v18 = vpop.f32.mrf.mxu0 }
 0x61c   : > { %v2465_v6 = vadd.f32 %v2464_v18, %v193_v8 }
 0x61e   : > { %2487 = vst [vmem:[%s4694_s8 + $0x40] sm:$0xff] %v2465_v6 }
 0x623   : > { %v2467_v42 = vpop.f32.mrf.mxu0 }
 0x624   : > { %v2468_v25 = vadd.f32 %v2467_v42, %v193_v8 }
 0x626   : > { %2488 = vst [vmem:[%s4694_s8 + $0x48] sm:$0xff] %v2468_v25 }
 0x62b   : > { %v2470_v15 = vpop.f32.mrf.mxu0 }
 0x62c   : > { %v2471_v61 = vadd.f32 %v2470_v15, %v193_v8 }
 0x62e   : > { %2489 = vst [vmem:[%s4694_s8 + $0x50] sm:$0xff] %v2471_v61 }
 0x633   : > { %v2473_v47 = vpop.f32.mrf.mxu0 }
 0x634   : > { %v2474_v53 = vadd.f32 %v2473_v47, %v193_v8 }
 0x636   : > { %2490 = vst [vmem:[%s4694_s8 + $0x58] sm:$0xff] %v2474_v53 }
 0x656   : > { %v2476_v34 = vpop.f32.mrf.mxu0 }
 0x657   : > { %v2477_v3 = vadd.f32 %v2476_v34, %v193_v8 }
 0x659   : > { %2491 = vst [vmem:[%s4694_s8 + $0x60] sm:$0xff] %v2477_v3 }
 0x65a   : > { %3136 = shalt.err (!%p3133_p8)
}
 0x65b   : > { %s3186_s3 = smov 128   ;;  %s3187_s4 = smov 8  }
 0x65c   : > { %2726 = dma.vmem_to_hbm [thread:$0]  (%p3241_p5), %s2506_s22, 1664, %s2508_s23, %s2493_s24, %s3186_s3, %s3186_s3, %s3187_s4  }
 0x65d PF: > { %p2738_p9 = scmp.ge.s32.totalorder %s3175_s12, 2  ;;  %s2522_s5 = sand.u32 1, %s3163_s9  }
 0x65e   : > { %s2523_s6 = scalar_lea.sflag [#allocation4], %s2522_s5 }
 0x65f   : > { %p2733_p10 = pnand %p2738_p9, %p3245_p6 }
 0x661   : > { %p2734_p11 = pneg %p2733_p10 }
 0x663   : > { %3158 = dma.done.wait (%p2734_p11), %s2523_s6, 1664  }
 0x664   : > { %3160 = vsyncadd (%p2734_p11), %s2523_s6, 4294965632  ;;  %p13_p12 = scmp.ge.s32.totalorder %s3228_s15, 4   ;;  %s4781_s9 = smov %s3167_s10 }
 0x665   : > { %s4782_s10 = smov %s3171_s11  ;;  %s4783_s11 = smov %s3239_s18 }
 0x666   : > { %s4784_s12 = smov %s3228_s15  ;;  %15 = sbr.rel (!%p13_p12) target bundleno = 4 (0x4), region = 71 }
 0x66b   :  { %2529 = vsyncpa [#allocation3], 1 }
 0x66c   :  { %2531 = vsyncpa [#allocation3 + $0x1], 1 }
 0x66d   :  { %2532 = vsyncpa [#allocation4], 1 }
 0x66e   :  { %2534 = vsyncpa [#allocation4 + $0x1], 1 }

</bundles_post_ra>
